<compile_context>
chip_gen: v7x
topology: tpu7x:2x2x1
jax: 0.10.0
libtpu: 0.0.40
codegen_flags: <defaults>
</compile_context>

<pallas_src>
import jax
import jax.numpy as jnp
from jax.experimental import pallas as pl
from jax.experimental.pallas import tpu as pltpu

E = 50          # embedding_dim (only used by the unfused reference params)
H = 128         # hidden_dim
VOCAB = 64      # toy vocabulary size
VOCAB_PAD = 128 # vocab axis padded to a full lane / MXU-K tile
OUT_PAD = 128   # lane-dense padded logits width (first 2 lanes valid)


# --------------------------- fused forward kernel ---------------------------
def movie_fused_kernel(ids_ref, lens_ref,
                       w_in1_ref, b1_ref, whh1_ref,
                       wih2_ref, whh2_ref, b2_ref,
                       wf1_ref, bf1_ref, wf2_ref, bf2_ref, wf3_ref, bf3_ref,
                       out_ref,
                       gx1_buf):
    TB = ids_ref.shape[0]          # T * B (time-major flattened)
    B = lens_ref.shape[0]
    T = TB // B
    f32 = jnp.float32

    # ---- embedding lookup fused with layer-1 input projection --------------
    # one_hot(ids) @ (Emb @ W_ih1, zero-padded to 128 vocab rows) + b1:
    # exact row selection of the precomputed per-token input-gate
    # contributions, ONE MXU matmul for ALL timesteps, bias folded here
    # (off the recurrent critical chain).
    ids = ids_ref[...]                                             # (T*B, 1) i32
    lane = jax.lax.broadcasted_iota(jnp.int32, (TB, w_in1_ref.shape[0]), 1)
    onehot = (ids == lane).astype(f32)                             # (T*B, 128)
    gx1_buf[...] = (jnp.dot(onehot, w_in1_ref[...],
                            preferred_element_type=f32)
                    + b1_ref[...])                                 # (T*B, 4H)

    # Hoisted weight loads / bias broadcast / per-step valid masks.
    whh1 = whh1_ref[...]
    wih2 = wih2_ref[...]
    whh2 = whh2_ref[...]
    b2 = jnp.broadcast_to(b2_ref[...], (B, 4 * H))
    lens = lens_ref[...]                                           # (B, 1) i32
    masks = [lens > t for t in range(T)]                           # (B, 1) bool

    def sigmoid(x):
        # One native EUP tanh instead of exp + reciprocal.
        return 0.5 * (jnp.tanh(0.5 * x) + 1.0)

    def gates(g):
        # PyTorch gate order: i, f, g, o
        i = sigmoid(g[:, 0 * H:1 * H])
        f = sigmoid(g[:, 1 * H:2 * H])
        gg = jnp.tanh(g[:, 2 * H:3 * H])
        o = sigmoid(g[:, 3 * H:4 * H])
        return i, f, gg, o

    # ---- prologue: layer-1 step 0 (h1 = c1 = 0 -> recurrent term vanishes) -
    i1, f1, gg1, o1 = gates(gx1_buf[pl.ds(0, B), :])
    c1n = i1 * gg1
    h1n = o1 * jnp.tanh(c1n)
    h1 = jnp.where(masks[0], h1n, 0.0)
    c1 = jnp.where(masks[0], c1n, 0.0)
    h2 = jnp.zeros((B, H), f32)
    c2 = jnp.zeros((B, H), f32)

    # ---- skewed main loop: layer-1 for step t  +  layer-2 for step t-1 -----
    # Both matmul groups read only (h1[t-1], h2[t-2]) and the precomputed
    # gx1 row, so they overlap and hide MXU/EUP latency of the serial chain.
    for t in range(1, T):
        g1 = gx1_buf[pl.ds(t * B, B), :] + jnp.dot(
            h1, whh1, preferred_element_type=f32)
        g2 = (jnp.dot(h1, wih2, preferred_element_type=f32)
              + jnp.dot(h2, whh2, preferred_element_type=f32) + b2)

        # layer-2, step t-1
        i2, f2, gg2, o2 = gates(g2)
        c2n = f2 * c2 + i2 * gg2
        h2n = o2 * jnp.tanh(c2n)
        h2 = jnp.where(masks[t - 1], h2n, h2)
        c2 = jnp.where(masks[t - 1], c2n, c2)

        # layer-1, step t
        i1, f1, gg1, o1 = gates(g1)
        c1n = f1 * c1 + i1 * gg1
        h1n = o1 * jnp.tanh(c1n)
        h1 = jnp.where(masks[t], h1n, h1)
        c1 = jnp.where(masks[t], c1n, c1)

        # nn.LSTM inter-layer dropout(0.1) is train-only; eval => identity.

    # ---- epilogue: layer-2 for the final step T-1 ---------------------------
    g2 = (jnp.dot(h1, wih2, preferred_element_type=f32)
          + jnp.dot(h2, whh2, preferred_element_type=f32) + b2)
    i2, f2, gg2, o2 = gates(g2)
    c2n = f2 * c2 + i2 * gg2
    h2n = o2 * jnp.tanh(c2n)
    h2 = jnp.where(masks[T - 1], h2n, h2)

    # ---- MLP head epilogue (eval-mode dropout(0.2) == identity) -------------
    x1 = jnp.tanh(jnp.dot(h2, wf1_ref[...], preferred_element_type=f32)
                  + bf1_ref[...])
    x2 = jnp.tanh(jnp.dot(x1, wf2_ref[...], preferred_element_type=f32)
                  + bf2_ref[...])
    # fc2/fc3 zero-padded -> lane-dense intermediates and an unmasked
    # lane-dense (B, 128) store.
    out_ref[...] = (jnp.dot(x2, wf3_ref[...], preferred_element_type=f32)
                    + bf3_ref[...])


def movie_model_forward(fused, input_ids, seq_lens):
    """input_ids: (B, T) int32; seq_lens: (B,) int32 -> logits (B, 2)."""
    B, T = input_ids.shape
    # time-major flatten so rows [t*B, (t+1)*B) of the projected table are step t
    ids_col = jnp.transpose(input_ids).reshape(T * B, 1).astype(jnp.int32)
    lens = seq_lens.astype(jnp.int32).reshape(B, 1)

    vm = pl.BlockSpec(memory_space=pltpu.MemorySpace.VMEM)
    out_pad = pl.pallas_call(
        movie_fused_kernel,
        out_shape=jax.ShapeDtypeStruct((B, OUT_PAD), jnp.float32),
        in_specs=[vm] * 14,
        out_specs=vm,
        scratch_shapes=[
            pltpu.VMEM((T * B, 4 * H), jnp.float32),  # precomputed layer-1 input gates (+b1)
        ],
    )(ids_col, lens,
      fused["w_in1"], fused["b1"], fused["whh1"],
      fused["wih2"], fused["whh2"], fused["b2"],
      fused["wf1"], fused["bf1"],
      fused["wf2"], fused["bf2"], fused["wf3"], fused["bf3"])
    return out_pad[:, :2]


# ------------------- init-time parameter transforms -------------------------
def prepare_fused_params(params):
    f32 = jnp.float32
    # Embedding table folded into layer-1 input projection, zero-padded on the
    # vocab axis to a full 128-lane / K=128 MXU tile.
    w_in1 = jnp.dot(params["emb"].astype(f32), params["wih1"].astype(f32),
                    precision=jax.lax.Precision.HIGHEST)           # (VOCAB, 4H)
    w_in1 = jnp.zeros((VOCAB_PAD, 4 * H), f32).at[:VOCAB, :].set(w_in1)
    # fc2 zero-padded to 128 output lanes, fc3 zero-padded to 128 input rows
    # and 128 output lanes (tanh(0)=0 and zero wf3 rows keep the math exact).
    wf2 = jnp.zeros((128, 128), f32).at[:, :32].set(params["w_fc2"])
    bf2 = jnp.zeros((1, 128), f32).at[:, :32].set(params["b_fc2"])
    wf3 = jnp.zeros((128, OUT_PAD), f32).at[:32, :2].set(params["w_fc3"])
    bf3 = jnp.zeros((1, OUT_PAD), f32).at[:, :2].set(params["b_fc3"])
    return {
        "w_in1": w_in1, "b1": params["b1"], "whh1": params["whh1"],
        "wih2": params["wih2"], "whh2": params["whh2"], "b2": params["b2"],
        "wf1": params["w_fc1"], "bf1": params["b_fc1"],
        "wf2": wf2, "bf2": bf2, "wf3": wf3, "bf3": bf3,
    }


# ---------------------------- pure-JAX reference ----------------------------
def reference_forward(params, input_ids, seq_lens):
    B, T = input_ids.shape
    embeds = jnp.take(params["emb"], input_ids, axis=0).astype(jnp.float32)

    def cell(x, h, c, wih, whh, b):
        g = x @ wih + h @ whh + b
        i = jax.nn.sigmoid(g[:, :H])
        f = jax.nn.sigmoid(g[:, H:2 * H])
        gg = jnp.tanh(g[:, 2 * H:3 * H])
        o = jax.nn.sigmoid(g[:, 3 * H:])
        c_new = f * c + i * gg
        return o * jnp.tanh(c_new), c_new

    h1 = jnp.zeros((B, H), jnp.float32)
    c1 = jnp.zeros((B, H), jnp.float32)
    h2 = jnp.zeros((B, H), jnp.float32)
    c2 = jnp.zeros((B, H), jnp.float32)
    for t in range(T):
        valid = (t < seq_lens).astype(jnp.float32)[:, None]
        h1n, c1n = cell(embeds[:, t, :], h1, c1,
                        params["wih1"], params["whh1"], params["b1"])
        h1 = valid * h1n + (1 - valid) * h1
        c1 = valid * c1n + (1 - valid) * c1
        h2n, c2n = cell(h1, h2, c2,
                        params["wih2"], params["whh2"], params["b2"])
        h2 = valid * h2n + (1 - valid) * h2
        c2 = valid * c2n + (1 - valid) * c2

    x1 = jnp.tanh(h2 @ params["w_fc1"] + params["b_fc1"])
    x2 = jnp.tanh(x1 @ params["w_fc2"] + params["b_fc2"])
    return x2 @ params["w_fc3"] + params["b_fc3"]


# -------------------------------- params ------------------------------------
def init_params(key):
    ks = jax.random.split(key, 16)
    s = 0.1

    def rnd(k, shape):
        return jax.random.normal(k, shape, jnp.float32) * s

    return {
        "emb": rnd(ks[0], (VOCAB, E)),
        # LSTM layer 1: weights stored pre-transposed as (in, 4H)
        "wih1": rnd(ks[1], (E, 4 * H)),
        "whh1": rnd(ks[2], (H, 4 * H)),
        "b1": rnd(ks[3], (1, 4 * H)) + rnd(ks[4], (1, 4 * H)),   # b_ih + b_hh
        # LSTM layer 2
        "wih2": rnd(ks[5], (H, 4 * H)),
        "whh2": rnd(ks[6], (H, 4 * H)),
        "b2": rnd(ks[7], (1, 4 * H)) + rnd(ks[8], (1, 4 * H)),
        # fc heads, (in, out) i.e. nn.Linear weight transposed
        "w_fc1": rnd(ks[9], (H, 128)),
        "b_fc1": rnd(ks[10], (1, 128)),
        "w_fc2": rnd(ks[11], (128, 32)),
        "b_fc2": rnd(ks[12], (1, 32)),
        "w_fc3": rnd(ks[13], (32, 2)),
        "b_fc3": rnd(ks[14], (1, 2)),
    }


if __name__ == "__main__":
    key = jax.random.PRNGKey(0)
    params = init_params(key)
    fused = prepare_fused_params(params)

    B, T = 8, 8
    k_in, _ = jax.random.split(jax.random.PRNGKey(0))
    input_ids = jax.random.randint(k_in, (B, T), 0, VOCAB, dtype=jnp.int32)
    # pack_padded_sequence expects lengths sorted descending (masking does not
    # actually require it, but we keep the convention)
    seq_lens = jnp.array([8, 7, 6, 5, 4, 3, 2, 1], dtype=jnp.int32)

    out = movie_model_forward(fused, input_ids, seq_lens)
    out = jax.block_until_ready(out)

    ref = reference_forward(params, input_ids, seq_lens)
    assert out.shape == (B, 2), out.shape
    # Tolerance slightly looser than strict 1e-4: sigmoid is computed via the
    # tanh identity on the EUP (same math, different approximation path).
    assert jnp.allclose(out, ref, rtol=2e-4, atol=2e-4), (out, ref)

    print("KERNEL_OK")
</pallas_src>

<mosaic_0001>
module attributes {stable_mosaic.version = 11 : i64} {
  func.func @movie_fused_kernel(%arg0: memref<64x1xi32, #tpu.memory_space<vmem>>, %arg1: memref<8x1xi32, #tpu.memory_space<vmem>>, %arg2: memref<128x512xf32, #tpu.memory_space<vmem>>, %arg3: memref<1x512xf32, #tpu.memory_space<vmem>>, %arg4: memref<128x512xf32, #tpu.memory_space<vmem>>, %arg5: memref<128x512xf32, #tpu.memory_space<vmem>>, %arg6: memref<128x512xf32, #tpu.memory_space<vmem>>, %arg7: memref<1x512xf32, #tpu.memory_space<vmem>>, %arg8: memref<128x128xf32, #tpu.memory_space<vmem>>, %arg9: memref<1x128xf32, #tpu.memory_space<vmem>>, %arg10: memref<128x128xf32, #tpu.memory_space<vmem>>, %arg11: memref<1x128xf32, #tpu.memory_space<vmem>>, %arg12: memref<128x128xf32, #tpu.memory_space<vmem>>, %arg13: memref<1x128xf32, #tpu.memory_space<vmem>>, %arg14: memref<8x128xf32, #tpu.memory_space<vmem>>, %arg15: memref<64x512xf32, #tpu.memory_space<vmem>>) attributes {dimension_semantics = [], scalar_prefetch = 0 : i64, scratch_operands = 1 : i64, tpu.core_type = #tpu.core_type<tc>} {
    %c0 = arith.constant 0 : index
    %c0_0 = arith.constant 0 : index
    %0 = vector.load %arg0[%c0, %c0_0] : memref<64x1xi32, #tpu.memory_space<vmem>>, vector<64x1xi32>
    %1 = tpu.iota {dimensions = array<i32: 1>} : vector<64x128xi32>
    %2 = vector.broadcast %0 : vector<64x1xi32> to vector<64x128xi32>
    %3 = arith.cmpi eq, %2, %1 : vector<64x128xi32>
    %4 = arith.extui %3 : vector<64x128xi1> to vector<64x128xi32>
    %5 = arith.sitofp %4 : vector<64x128xi32> to vector<64x128xf32>
    %c0_1 = arith.constant 0 : index
    %c0_2 = arith.constant 0 : index
    %6 = vector.load %arg2[%c0_1, %c0_2] : memref<128x512xf32, #tpu.memory_space<vmem>>, vector<128x512xf32>
    %cst = arith.constant dense<0.000000e+00> : vector<64x512xf32>
    %7 = tpu.matmul %5, %6, %cst {dimension_numbers = #tpu.dot_dimension_numbers<[1], [0], [0], [1], [0, 0, 1, 1], [], []>} : vector<64x128xf32>, vector<128x512xf32>, vector<64x512xf32> -> vector<64x512xf32>
    %c0_3 = arith.constant 0 : index
    %c0_4 = arith.constant 0 : index
    %8 = vector.load %arg3[%c0_3, %c0_4] : memref<1x512xf32, #tpu.memory_space<vmem>>, vector<1x512xf32>
    %9 = vector.broadcast %8 : vector<1x512xf32> to vector<64x512xf32>
    %10 = arith.addf %7, %9 : vector<64x512xf32>
    %c0_5 = arith.constant 0 : index
    %c0_6 = arith.constant 0 : index
    %11 = vector.load %arg15[%c0_5, %c0_6] : memref<64x512xf32, #tpu.memory_space<vmem>>, vector<64x512xf32>
    tpu.vector_store %arg15[%c0_5, %c0_6], %10 {strides = array<i32>} : memref<64x512xf32, #tpu.memory_space<vmem>>, vector<64x512xf32>,
    %c0_7 = arith.constant 0 : index
    %c0_8 = arith.constant 0 : index
    %12 = vector.load %arg4[%c0_7, %c0_8] : memref<128x512xf32, #tpu.memory_space<vmem>>, vector<128x512xf32>
    %c0_9 = arith.constant 0 : index
    %c0_10 = arith.constant 0 : index
    %13 = vector.load %arg5[%c0_9, %c0_10] : memref<128x512xf32, #tpu.memory_space<vmem>>, vector<128x512xf32>
    %c0_11 = arith.constant 0 : index
    %c0_12 = arith.constant 0 : index
    %14 = vector.load %arg6[%c0_11, %c0_12] : memref<128x512xf32, #tpu.memory_space<vmem>>, vector<128x512xf32>
    %c0_13 = arith.constant 0 : index
    %c0_14 = arith.constant 0 : index
    %15 = vector.load %arg7[%c0_13, %c0_14] : memref<1x512xf32, #tpu.memory_space<vmem>>, vector<1x512xf32>
    %16 = vector.shape_cast %15 : vector<1x512xf32> to vector<1x512xf32>
    %17 = vector.broadcast %16 : vector<1x512xf32> to vector<8x512xf32>
    %c0_15 = arith.constant 0 : index
    %c0_16 = arith.constant 0 : index
    %18 = vector.load %arg1[%c0_15, %c0_16] : memref<8x1xi32, #tpu.memory_space<vmem>>, vector<8x1xi32>
    %c0_i32 = arith.constant 0 : i32
    %19 = vector.broadcast %c0_i32 : i32 to vector<8x1xi32>
    %20 = arith.cmpi sgt, %18, %19 : vector<8x1xi32>
    %c1_i32 = arith.constant 1 : i32
    %21 = vector.broadcast %c1_i32 : i32 to vector<8x1xi32>
    %22 = arith.cmpi sgt, %18, %21 : vector<8x1xi32>
    %c2_i32 = arith.constant 2 : i32
    %23 = vector.broadcast %c2_i32 : i32 to vector<8x1xi32>
    %24 = arith.cmpi sgt, %18, %23 : vector<8x1xi32>
    %c3_i32 = arith.constant 3 : i32
    %25 = vector.broadcast %c3_i32 : i32 to vector<8x1xi32>
    %26 = arith.cmpi sgt, %18, %25 : vector<8x1xi32>
    %c4_i32 = arith.constant 4 : i32
    %27 = vector.broadcast %c4_i32 : i32 to vector<8x1xi32>
    %28 = arith.cmpi sgt, %18, %27 : vector<8x1xi32>
    %c5_i32 = arith.constant 5 : i32
    %29 = vector.broadcast %c5_i32 : i32 to vector<8x1xi32>
    %30 = arith.cmpi sgt, %18, %29 : vector<8x1xi32>
    %c6_i32 = arith.constant 6 : i32
    %31 = vector.broadcast %c6_i32 : i32 to vector<8x1xi32>
    %32 = arith.cmpi sgt, %18, %31 : vector<8x1xi32>
    %c7_i32 = arith.constant 7 : i32
    %33 = vector.broadcast %c7_i32 : i32 to vector<8x1xi32>
    %34 = arith.cmpi sgt, %18, %33 : vector<8x1xi32>
    %c0_17 = arith.constant 0 : index
    %c0_18 = arith.constant 0 : index
    %35 = vector.load %arg15[%c0_17, %c0_18] : memref<64x512xf32, #tpu.memory_space<vmem>>, vector<8x512xf32>
    %36 = vector.extract_strided_slice %35 {offsets = [0, 0], sizes = [8, 128], strides = [1, 1]} : vector<8x512xf32> to vector<8x128xf32>
    %cst_19 = arith.constant 5.000000e-01 : f32
    %37 = vector.broadcast %cst_19 : f32 to vector<8x128xf32>
    %38 = arith.mulf %37, %36 : vector<8x128xf32>
    %39 = math.tanh %38 : vector<8x128xf32>
    %cst_20 = arith.constant 1.000000e+00 : f32
    %40 = vector.broadcast %cst_20 : f32 to vector<8x128xf32>
    %41 = arith.addf %39, %40 : vector<8x128xf32>
    %cst_21 = arith.constant 5.000000e-01 : f32
    %42 = vector.broadcast %cst_21 : f32 to vector<8x128xf32>
    %43 = arith.mulf %42, %41 : vector<8x128xf32>
    %44 = vector.extract_strided_slice %35 {offsets = [0, 256], sizes = [8, 128], strides = [1, 1]} : vector<8x512xf32> to vector<8x128xf32>
    %45 = math.tanh %44 : vector<8x128xf32>
    %46 = vector.extract_strided_slice %35 {offsets = [0, 384], sizes = [8, 128], strides = [1, 1]} : vector<8x512xf32> to vector<8x128xf32>
    %cst_22 = arith.constant 5.000000e-01 : f32
    %47 = vector.broadcast %cst_22 : f32 to vector<8x128xf32>
    %48 = arith.mulf %47, %46 : vector<8x128xf32>
    %49 = math.tanh %48 : vector<8x128xf32>
    %cst_23 = arith.constant 1.000000e+00 : f32
    %50 = vector.broadcast %cst_23 : f32 to vector<8x128xf32>
    %51 = arith.addf %49, %50 : vector<8x128xf32>
    %cst_24 = arith.constant 5.000000e-01 : f32
    %52 = vector.broadcast %cst_24 : f32 to vector<8x128xf32>
    %53 = arith.mulf %52, %51 : vector<8x128xf32>
    %54 = arith.mulf %43, %45 : vector<8x128xf32>
    %55 = math.tanh %54 : vector<8x128xf32>
    %56 = arith.mulf %53, %55 : vector<8x128xf32>
    %cst_25 = arith.constant 0.000000e+00 : f32
    %57 = vector.shape_cast %20 : vector<8x1xi1> to vector<8x1xi1>
    %58 = vector.broadcast %57 : vector<8x1xi1> to vector<8x128xi1>
    %59 = vector.broadcast %cst_25 : f32 to vector<8x128xf32>
    %60 = arith.select %58, %56, %59 : vector<8x128xi1>, vector<8x128xf32>
    %cst_26 = arith.constant 0.000000e+00 : f32
    %61 = vector.shape_cast %20 : vector<8x1xi1> to vector<8x1xi1>
    %62 = vector.broadcast %61 : vector<8x1xi1> to vector<8x128xi1>
    %63 = vector.broadcast %cst_26 : f32 to vector<8x128xf32>
    %64 = arith.select %62, %54, %63 : vector<8x128xi1>, vector<8x128xf32>
    %cst_27 = arith.constant 0.000000e+00 : f32
    %65 = vector.broadcast %cst_27 : f32 to vector<8x128xf32>
    %cst_28 = arith.constant 0.000000e+00 : f32
    %66 = vector.broadcast %cst_28 : f32 to vector<8x128xf32>
    %c8 = arith.constant 8 : index
    %c0_29 = arith.constant 0 : index
    %67 = vector.load %arg15[%c8, %c0_29] : memref<64x512xf32, #tpu.memory_space<vmem>>, vector<8x512xf32>
    %cst_30 = arith.constant dense<0.000000e+00> : vector<8x512xf32>
    %68 = tpu.matmul %60, %12, %cst_30 {dimension_numbers = #tpu.dot_dimension_numbers<[1], [0], [0], [1], [0, 0, 1, 1], [], []>} : vector<8x128xf32>, vector<128x512xf32>, vector<8x512xf32> -> vector<8x512xf32>
    %69 = arith.addf %67, %68 : vector<8x512xf32>
    %cst_31 = arith.constant dense<0.000000e+00> : vector<8x512xf32>
    %70 = tpu.matmul %60, %13, %cst_31 {dimension_numbers = #tpu.dot_dimension_numbers<[1], [0], [0], [1], [0, 0, 1, 1], [], []>} : vector<8x128xf32>, vector<128x512xf32>, vector<8x512xf32> -> vector<8x512xf32>
    %cst_32 = arith.constant dense<0.000000e+00> : vector<8x512xf32>
    %71 = tpu.matmul %65, %14, %cst_32 {dimension_numbers = #tpu.dot_dimension_numbers<[1], [0], [0], [1], [0, 0, 1, 1], [], []>} : vector<8x128xf32>, vector<128x512xf32>, vector<8x512xf32> -> vector<8x512xf32>
    %72 = arith.addf %70, %71 : vector<8x512xf32>
    %73 = arith.addf %72, %17 : vector<8x512xf32>
    %74 = vector.extract_strided_slice %73 {offsets = [0, 0], sizes = [8, 128], strides = [1, 1]} : vector<8x512xf32> to vector<8x128xf32>
    %cst_33 = arith.constant 5.000000e-01 : f32
    %75 = vector.broadcast %cst_33 : f32 to vector<8x128xf32>
    %76 = arith.mulf %75, %74 : vector<8x128xf32>
    %77 = math.tanh %76 : vector<8x128xf32>
    %cst_34 = arith.constant 1.000000e+00 : f32
    %78 = vector.broadcast %cst_34 : f32 to vector<8x128xf32>
    %79 = arith.addf %77, %78 : vector<8x128xf32>
    %cst_35 = arith.constant 5.000000e-01 : f32
    %80 = vector.broadcast %cst_35 : f32 to vector<8x128xf32>
    %81 = arith.mulf %80, %79 : vector<8x128xf32>
    %82 = vector.extract_strided_slice %73 {offsets = [0, 128], sizes = [8, 128], strides = [1, 1]} : vector<8x512xf32> to vector<8x128xf32>
    %cst_36 = arith.constant 5.000000e-01 : f32
    %83 = vector.broadcast %cst_36 : f32 to vector<8x128xf32>
    %84 = arith.mulf %83, %82 : vector<8x128xf32>
    %85 = math.tanh %84 : vector<8x128xf32>
    %cst_37 = arith.constant 1.000000e+00 : f32
    %86 = vector.broadcast %cst_37 : f32 to vector<8x128xf32>
    %87 = arith.addf %85, %86 : vector<8x128xf32>
    %cst_38 = arith.constant 5.000000e-01 : f32
    %88 = vector.broadcast %cst_38 : f32 to vector<8x128xf32>
    %89 = arith.mulf %88, %87 : vector<8x128xf32>
    %90 = vector.extract_strided_slice %73 {offsets = [0, 256], sizes = [8, 128], strides = [1, 1]} : vector<8x512xf32> to vector<8x128xf32>
    %91 = math.tanh %90 : vector<8x128xf32>
    %92 = vector.extract_strided_slice %73 {offsets = [0, 384], sizes = [8, 128], strides = [1, 1]} : vector<8x512xf32> to vector<8x128xf32>
    %cst_39 = arith.constant 5.000000e-01 : f32
    %93 = vector.broadcast %cst_39 : f32 to vector<8x128xf32>
    %94 = arith.mulf %93, %92 : vector<8x128xf32>
    %95 = math.tanh %94 : vector<8x128xf32>
    %cst_40 = arith.constant 1.000000e+00 : f32
    %96 = vector.broadcast %cst_40 : f32 to vector<8x128xf32>
    %97 = arith.addf %95, %96 : vector<8x128xf32>
    %cst_41 = arith.constant 5.000000e-01 : f32
    %98 = vector.broadcast %cst_41 : f32 to vector<8x128xf32>
    %99 = arith.mulf %98, %97 : vector<8x128xf32>
    %100 = arith.mulf %89, %66 : vector<8x128xf32>
    %101 = arith.mulf %81, %91 : vector<8x128xf32>
    %102 = arith.addf %100, %101 : vector<8x128xf32>
    %103 = math.tanh %102 : vector<8x128xf32>
    %104 = arith.mulf %99, %103 : vector<8x128xf32>
    %105 = vector.shape_cast %20 : vector<8x1xi1> to vector<8x1xi1>
    %106 = vector.broadcast %105 : vector<8x1xi1> to vector<8x128xi1>
    %107 = arith.select %106, %104, %65 : vector<8x128xi1>, vector<8x128xf32>
    %108 = vector.shape_cast %20 : vector<8x1xi1> to vector<8x1xi1>
    %109 = vector.broadcast %108 : vector<8x1xi1> to vector<8x128xi1>
    %110 = arith.select %109, %102, %66 : vector<8x128xi1>, vector<8x128xf32>
    %111 = vector.extract_strided_slice %69 {offsets = [0, 0], sizes = [8, 128], strides = [1, 1]} : vector<8x512xf32> to vector<8x128xf32>
    %cst_42 = arith.constant 5.000000e-01 : f32
    %112 = vector.broadcast %cst_42 : f32 to vector<8x128xf32>
    %113 = arith.mulf %112, %111 : vector<8x128xf32>
    %114 = math.tanh %113 : vector<8x128xf32>
    %cst_43 = arith.constant 1.000000e+00 : f32
    %115 = vector.broadcast %cst_43 : f32 to vector<8x128xf32>
    %116 = arith.addf %114, %115 : vector<8x128xf32>
    %cst_44 = arith.constant 5.000000e-01 : f32
    %117 = vector.broadcast %cst_44 : f32 to vector<8x128xf32>
    %118 = arith.mulf %117, %116 : vector<8x128xf32>
    %119 = vector.extract_strided_slice %69 {offsets = [0, 128], sizes = [8, 128], strides = [1, 1]} : vector<8x512xf32> to vector<8x128xf32>
    %cst_45 = arith.constant 5.000000e-01 : f32
    %120 = vector.broadcast %cst_45 : f32 to vector<8x128xf32>
    %121 = arith.mulf %120, %119 : vector<8x128xf32>
    %122 = math.tanh %121 : vector<8x128xf32>
    %cst_46 = arith.constant 1.000000e+00 : f32
    %123 = vector.broadcast %cst_46 : f32 to vector<8x128xf32>
    %124 = arith.addf %122, %123 : vector<8x128xf32>
    %cst_47 = arith.constant 5.000000e-01 : f32
    %125 = vector.broadcast %cst_47 : f32 to vector<8x128xf32>
    %126 = arith.mulf %125, %124 : vector<8x128xf32>
    %127 = vector.extract_strided_slice %69 {offsets = [0, 256], sizes = [8, 128], strides = [1, 1]} : vector<8x512xf32> to vector<8x128xf32>
    %128 = math.tanh %127 : vector<8x128xf32>
    %129 = vector.extract_strided_slice %69 {offsets = [0, 384], sizes = [8, 128], strides = [1, 1]} : vector<8x512xf32> to vector<8x128xf32>
    %cst_48 = arith.constant 5.000000e-01 : f32
    %130 = vector.broadcast %cst_48 : f32 to vector<8x128xf32>
    %131 = arith.mulf %130, %129 : vector<8x128xf32>
    %132 = math.tanh %131 : vector<8x128xf32>
    %cst_49 = arith.constant 1.000000e+00 : f32
    %133 = vector.broadcast %cst_49 : f32 to vector<8x128xf32>
    %134 = arith.addf %132, %133 : vector<8x128xf32>
    %cst_50 = arith.constant 5.000000e-01 : f32
    %135 = vector.broadcast %cst_50 : f32 to vector<8x128xf32>
    %136 = arith.mulf %135, %134 : vector<8x128xf32>
    %137 = arith.mulf %126, %64 : vector<8x128xf32>
    %138 = arith.mulf %118, %128 : vector<8x128xf32>
    %139 = arith.addf %137, %138 : vector<8x128xf32>
    %140 = math.tanh %139 : vector<8x128xf32>
    %141 = arith.mulf %136, %140 : vector<8x128xf32>
    %142 = vector.shape_cast %22 : vector<8x1xi1> to vector<8x1xi1>
    %143 = vector.broadcast %142 : vector<8x1xi1> to vector<8x128xi1>
    %144 = arith.select %143, %141, %60 : vector<8x128xi1>, vector<8x128xf32>
    %145 = vector.shape_cast %22 : vector<8x1xi1> to vector<8x1xi1>
    %146 = vector.broadcast %145 : vector<8x1xi1> to vector<8x128xi1>
    %147 = arith.select %146, %139, %64 : vector<8x128xi1>, vector<8x128xf32>
    %c16 = arith.constant 16 : index
    %c0_51 = arith.constant 0 : index
    %148 = vector.load %arg15[%c16, %c0_51] : memref<64x512xf32, #tpu.memory_space<vmem>>, vector<8x512xf32>
    %cst_52 = arith.constant dense<0.000000e+00> : vector<8x512xf32>
    %149 = tpu.matmul %144, %12, %cst_52 {dimension_numbers = #tpu.dot_dimension_numbers<[1], [0], [0], [1], [0, 0, 1, 1], [], []>} : vector<8x128xf32>, vector<128x512xf32>, vector<8x512xf32> -> vector<8x512xf32>
    %150 = arith.addf %148, %149 : vector<8x512xf32>
    %cst_53 = arith.constant dense<0.000000e+00> : vector<8x512xf32>
    %151 = tpu.matmul %144, %13, %cst_53 {dimension_numbers = #tpu.dot_dimension_numbers<[1], [0], [0], [1], [0, 0, 1, 1], [], []>} : vector<8x128xf32>, vector<128x512xf32>, vector<8x512xf32> -> vector<8x512xf32>
    %cst_54 = arith.constant dense<0.000000e+00> : vector<8x512xf32>
    %152 = tpu.matmul %107, %14, %cst_54 {dimension_numbers = #tpu.dot_dimension_numbers<[1], [0], [0], [1], [0, 0, 1, 1], [], []>} : vector<8x128xf32>, vector<128x512xf32>, vector<8x512xf32> -> vector<8x512xf32>
    %153 = arith.addf %151, %152 : vector<8x512xf32>
    %154 = arith.addf %153, %17 : vector<8x512xf32>
    %155 = vector.extract_strided_slice %154 {offsets = [0, 0], sizes = [8, 128], strides = [1, 1]} : vector<8x512xf32> to vector<8x128xf32>
    %cst_55 = arith.constant 5.000000e-01 : f32
    %156 = vector.broadcast %cst_55 : f32 to vector<8x128xf32>
    %157 = arith.mulf %156, %155 : vector<8x128xf32>
    %158 = math.tanh %157 : vector<8x128xf32>
    %cst_56 = arith.constant 1.000000e+00 : f32
    %159 = vector.broadcast %cst_56 : f32 to vector<8x128xf32>
    %160 = arith.addf %158, %159 : vector<8x128xf32>
    %cst_57 = arith.constant 5.000000e-01 : f32
    %161 = vector.broadcast %cst_57 : f32 to vector<8x128xf32>
    %162 = arith.mulf %161, %160 : vector<8x128xf32>
    %163 = vector.extract_strided_slice %154 {offsets = [0, 128], sizes = [8, 128], strides = [1, 1]} : vector<8x512xf32> to vector<8x128xf32>
    %cst_58 = arith.constant 5.000000e-01 : f32
    %164 = vector.broadcast %cst_58 : f32 to vector<8x128xf32>
    %165 = arith.mulf %164, %163 : vector<8x128xf32>
    %166 = math.tanh %165 : vector<8x128xf32>
    %cst_59 = arith.constant 1.000000e+00 : f32
    %167 = vector.broadcast %cst_59 : f32 to vector<8x128xf32>
    %168 = arith.addf %166, %167 : vector<8x128xf32>
    %cst_60 = arith.constant 5.000000e-01 : f32
    %169 = vector.broadcast %cst_60 : f32 to vector<8x128xf32>
    %170 = arith.mulf %169, %168 : vector<8x128xf32>
    %171 = vector.extract_strided_slice %154 {offsets = [0, 256], sizes = [8, 128], strides = [1, 1]} : vector<8x512xf32> to vector<8x128xf32>
    %172 = math.tanh %171 : vector<8x128xf32>
    %173 = vector.extract_strided_slice %154 {offsets = [0, 384], sizes = [8, 128], strides = [1, 1]} : vector<8x512xf32> to vector<8x128xf32>
    %cst_61 = arith.constant 5.000000e-01 : f32
    %174 = vector.broadcast %cst_61 : f32 to vector<8x128xf32>
    %175 = arith.mulf %174, %173 : vector<8x128xf32>
    %176 = math.tanh %175 : vector<8x128xf32>
    %cst_62 = arith.constant 1.000000e+00 : f32
    %177 = vector.broadcast %cst_62 : f32 to vector<8x128xf32>
    %178 = arith.addf %176, %177 : vector<8x128xf32>
    %cst_63 = arith.constant 5.000000e-01 : f32
    %179 = vector.broadcast %cst_63 : f32 to vector<8x128xf32>
    %180 = arith.mulf %179, %178 : vector<8x128xf32>
    %181 = arith.mulf %170, %110 : vector<8x128xf32>
    %182 = arith.mulf %162, %172 : vector<8x128xf32>
    %183 = arith.addf %181, %182 : vector<8x128xf32>
    %184 = math.tanh %183 : vector<8x128xf32>
    %185 = arith.mulf %180, %184 : vector<8x128xf32>
    %186 = vector.shape_cast %22 : vector<8x1xi1> to vector<8x1xi1>
    %187 = vector.broadcast %186 : vector<8x1xi1> to vector<8x128xi1>
    %188 = arith.select %187, %185, %107 : vector<8x128xi1>, vector<8x128xf32>
    %189 = vector.shape_cast %22 : vector<8x1xi1> to vector<8x1xi1>
    %190 = vector.broadcast %189 : vector<8x1xi1> to vector<8x128xi1>
    %191 = arith.select %190, %183, %110 : vector<8x128xi1>, vector<8x128xf32>
    %192 = vector.extract_strided_slice %150 {offsets = [0, 0], sizes = [8, 128], strides = [1, 1]} : vector<8x512xf32> to vector<8x128xf32>
    %cst_64 = arith.constant 5.000000e-01 : f32
    %193 = vector.broadcast %cst_64 : f32 to vector<8x128xf32>
    %194 = arith.mulf %193, %192 : vector<8x128xf32>
    %195 = math.tanh %194 : vector<8x128xf32>
    %cst_65 = arith.constant 1.000000e+00 : f32
    %196 = vector.broadcast %cst_65 : f32 to vector<8x128xf32>
    %197 = arith.addf %195, %196 : vector<8x128xf32>
    %cst_66 = arith.constant 5.000000e-01 : f32
    %198 = vector.broadcast %cst_66 : f32 to vector<8x128xf32>
    %199 = arith.mulf %198, %197 : vector<8x128xf32>
    %200 = vector.extract_strided_slice %150 {offsets = [0, 128], sizes = [8, 128], strides = [1, 1]} : vector<8x512xf32> to vector<8x128xf32>
    %cst_67 = arith.constant 5.000000e-01 : f32
    %201 = vector.broadcast %cst_67 : f32 to vector<8x128xf32>
    %202 = arith.mulf %201, %200 : vector<8x128xf32>
    %203 = math.tanh %202 : vector<8x128xf32>
    %cst_68 = arith.constant 1.000000e+00 : f32
    %204 = vector.broadcast %cst_68 : f32 to vector<8x128xf32>
    %205 = arith.addf %203, %204 : vector<8x128xf32>
    %cst_69 = arith.constant 5.000000e-01 : f32
    %206 = vector.broadcast %cst_69 : f32 to vector<8x128xf32>
    %207 = arith.mulf %206, %205 : vector<8x128xf32>
    %208 = vector.extract_strided_slice %150 {offsets = [0, 256], sizes = [8, 128], strides = [1, 1]} : vector<8x512xf32> to vector<8x128xf32>
    %209 = math.tanh %208 : vector<8x128xf32>
    %210 = vector.extract_strided_slice %150 {offsets = [0, 384], sizes = [8, 128], strides = [1, 1]} : vector<8x512xf32> to vector<8x128xf32>
    %cst_70 = arith.constant 5.000000e-01 : f32
    %211 = vector.broadcast %cst_70 : f32 to vector<8x128xf32>
    %212 = arith.mulf %211, %210 : vector<8x128xf32>
    %213 = math.tanh %212 : vector<8x128xf32>
    %cst_71 = arith.constant 1.000000e+00 : f32
    %214 = vector.broadcast %cst_71 : f32 to vector<8x128xf32>
    %215 = arith.addf %213, %214 : vector<8x128xf32>
    %cst_72 = arith.constant 5.000000e-01 : f32
    %216 = vector.broadcast %cst_72 : f32 to vector<8x128xf32>
    %217 = arith.mulf %216, %215 : vector<8x128xf32>
    %218 = arith.mulf %207, %147 : vector<8x128xf32>
    %219 = arith.mulf %199, %209 : vector<8x128xf32>
    %220 = arith.addf %218, %219 : vector<8x128xf32>
    %221 = math.tanh %220 : vector<8x128xf32>
    %222 = arith.mulf %217, %221 : vector<8x128xf32>
    %223 = vector.shape_cast %24 : vector<8x1xi1> to vector<8x1xi1>
    %224 = vector.broadcast %223 : vector<8x1xi1> to vector<8x128xi1>
    %225 = arith.select %224, %222, %144 : vector<8x128xi1>, vector<8x128xf32>
    %226 = vector.shape_cast %24 : vector<8x1xi1> to vector<8x1xi1>
    %227 = vector.broadcast %226 : vector<8x1xi1> to vector<8x128xi1>
    %228 = arith.select %227, %220, %147 : vector<8x128xi1>, vector<8x128xf32>
    %c24 = arith.constant 24 : index
    %c0_73 = arith.constant 0 : index
    %229 = vector.load %arg15[%c24, %c0_73] : memref<64x512xf32, #tpu.memory_space<vmem>>, vector<8x512xf32>
    %cst_74 = arith.constant dense<0.000000e+00> : vector<8x512xf32>
    %230 = tpu.matmul %225, %12, %cst_74 {dimension_numbers = #tpu.dot_dimension_numbers<[1], [0], [0], [1], [0, 0, 1, 1], [], []>} : vector<8x128xf32>, vector<128x512xf32>, vector<8x512xf32> -> vector<8x512xf32>
    %231 = arith.addf %229, %230 : vector<8x512xf32>
    %cst_75 = arith.constant dense<0.000000e+00> : vector<8x512xf32>
    %232 = tpu.matmul %225, %13, %cst_75 {dimension_numbers = #tpu.dot_dimension_numbers<[1], [0], [0], [1], [0, 0, 1, 1], [], []>} : vector<8x128xf32>, vector<128x512xf32>, vector<8x512xf32> -> vector<8x512xf32>
    %cst_76 = arith.constant dense<0.000000e+00> : vector<8x512xf32>
    %233 = tpu.matmul %188, %14, %cst_76 {dimension_numbers = #tpu.dot_dimension_numbers<[1], [0], [0], [1], [0, 0, 1, 1], [], []>} : vector<8x128xf32>, vector<128x512xf32>, vector<8x512xf32> -> vector<8x512xf32>
    %234 = arith.addf %232, %233 : vector<8x512xf32>
    %235 = arith.addf %234, %17 : vector<8x512xf32>
    %236 = vector.extract_strided_slice %235 {offsets = [0, 0], sizes = [8, 128], strides = [1, 1]} : vector<8x512xf32> to vector<8x128xf32>
    %cst_77 = arith.constant 5.000000e-01 : f32
    %237 = vector.broadcast %cst_77 : f32 to vector<8x128xf32>
    %238 = arith.mulf %237, %236 : vector<8x128xf32>
    %239 = math.tanh %238 : vector<8x128xf32>
    %cst_78 = arith.constant 1.000000e+00 : f32
    %240 = vector.broadcast %cst_78 : f32 to vector<8x128xf32>
    %241 = arith.addf %239, %240 : vector<8x128xf32>
    %cst_79 = arith.constant 5.000000e-01 : f32
    %242 = vector.broadcast %cst_79 : f32 to vector<8x128xf32>
    %243 = arith.mulf %242, %241 : vector<8x128xf32>
    %244 = vector.extract_strided_slice %235 {offsets = [0, 128], sizes = [8, 128], strides = [1, 1]} : vector<8x512xf32> to vector<8x128xf32>
    %cst_80 = arith.constant 5.000000e-01 : f32
    %245 = vector.broadcast %cst_80 : f32 to vector<8x128xf32>
    %246 = arith.mulf %245, %244 : vector<8x128xf32>
    %247 = math.tanh %246 : vector<8x128xf32>
    %cst_81 = arith.constant 1.000000e+00 : f32
    %248 = vector.broadcast %cst_81 : f32 to vector<8x128xf32>
    %249 = arith.addf %247, %248 : vector<8x128xf32>
    %cst_82 = arith.constant 5.000000e-01 : f32
    %250 = vector.broadcast %cst_82 : f32 to vector<8x128xf32>
    %251 = arith.mulf %250, %249 : vector<8x128xf32>
    %252 = vector.extract_strided_slice %235 {offsets = [0, 256], sizes = [8, 128], strides = [1, 1]} : vector<8x512xf32> to vector<8x128xf32>
    %253 = math.tanh %252 : vector<8x128xf32>
    %254 = vector.extract_strided_slice %235 {offsets = [0, 384], sizes = [8, 128], strides = [1, 1]} : vector<8x512xf32> to vector<8x128xf32>
    %cst_83 = arith.constant 5.000000e-01 : f32
    %255 = vector.broadcast %cst_83 : f32 to vector<8x128xf32>
    %256 = arith.mulf %255, %254 : vector<8x128xf32>
    %257 = math.tanh %256 : vector<8x128xf32>
    %cst_84 = arith.constant 1.000000e+00 : f32
    %258 = vector.broadcast %cst_84 : f32 to vector<8x128xf32>
    %259 = arith.addf %257, %258 : vector<8x128xf32>
    %cst_85 = arith.constant 5.000000e-01 : f32
    %260 = vector.broadcast %cst_85 : f32 to vector<8x128xf32>
    %261 = arith.mulf %260, %259 : vector<8x128xf32>
    %262 = arith.mulf %251, %191 : vector<8x128xf32>
    %263 = arith.mulf %243, %253 : vector<8x128xf32>
    %264 = arith.addf %262, %263 : vector<8x128xf32>
    %265 = math.tanh %264 : vector<8x128xf32>
    %266 = arith.mulf %261, %265 : vector<8x128xf32>
    %267 = vector.shape_cast %24 : vector<8x1xi1> to vector<8x1xi1>
    %268 = vector.broadcast %267 : vector<8x1xi1> to vector<8x128xi1>
    %269 = arith.select %268, %266, %188 : vector<8x128xi1>, vector<8x128xf32>
    %270 = vector.shape_cast %24 : vector<8x1xi1> to vector<8x1xi1>
    %271 = vector.broadcast %270 : vector<8x1xi1> to vector<8x128xi1>
    %272 = arith.select %271, %264, %191 : vector<8x128xi1>, vector<8x128xf32>
    %273 = vector.extract_strided_slice %231 {offsets = [0, 0], sizes = [8, 128], strides = [1, 1]} : vector<8x512xf32> to vector<8x128xf32>
    %cst_86 = arith.constant 5.000000e-01 : f32
    %274 = vector.broadcast %cst_86 : f32 to vector<8x128xf32>
    %275 = arith.mulf %274, %273 : vector<8x128xf32>
    %276 = math.tanh %275 : vector<8x128xf32>
    %cst_87 = arith.constant 1.000000e+00 : f32
    %277 = vector.broadcast %cst_87 : f32 to vector<8x128xf32>
    %278 = arith.addf %276, %277 : vector<8x128xf32>
    %cst_88 = arith.constant 5.000000e-01 : f32
    %279 = vector.broadcast %cst_88 : f32 to vector<8x128xf32>
    %280 = arith.mulf %279, %278 : vector<8x128xf32>
    %281 = vector.extract_strided_slice %231 {offsets = [0, 128], sizes = [8, 128], strides = [1, 1]} : vector<8x512xf32> to vector<8x128xf32>
    %cst_89 = arith.constant 5.000000e-01 : f32
    %282 = vector.broadcast %cst_89 : f32 to vector<8x128xf32>
    %283 = arith.mulf %282, %281 : vector<8x128xf32>
    %284 = math.tanh %283 : vector<8x128xf32>
    %cst_90 = arith.constant 1.000000e+00 : f32
    %285 = vector.broadcast %cst_90 : f32 to vector<8x128xf32>
    %286 = arith.addf %284, %285 : vector<8x128xf32>
    %cst_91 = arith.constant 5.000000e-01 : f32
    %287 = vector.broadcast %cst_91 : f32 to vector<8x128xf32>
    %288 = arith.mulf %287, %286 : vector<8x128xf32>
    %289 = vector.extract_strided_slice %231 {offsets = [0, 256], sizes = [8, 128], strides = [1, 1]} : vector<8x512xf32> to vector<8x128xf32>
    %290 = math.tanh %289 : vector<8x128xf32>
    %291 = vector.extract_strided_slice %231 {offsets = [0, 384], sizes = [8, 128], strides = [1, 1]} : vector<8x512xf32> to vector<8x128xf32>
    %cst_92 = arith.constant 5.000000e-01 : f32
    %292 = vector.broadcast %cst_92 : f32 to vector<8x128xf32>
    %293 = arith.mulf %292, %291 : vector<8x128xf32>
    %294 = math.tanh %293 : vector<8x128xf32>
    %cst_93 = arith.constant 1.000000e+00 : f32
    %295 = vector.broadcast %cst_93 : f32 to vector<8x128xf32>
    %296 = arith.addf %294, %295 : vector<8x128xf32>
    %cst_94 = arith.constant 5.000000e-01 : f32
    %297 = vector.broadcast %cst_94 : f32 to vector<8x128xf32>
    %298 = arith.mulf %297, %296 : vector<8x128xf32>
    %299 = arith.mulf %288, %228 : vector<8x128xf32>
    %300 = arith.mulf %280, %290 : vector<8x128xf32>
    %301 = arith.addf %299, %300 : vector<8x128xf32>
    %302 = math.tanh %301 : vector<8x128xf32>
    %303 = arith.mulf %298, %302 : vector<8x128xf32>
    %304 = vector.shape_cast %26 : vector<8x1xi1> to vector<8x1xi1>
    %305 = vector.broadcast %304 : vector<8x1xi1> to vector<8x128xi1>
    %306 = arith.select %305, %303, %225 : vector<8x128xi1>, vector<8x128xf32>
    %307 = vector.shape_cast %26 : vector<8x1xi1> to vector<8x1xi1>
    %308 = vector.broadcast %307 : vector<8x1xi1> to vector<8x128xi1>
    %309 = arith.select %308, %301, %228 : vector<8x128xi1>, vector<8x128xf32>
    %c32 = arith.constant 32 : index
    %c0_95 = arith.constant 0 : index
    %310 = vector.load %arg15[%c32, %c0_95] : memref<64x512xf32, #tpu.memory_space<vmem>>, vector<8x512xf32>
    %cst_96 = arith.constant dense<0.000000e+00> : vector<8x512xf32>
    %311 = tpu.matmul %306, %12, %cst_96 {dimension_numbers = #tpu.dot_dimension_numbers<[1], [0], [0], [1], [0, 0, 1, 1], [], []>} : vector<8x128xf32>, vector<128x512xf32>, vector<8x512xf32> -> vector<8x512xf32>
    %312 = arith.addf %310, %311 : vector<8x512xf32>
    %cst_97 = arith.constant dense<0.000000e+00> : vector<8x512xf32>
    %313 = tpu.matmul %306, %13, %cst_97 {dimension_numbers = #tpu.dot_dimension_numbers<[1], [0], [0], [1], [0, 0, 1, 1], [], []>} : vector<8x128xf32>, vector<128x512xf32>, vector<8x512xf32> -> vector<8x512xf32>
    %cst_98 = arith.constant dense<0.000000e+00> : vector<8x512xf32>
    %314 = tpu.matmul %269, %14, %cst_98 {dimension_numbers = #tpu.dot_dimension_numbers<[1], [0], [0], [1], [0, 0, 1, 1], [], []>} : vector<8x128xf32>, vector<128x512xf32>, vector<8x512xf32> -> vector<8x512xf32>
    %315 = arith.addf %313, %314 : vector<8x512xf32>
    %316 = arith.addf %315, %17 : vector<8x512xf32>
    %317 = vector.extract_strided_slice %316 {offsets = [0, 0], sizes = [8, 128], strides = [1, 1]} : vector<8x512xf32> to vector<8x128xf32>
    %cst_99 = arith.constant 5.000000e-01 : f32
    %318 = vector.broadcast %cst_99 : f32 to vector<8x128xf32>
    %319 = arith.mulf %318, %317 : vector<8x128xf32>
    %320 = math.tanh %319 : vector<8x128xf32>
    %cst_100 = arith.constant 1.000000e+00 : f32
    %321 = vector.broadcast %cst_100 : f32 to vector<8x128xf32>
    %322 = arith.addf %320, %321 : vector<8x128xf32>
    %cst_101 = arith.constant 5.000000e-01 : f32
    %323 = vector.broadcast %cst_101 : f32 to vector<8x128xf32>
    %324 = arith.mulf %323, %322 : vector<8x128xf32>
    %325 = vector.extract_strided_slice %316 {offsets = [0, 128], sizes = [8, 128], strides = [1, 1]} : vector<8x512xf32> to vector<8x128xf32>
    %cst_102 = arith.constant 5.000000e-01 : f32
    %326 = vector.broadcast %cst_102 : f32 to vector<8x128xf32>
    %327 = arith.mulf %326, %325 : vector<8x128xf32>
    %328 = math.tanh %327 : vector<8x128xf32>
    %cst_103 = arith.constant 1.000000e+00 : f32
    %329 = vector.broadcast %cst_103 : f32 to vector<8x128xf32>
    %330 = arith.addf %328, %329 : vector<8x128xf32>
    %cst_104 = arith.constant 5.000000e-01 : f32
    %331 = vector.broadcast %cst_104 : f32 to vector<8x128xf32>
    %332 = arith.mulf %331, %330 : vector<8x128xf32>
    %333 = vector.extract_strided_slice %316 {offsets = [0, 256], sizes = [8, 128], strides = [1, 1]} : vector<8x512xf32> to vector<8x128xf32>
    %334 = math.tanh %333 : vector<8x128xf32>
    %335 = vector.extract_strided_slice %316 {offsets = [0, 384], sizes = [8, 128], strides = [1, 1]} : vector<8x512xf32> to vector<8x128xf32>
    %cst_105 = arith.constant 5.000000e-01 : f32
    %336 = vector.broadcast %cst_105 : f32 to vector<8x128xf32>
    %337 = arith.mulf %336, %335 : vector<8x128xf32>
    %338 = math.tanh %337 : vector<8x128xf32>
    %cst_106 = arith.constant 1.000000e+00 : f32
    %339 = vector.broadcast %cst_106 : f32 to vector<8x128xf32>
    %340 = arith.addf %338, %339 : vector<8x128xf32>
    %cst_107 = arith.constant 5.000000e-01 : f32
    %341 = vector.broadcast %cst_107 : f32 to vector<8x128xf32>
    %342 = arith.mulf %341, %340 : vector<8x128xf32>
    %343 = arith.mulf %332, %272 : vector<8x128xf32>
    %344 = arith.mulf %324, %334 : vector<8x128xf32>
    %345 = arith.addf %343, %344 : vector<8x128xf32>
    %346 = math.tanh %345 : vector<8x128xf32>
    %347 = arith.mulf %342, %346 : vector<8x128xf32>
    %348 = vector.shape_cast %26 : vector<8x1xi1> to vector<8x1xi1>
    %349 = vector.broadcast %348 : vector<8x1xi1> to vector<8x128xi1>
    %350 = arith.select %349, %347, %269 : vector<8x128xi1>, vector<8x128xf32>
    %351 = vector.shape_cast %26 : vector<8x1xi1> to vector<8x1xi1>
    %352 = vector.broadcast %351 : vector<8x1xi1> to vector<8x128xi1>
    %353 = arith.select %352, %345, %272 : vector<8x128xi1>, vector<8x128xf32>
    %354 = vector.extract_strided_slice %312 {offsets = [0, 0], sizes = [8, 128], strides = [1, 1]} : vector<8x512xf32> to vector<8x128xf32>
    %cst_108 = arith.constant 5.000000e-01 : f32
    %355 = vector.broadcast %cst_108 : f32 to vector<8x128xf32>
    %356 = arith.mulf %355, %354 : vector<8x128xf32>
    %357 = math.tanh %356 : vector<8x128xf32>
    %cst_109 = arith.constant 1.000000e+00 : f32
    %358 = vector.broadcast %cst_109 : f32 to vector<8x128xf32>
    %359 = arith.addf %357, %358 : vector<8x128xf32>
    %cst_110 = arith.constant 5.000000e-01 : f32
    %360 = vector.broadcast %cst_110 : f32 to vector<8x128xf32>
    %361 = arith.mulf %360, %359 : vector<8x128xf32>
    %362 = vector.extract_strided_slice %312 {offsets = [0, 128], sizes = [8, 128], strides = [1, 1]} : vector<8x512xf32> to vector<8x128xf32>
    %cst_111 = arith.constant 5.000000e-01 : f32
    %363 = vector.broadcast %cst_111 : f32 to vector<8x128xf32>
    %364 = arith.mulf %363, %362 : vector<8x128xf32>
    %365 = math.tanh %364 : vector<8x128xf32>
    %cst_112 = arith.constant 1.000000e+00 : f32
    %366 = vector.broadcast %cst_112 : f32 to vector<8x128xf32>
    %367 = arith.addf %365, %366 : vector<8x128xf32>
    %cst_113 = arith.constant 5.000000e-01 : f32
    %368 = vector.broadcast %cst_113 : f32 to vector<8x128xf32>
    %369 = arith.mulf %368, %367 : vector<8x128xf32>
    %370 = vector.extract_strided_slice %312 {offsets = [0, 256], sizes = [8, 128], strides = [1, 1]} : vector<8x512xf32> to vector<8x128xf32>
    %371 = math.tanh %370 : vector<8x128xf32>
    %372 = vector.extract_strided_slice %312 {offsets = [0, 384], sizes = [8, 128], strides = [1, 1]} : vector<8x512xf32> to vector<8x128xf32>
    %cst_114 = arith.constant 5.000000e-01 : f32
    %373 = vector.broadcast %cst_114 : f32 to vector<8x128xf32>
    %374 = arith.mulf %373, %372 : vector<8x128xf32>
    %375 = math.tanh %374 : vector<8x128xf32>
    %cst_115 = arith.constant 1.000000e+00 : f32
    %376 = vector.broadcast %cst_115 : f32 to vector<8x128xf32>
    %377 = arith.addf %375, %376 : vector<8x128xf32>
    %cst_116 = arith.constant 5.000000e-01 : f32
    %378 = vector.broadcast %cst_116 : f32 to vector<8x128xf32>
    %379 = arith.mulf %378, %377 : vector<8x128xf32>
    %380 = arith.mulf %369, %309 : vector<8x128xf32>
    %381 = arith.mulf %361, %371 : vector<8x128xf32>
    %382 = arith.addf %380, %381 : vector<8x128xf32>
    %383 = math.tanh %382 : vector<8x128xf32>
    %384 = arith.mulf %379, %383 : vector<8x128xf32>
    %385 = vector.shape_cast %28 : vector<8x1xi1> to vector<8x1xi1>
    %386 = vector.broadcast %385 : vector<8x1xi1> to vector<8x128xi1>
    %387 = arith.select %386, %384, %306 : vector<8x128xi1>, vector<8x128xf32>
    %388 = vector.shape_cast %28 : vector<8x1xi1> to vector<8x1xi1>
    %389 = vector.broadcast %388 : vector<8x1xi1> to vector<8x128xi1>
    %390 = arith.select %389, %382, %309 : vector<8x128xi1>, vector<8x128xf32>
    %c40 = arith.constant 40 : index
    %c0_117 = arith.constant 0 : index
    %391 = vector.load %arg15[%c40, %c0_117] : memref<64x512xf32, #tpu.memory_space<vmem>>, vector<8x512xf32>
    %cst_118 = arith.constant dense<0.000000e+00> : vector<8x512xf32>
    %392 = tpu.matmul %387, %12, %cst_118 {dimension_numbers = #tpu.dot_dimension_numbers<[1], [0], [0], [1], [0, 0, 1, 1], [], []>} : vector<8x128xf32>, vector<128x512xf32>, vector<8x512xf32> -> vector<8x512xf32>
    %393 = arith.addf %391, %392 : vector<8x512xf32>
    %cst_119 = arith.constant dense<0.000000e+00> : vector<8x512xf32>
    %394 = tpu.matmul %387, %13, %cst_119 {dimension_numbers = #tpu.dot_dimension_numbers<[1], [0], [0], [1], [0, 0, 1, 1], [], []>} : vector<8x128xf32>, vector<128x512xf32>, vector<8x512xf32> -> vector<8x512xf32>
    %cst_120 = arith.constant dense<0.000000e+00> : vector<8x512xf32>
    %395 = tpu.matmul %350, %14, %cst_120 {dimension_numbers = #tpu.dot_dimension_numbers<[1], [0], [0], [1], [0, 0, 1, 1], [], []>} : vector<8x128xf32>, vector<128x512xf32>, vector<8x512xf32> -> vector<8x512xf32>
    %396 = arith.addf %394, %395 : vector<8x512xf32>
    %397 = arith.addf %396, %17 : vector<8x512xf32>
    %398 = vector.extract_strided_slice %397 {offsets = [0, 0], sizes = [8, 128], strides = [1, 1]} : vector<8x512xf32> to vector<8x128xf32>
    %cst_121 = arith.constant 5.000000e-01 : f32
    %399 = vector.broadcast %cst_121 : f32 to vector<8x128xf32>
    %400 = arith.mulf %399, %398 : vector<8x128xf32>
    %401 = math.tanh %400 : vector<8x128xf32>
    %cst_122 = arith.constant 1.000000e+00 : f32
    %402 = vector.broadcast %cst_122 : f32 to vector<8x128xf32>
    %403 = arith.addf %401, %402 : vector<8x128xf32>
    %cst_123 = arith.constant 5.000000e-01 : f32
    %404 = vector.broadcast %cst_123 : f32 to vector<8x128xf32>
    %405 = arith.mulf %404, %403 : vector<8x128xf32>
    %406 = vector.extract_strided_slice %397 {offsets = [0, 128], sizes = [8, 128], strides = [1, 1]} : vector<8x512xf32> to vector<8x128xf32>
    %cst_124 = arith.constant 5.000000e-01 : f32
    %407 = vector.broadcast %cst_124 : f32 to vector<8x128xf32>
    %408 = arith.mulf %407, %406 : vector<8x128xf32>
    %409 = math.tanh %408 : vector<8x128xf32>
    %cst_125 = arith.constant 1.000000e+00 : f32
    %410 = vector.broadcast %cst_125 : f32 to vector<8x128xf32>
    %411 = arith.addf %409, %410 : vector<8x128xf32>
    %cst_126 = arith.constant 5.000000e-01 : f32
    %412 = vector.broadcast %cst_126 : f32 to vector<8x128xf32>
    %413 = arith.mulf %412, %411 : vector<8x128xf32>
    %414 = vector.extract_strided_slice %397 {offsets = [0, 256], sizes = [8, 128], strides = [1, 1]} : vector<8x512xf32> to vector<8x128xf32>
    %415 = math.tanh %414 : vector<8x128xf32>
    %416 = vector.extract_strided_slice %397 {offsets = [0, 384], sizes = [8, 128], strides = [1, 1]} : vector<8x512xf32> to vector<8x128xf32>
    %cst_127 = arith.constant 5.000000e-01 : f32
    %417 = vector.broadcast %cst_127 : f32 to vector<8x128xf32>
    %418 = arith.mulf %417, %416 : vector<8x128xf32>
    %419 = math.tanh %418 : vector<8x128xf32>
    %cst_128 = arith.constant 1.000000e+00 : f32
    %420 = vector.broadcast %cst_128 : f32 to vector<8x128xf32>
    %421 = arith.addf %419, %420 : vector<8x128xf32>
    %cst_129 = arith.constant 5.000000e-01 : f32
    %422 = vector.broadcast %cst_129 : f32 to vector<8x128xf32>
    %423 = arith.mulf %422, %421 : vector<8x128xf32>
    %424 = arith.mulf %413, %353 : vector<8x128xf32>
    %425 = arith.mulf %405, %415 : vector<8x128xf32>
    %426 = arith.addf %424, %425 : vector<8x128xf32>
    %427 = math.tanh %426 : vector<8x128xf32>
    %428 = arith.mulf %423, %427 : vector<8x128xf32>
    %429 = vector.shape_cast %28 : vector<8x1xi1> to vector<8x1xi1>
    %430 = vector.broadcast %429 : vector<8x1xi1> to vector<8x128xi1>
    %431 = arith.select %430, %428, %350 : vector<8x128xi1>, vector<8x128xf32>
    %432 = vector.shape_cast %28 : vector<8x1xi1> to vector<8x1xi1>
    %433 = vector.broadcast %432 : vector<8x1xi1> to vector<8x128xi1>
    %434 = arith.select %433, %426, %353 : vector<8x128xi1>, vector<8x128xf32>
    %435 = vector.extract_strided_slice %393 {offsets = [0, 0], sizes = [8, 128], strides = [1, 1]} : vector<8x512xf32> to vector<8x128xf32>
    %cst_130 = arith.constant 5.000000e-01 : f32
    %436 = vector.broadcast %cst_130 : f32 to vector<8x128xf32>
    %437 = arith.mulf %436, %435 : vector<8x128xf32>
    %438 = math.tanh %437 : vector<8x128xf32>
    %cst_131 = arith.constant 1.000000e+00 : f32
    %439 = vector.broadcast %cst_131 : f32 to vector<8x128xf32>
    %440 = arith.addf %438, %439 : vector<8x128xf32>
    %cst_132 = arith.constant 5.000000e-01 : f32
    %441 = vector.broadcast %cst_132 : f32 to vector<8x128xf32>
    %442 = arith.mulf %441, %440 : vector<8x128xf32>
    %443 = vector.extract_strided_slice %393 {offsets = [0, 128], sizes = [8, 128], strides = [1, 1]} : vector<8x512xf32> to vector<8x128xf32>
    %cst_133 = arith.constant 5.000000e-01 : f32
    %444 = vector.broadcast %cst_133 : f32 to vector<8x128xf32>
    %445 = arith.mulf %444, %443 : vector<8x128xf32>
    %446 = math.tanh %445 : vector<8x128xf32>
    %cst_134 = arith.constant 1.000000e+00 : f32
    %447 = vector.broadcast %cst_134 : f32 to vector<8x128xf32>
    %448 = arith.addf %446, %447 : vector<8x128xf32>
    %cst_135 = arith.constant 5.000000e-01 : f32
    %449 = vector.broadcast %cst_135 : f32 to vector<8x128xf32>
    %450 = arith.mulf %449, %448 : vector<8x128xf32>
    %451 = vector.extract_strided_slice %393 {offsets = [0, 256], sizes = [8, 128], strides = [1, 1]} : vector<8x512xf32> to vector<8x128xf32>
    %452 = math.tanh %451 : vector<8x128xf32>
    %453 = vector.extract_strided_slice %393 {offsets = [0, 384], sizes = [8, 128], strides = [1, 1]} : vector<8x512xf32> to vector<8x128xf32>
    %cst_136 = arith.constant 5.000000e-01 : f32
    %454 = vector.broadcast %cst_136 : f32 to vector<8x128xf32>
    %455 = arith.mulf %454, %453 : vector<8x128xf32>
    %456 = math.tanh %455 : vector<8x128xf32>
    %cst_137 = arith.constant 1.000000e+00 : f32
    %457 = vector.broadcast %cst_137 : f32 to vector<8x128xf32>
    %458 = arith.addf %456, %457 : vector<8x128xf32>
    %cst_138 = arith.constant 5.000000e-01 : f32
    %459 = vector.broadcast %cst_138 : f32 to vector<8x128xf32>
    %460 = arith.mulf %459, %458 : vector<8x128xf32>
    %461 = arith.mulf %450, %390 : vector<8x128xf32>
    %462 = arith.mulf %442, %452 : vector<8x128xf32>
    %463 = arith.addf %461, %462 : vector<8x128xf32>
    %464 = math.tanh %463 : vector<8x128xf32>
    %465 = arith.mulf %460, %464 : vector<8x128xf32>
    %466 = vector.shape_cast %30 : vector<8x1xi1> to vector<8x1xi1>
    %467 = vector.broadcast %466 : vector<8x1xi1> to vector<8x128xi1>
    %468 = arith.select %467, %465, %387 : vector<8x128xi1>, vector<8x128xf32>
    %469 = vector.shape_cast %30 : vector<8x1xi1> to vector<8x1xi1>
    %470 = vector.broadcast %469 : vector<8x1xi1> to vector<8x128xi1>
    %471 = arith.select %470, %463, %390 : vector<8x128xi1>, vector<8x128xf32>
    %c48 = arith.constant 48 : index
    %c0_139 = arith.constant 0 : index
    %472 = vector.load %arg15[%c48, %c0_139] : memref<64x512xf32, #tpu.memory_space<vmem>>, vector<8x512xf32>
    %cst_140 = arith.constant dense<0.000000e+00> : vector<8x512xf32>
    %473 = tpu.matmul %468, %12, %cst_140 {dimension_numbers = #tpu.dot_dimension_numbers<[1], [0], [0], [1], [0, 0, 1, 1], [], []>} : vector<8x128xf32>, vector<128x512xf32>, vector<8x512xf32> -> vector<8x512xf32>
    %474 = arith.addf %472, %473 : vector<8x512xf32>
    %cst_141 = arith.constant dense<0.000000e+00> : vector<8x512xf32>
    %475 = tpu.matmul %468, %13, %cst_141 {dimension_numbers = #tpu.dot_dimension_numbers<[1], [0], [0], [1], [0, 0, 1, 1], [], []>} : vector<8x128xf32>, vector<128x512xf32>, vector<8x512xf32> -> vector<8x512xf32>
    %cst_142 = arith.constant dense<0.000000e+00> : vector<8x512xf32>
    %476 = tpu.matmul %431, %14, %cst_142 {dimension_numbers = #tpu.dot_dimension_numbers<[1], [0], [0], [1], [0, 0, 1, 1], [], []>} : vector<8x128xf32>, vector<128x512xf32>, vector<8x512xf32> -> vector<8x512xf32>
    %477 = arith.addf %475, %476 : vector<8x512xf32>
    %478 = arith.addf %477, %17 : vector<8x512xf32>
    %479 = vector.extract_strided_slice %478 {offsets = [0, 0], sizes = [8, 128], strides = [1, 1]} : vector<8x512xf32> to vector<8x128xf32>
    %cst_143 = arith.constant 5.000000e-01 : f32
    %480 = vector.broadcast %cst_143 : f32 to vector<8x128xf32>
    %481 = arith.mulf %480, %479 : vector<8x128xf32>
    %482 = math.tanh %481 : vector<8x128xf32>
    %cst_144 = arith.constant 1.000000e+00 : f32
    %483 = vector.broadcast %cst_144 : f32 to vector<8x128xf32>
    %484 = arith.addf %482, %483 : vector<8x128xf32>
    %cst_145 = arith.constant 5.000000e-01 : f32
    %485 = vector.broadcast %cst_145 : f32 to vector<8x128xf32>
    %486 = arith.mulf %485, %484 : vector<8x128xf32>
    %487 = vector.extract_strided_slice %478 {offsets = [0, 128], sizes = [8, 128], strides = [1, 1]} : vector<8x512xf32> to vector<8x128xf32>
    %cst_146 = arith.constant 5.000000e-01 : f32
    %488 = vector.broadcast %cst_146 : f32 to vector<8x128xf32>
    %489 = arith.mulf %488, %487 : vector<8x128xf32>
    %490 = math.tanh %489 : vector<8x128xf32>
    %cst_147 = arith.constant 1.000000e+00 : f32
    %491 = vector.broadcast %cst_147 : f32 to vector<8x128xf32>
    %492 = arith.addf %490, %491 : vector<8x128xf32>
    %cst_148 = arith.constant 5.000000e-01 : f32
    %493 = vector.broadcast %cst_148 : f32 to vector<8x128xf32>
    %494 = arith.mulf %493, %492 : vector<8x128xf32>
    %495 = vector.extract_strided_slice %478 {offsets = [0, 256], sizes = [8, 128], strides = [1, 1]} : vector<8x512xf32> to vector<8x128xf32>
    %496 = math.tanh %495 : vector<8x128xf32>
    %497 = vector.extract_strided_slice %478 {offsets = [0, 384], sizes = [8, 128], strides = [1, 1]} : vector<8x512xf32> to vector<8x128xf32>
    %cst_149 = arith.constant 5.000000e-01 : f32
    %498 = vector.broadcast %cst_149 : f32 to vector<8x128xf32>
    %499 = arith.mulf %498, %497 : vector<8x128xf32>
    %500 = math.tanh %499 : vector<8x128xf32>
    %cst_150 = arith.constant 1.000000e+00 : f32
    %501 = vector.broadcast %cst_150 : f32 to vector<8x128xf32>
    %502 = arith.addf %500, %501 : vector<8x128xf32>
    %cst_151 = arith.constant 5.000000e-01 : f32
    %503 = vector.broadcast %cst_151 : f32 to vector<8x128xf32>
    %504 = arith.mulf %503, %502 : vector<8x128xf32>
    %505 = arith.mulf %494, %434 : vector<8x128xf32>
    %506 = arith.mulf %486, %496 : vector<8x128xf32>
    %507 = arith.addf %505, %506 : vector<8x128xf32>
    %508 = math.tanh %507 : vector<8x128xf32>
    %509 = arith.mulf %504, %508 : vector<8x128xf32>
    %510 = vector.shape_cast %30 : vector<8x1xi1> to vector<8x1xi1>
    %511 = vector.broadcast %510 : vector<8x1xi1> to vector<8x128xi1>
    %512 = arith.select %511, %509, %431 : vector<8x128xi1>, vector<8x128xf32>
    %513 = vector.shape_cast %30 : vector<8x1xi1> to vector<8x1xi1>
    %514 = vector.broadcast %513 : vector<8x1xi1> to vector<8x128xi1>
    %515 = arith.select %514, %507, %434 : vector<8x128xi1>, vector<8x128xf32>
    %516 = vector.extract_strided_slice %474 {offsets = [0, 0], sizes = [8, 128], strides = [1, 1]} : vector<8x512xf32> to vector<8x128xf32>
    %cst_152 = arith.constant 5.000000e-01 : f32
    %517 = vector.broadcast %cst_152 : f32 to vector<8x128xf32>
    %518 = arith.mulf %517, %516 : vector<8x128xf32>
    %519 = math.tanh %518 : vector<8x128xf32>
    %cst_153 = arith.constant 1.000000e+00 : f32
    %520 = vector.broadcast %cst_153 : f32 to vector<8x128xf32>
    %521 = arith.addf %519, %520 : vector<8x128xf32>
    %cst_154 = arith.constant 5.000000e-01 : f32
    %522 = vector.broadcast %cst_154 : f32 to vector<8x128xf32>
    %523 = arith.mulf %522, %521 : vector<8x128xf32>
    %524 = vector.extract_strided_slice %474 {offsets = [0, 128], sizes = [8, 128], strides = [1, 1]} : vector<8x512xf32> to vector<8x128xf32>
    %cst_155 = arith.constant 5.000000e-01 : f32
    %525 = vector.broadcast %cst_155 : f32 to vector<8x128xf32>
    %526 = arith.mulf %525, %524 : vector<8x128xf32>
    %527 = math.tanh %526 : vector<8x128xf32>
    %cst_156 = arith.constant 1.000000e+00 : f32
    %528 = vector.broadcast %cst_156 : f32 to vector<8x128xf32>
    %529 = arith.addf %527, %528 : vector<8x128xf32>
    %cst_157 = arith.constant 5.000000e-01 : f32
    %530 = vector.broadcast %cst_157 : f32 to vector<8x128xf32>
    %531 = arith.mulf %530, %529 : vector<8x128xf32>
    %532 = vector.extract_strided_slice %474 {offsets = [0, 256], sizes = [8, 128], strides = [1, 1]} : vector<8x512xf32> to vector<8x128xf32>
    %533 = math.tanh %532 : vector<8x128xf32>
    %534 = vector.extract_strided_slice %474 {offsets = [0, 384], sizes = [8, 128], strides = [1, 1]} : vector<8x512xf32> to vector<8x128xf32>
    %cst_158 = arith.constant 5.000000e-01 : f32
    %535 = vector.broadcast %cst_158 : f32 to vector<8x128xf32>
    %536 = arith.mulf %535, %534 : vector<8x128xf32>
    %537 = math.tanh %536 : vector<8x128xf32>
    %cst_159 = arith.constant 1.000000e+00 : f32
    %538 = vector.broadcast %cst_159 : f32 to vector<8x128xf32>
    %539 = arith.addf %537, %538 : vector<8x128xf32>
    %cst_160 = arith.constant 5.000000e-01 : f32
    %540 = vector.broadcast %cst_160 : f32 to vector<8x128xf32>
    %541 = arith.mulf %540, %539 : vector<8x128xf32>
    %542 = arith.mulf %531, %471 : vector<8x128xf32>
    %543 = arith.mulf %523, %533 : vector<8x128xf32>
    %544 = arith.addf %542, %543 : vector<8x128xf32>
    %545 = math.tanh %544 : vector<8x128xf32>
    %546 = arith.mulf %541, %545 : vector<8x128xf32>
    %547 = vector.shape_cast %32 : vector<8x1xi1> to vector<8x1xi1>
    %548 = vector.broadcast %547 : vector<8x1xi1> to vector<8x128xi1>
    %549 = arith.select %548, %546, %468 : vector<8x128xi1>, vector<8x128xf32>
    %550 = vector.shape_cast %32 : vector<8x1xi1> to vector<8x1xi1>
    %551 = vector.broadcast %550 : vector<8x1xi1> to vector<8x128xi1>
    %552 = arith.select %551, %544, %471 : vector<8x128xi1>, vector<8x128xf32>
    %c56 = arith.constant 56 : index
    %c0_161 = arith.constant 0 : index
    %553 = vector.load %arg15[%c56, %c0_161] : memref<64x512xf32, #tpu.memory_space<vmem>>, vector<8x512xf32>
    %cst_162 = arith.constant dense<0.000000e+00> : vector<8x512xf32>
    %554 = tpu.matmul %549, %12, %cst_162 {dimension_numbers = #tpu.dot_dimension_numbers<[1], [0], [0], [1], [0, 0, 1, 1], [], []>} : vector<8x128xf32>, vector<128x512xf32>, vector<8x512xf32> -> vector<8x512xf32>
    %555 = arith.addf %553, %554 : vector<8x512xf32>
    %cst_163 = arith.constant dense<0.000000e+00> : vector<8x512xf32>
    %556 = tpu.matmul %549, %13, %cst_163 {dimension_numbers = #tpu.dot_dimension_numbers<[1], [0], [0], [1], [0, 0, 1, 1], [], []>} : vector<8x128xf32>, vector<128x512xf32>, vector<8x512xf32> -> vector<8x512xf32>
    %cst_164 = arith.constant dense<0.000000e+00> : vector<8x512xf32>
    %557 = tpu.matmul %512, %14, %cst_164 {dimension_numbers = #tpu.dot_dimension_numbers<[1], [0], [0], [1], [0, 0, 1, 1], [], []>} : vector<8x128xf32>, vector<128x512xf32>, vector<8x512xf32> -> vector<8x512xf32>
    %558 = arith.addf %556, %557 : vector<8x512xf32>
    %559 = arith.addf %558, %17 : vector<8x512xf32>
    %560 = vector.extract_strided_slice %559 {offsets = [0, 0], sizes = [8, 128], strides = [1, 1]} : vector<8x512xf32> to vector<8x128xf32>
    %cst_165 = arith.constant 5.000000e-01 : f32
    %561 = vector.broadcast %cst_165 : f32 to vector<8x128xf32>
    %562 = arith.mulf %561, %560 : vector<8x128xf32>
    %563 = math.tanh %562 : vector<8x128xf32>
    %cst_166 = arith.constant 1.000000e+00 : f32
    %564 = vector.broadcast %cst_166 : f32 to vector<8x128xf32>
    %565 = arith.addf %563, %564 : vector<8x128xf32>
    %cst_167 = arith.constant 5.000000e-01 : f32
    %566 = vector.broadcast %cst_167 : f32 to vector<8x128xf32>
    %567 = arith.mulf %566, %565 : vector<8x128xf32>
    %568 = vector.extract_strided_slice %559 {offsets = [0, 128], sizes = [8, 128], strides = [1, 1]} : vector<8x512xf32> to vector<8x128xf32>
    %cst_168 = arith.constant 5.000000e-01 : f32
    %569 = vector.broadcast %cst_168 : f32 to vector<8x128xf32>
    %570 = arith.mulf %569, %568 : vector<8x128xf32>
    %571 = math.tanh %570 : vector<8x128xf32>
    %cst_169 = arith.constant 1.000000e+00 : f32
    %572 = vector.broadcast %cst_169 : f32 to vector<8x128xf32>
    %573 = arith.addf %571, %572 : vector<8x128xf32>
    %cst_170 = arith.constant 5.000000e-01 : f32
    %574 = vector.broadcast %cst_170 : f32 to vector<8x128xf32>
    %575 = arith.mulf %574, %573 : vector<8x128xf32>
    %576 = vector.extract_strided_slice %559 {offsets = [0, 256], sizes = [8, 128], strides = [1, 1]} : vector<8x512xf32> to vector<8x128xf32>
    %577 = math.tanh %576 : vector<8x128xf32>
    %578 = vector.extract_strided_slice %559 {offsets = [0, 384], sizes = [8, 128], strides = [1, 1]} : vector<8x512xf32> to vector<8x128xf32>
    %cst_171 = arith.constant 5.000000e-01 : f32
    %579 = vector.broadcast %cst_171 : f32 to vector<8x128xf32>
    %580 = arith.mulf %579, %578 : vector<8x128xf32>
    %581 = math.tanh %580 : vector<8x128xf32>
    %cst_172 = arith.constant 1.000000e+00 : f32
    %582 = vector.broadcast %cst_172 : f32 to vector<8x128xf32>
    %583 = arith.addf %581, %582 : vector<8x128xf32>
    %cst_173 = arith.constant 5.000000e-01 : f32
    %584 = vector.broadcast %cst_173 : f32 to vector<8x128xf32>
    %585 = arith.mulf %584, %583 : vector<8x128xf32>
    %586 = arith.mulf %575, %515 : vector<8x128xf32>
    %587 = arith.mulf %567, %577 : vector<8x128xf32>
    %588 = arith.addf %586, %587 : vector<8x128xf32>
    %589 = math.tanh %588 : vector<8x128xf32>
    %590 = arith.mulf %585, %589 : vector<8x128xf32>
    %591 = vector.shape_cast %32 : vector<8x1xi1> to vector<8x1xi1>
    %592 = vector.broadcast %591 : vector<8x1xi1> to vector<8x128xi1>
    %593 = arith.select %592, %590, %512 : vector<8x128xi1>, vector<8x128xf32>
    %594 = vector.shape_cast %32 : vector<8x1xi1> to vector<8x1xi1>
    %595 = vector.broadcast %594 : vector<8x1xi1> to vector<8x128xi1>
    %596 = arith.select %595, %588, %515 : vector<8x128xi1>, vector<8x128xf32>
    %597 = vector.extract_strided_slice %555 {offsets = [0, 0], sizes = [8, 128], strides = [1, 1]} : vector<8x512xf32> to vector<8x128xf32>
    %cst_174 = arith.constant 5.000000e-01 : f32
    %598 = vector.broadcast %cst_174 : f32 to vector<8x128xf32>
    %599 = arith.mulf %598, %597 : vector<8x128xf32>
    %600 = math.tanh %599 : vector<8x128xf32>
    %cst_175 = arith.constant 1.000000e+00 : f32
    %601 = vector.broadcast %cst_175 : f32 to vector<8x128xf32>
    %602 = arith.addf %600, %601 : vector<8x128xf32>
    %cst_176 = arith.constant 5.000000e-01 : f32
    %603 = vector.broadcast %cst_176 : f32 to vector<8x128xf32>
    %604 = arith.mulf %603, %602 : vector<8x128xf32>
    %605 = vector.extract_strided_slice %555 {offsets = [0, 128], sizes = [8, 128], strides = [1, 1]} : vector<8x512xf32> to vector<8x128xf32>
    %cst_177 = arith.constant 5.000000e-01 : f32
    %606 = vector.broadcast %cst_177 : f32 to vector<8x128xf32>
    %607 = arith.mulf %606, %605 : vector<8x128xf32>
    %608 = math.tanh %607 : vector<8x128xf32>
    %cst_178 = arith.constant 1.000000e+00 : f32
    %609 = vector.broadcast %cst_178 : f32 to vector<8x128xf32>
    %610 = arith.addf %608, %609 : vector<8x128xf32>
    %cst_179 = arith.constant 5.000000e-01 : f32
    %611 = vector.broadcast %cst_179 : f32 to vector<8x128xf32>
    %612 = arith.mulf %611, %610 : vector<8x128xf32>
    %613 = vector.extract_strided_slice %555 {offsets = [0, 256], sizes = [8, 128], strides = [1, 1]} : vector<8x512xf32> to vector<8x128xf32>
    %614 = math.tanh %613 : vector<8x128xf32>
    %615 = vector.extract_strided_slice %555 {offsets = [0, 384], sizes = [8, 128], strides = [1, 1]} : vector<8x512xf32> to vector<8x128xf32>
    %cst_180 = arith.constant 5.000000e-01 : f32
    %616 = vector.broadcast %cst_180 : f32 to vector<8x128xf32>
    %617 = arith.mulf %616, %615 : vector<8x128xf32>
    %618 = math.tanh %617 : vector<8x128xf32>
    %cst_181 = arith.constant 1.000000e+00 : f32
    %619 = vector.broadcast %cst_181 : f32 to vector<8x128xf32>
    %620 = arith.addf %618, %619 : vector<8x128xf32>
    %cst_182 = arith.constant 5.000000e-01 : f32
    %621 = vector.broadcast %cst_182 : f32 to vector<8x128xf32>
    %622 = arith.mulf %621, %620 : vector<8x128xf32>
    %623 = arith.mulf %612, %552 : vector<8x128xf32>
    %624 = arith.mulf %604, %614 : vector<8x128xf32>
    %625 = arith.addf %623, %624 : vector<8x128xf32>
    %626 = math.tanh %625 : vector<8x128xf32>
    %627 = arith.mulf %622, %626 : vector<8x128xf32>
    %628 = vector.shape_cast %34 : vector<8x1xi1> to vector<8x1xi1>
    %629 = vector.broadcast %628 : vector<8x1xi1> to vector<8x128xi1>
    %630 = arith.select %629, %627, %549 : vector<8x128xi1>, vector<8x128xf32>
    %cst_183 = arith.constant dense<0.000000e+00> : vector<8x512xf32>
    %631 = tpu.matmul %630, %13, %cst_183 {dimension_numbers = #tpu.dot_dimension_numbers<[1], [0], [0], [1], [0, 0, 1, 1], [], []>} : vector<8x128xf32>, vector<128x512xf32>, vector<8x512xf32> -> vector<8x512xf32>
    %cst_184 = arith.constant dense<0.000000e+00> : vector<8x512xf32>
    %632 = tpu.matmul %593, %14, %cst_184 {dimension_numbers = #tpu.dot_dimension_numbers<[1], [0], [0], [1], [0, 0, 1, 1], [], []>} : vector<8x128xf32>, vector<128x512xf32>, vector<8x512xf32> -> vector<8x512xf32>
    %633 = arith.addf %631, %632 : vector<8x512xf32>
    %634 = arith.addf %633, %17 : vector<8x512xf32>
    %635 = vector.extract_strided_slice %634 {offsets = [0, 0], sizes = [8, 128], strides = [1, 1]} : vector<8x512xf32> to vector<8x128xf32>
    %cst_185 = arith.constant 5.000000e-01 : f32
    %636 = vector.broadcast %cst_185 : f32 to vector<8x128xf32>
    %637 = arith.mulf %636, %635 : vector<8x128xf32>
    %638 = math.tanh %637 : vector<8x128xf32>
    %cst_186 = arith.constant 1.000000e+00 : f32
    %639 = vector.broadcast %cst_186 : f32 to vector<8x128xf32>
    %640 = arith.addf %638, %639 : vector<8x128xf32>
    %cst_187 = arith.constant 5.000000e-01 : f32
    %641 = vector.broadcast %cst_187 : f32 to vector<8x128xf32>
    %642 = arith.mulf %641, %640 : vector<8x128xf32>
    %643 = vector.extract_strided_slice %634 {offsets = [0, 128], sizes = [8, 128], strides = [1, 1]} : vector<8x512xf32> to vector<8x128xf32>
    %cst_188 = arith.constant 5.000000e-01 : f32
    %644 = vector.broadcast %cst_188 : f32 to vector<8x128xf32>
    %645 = arith.mulf %644, %643 : vector<8x128xf32>
    %646 = math.tanh %645 : vector<8x128xf32>
    %cst_189 = arith.constant 1.000000e+00 : f32
    %647 = vector.broadcast %cst_189 : f32 to vector<8x128xf32>
    %648 = arith.addf %646, %647 : vector<8x128xf32>
    %cst_190 = arith.constant 5.000000e-01 : f32
    %649 = vector.broadcast %cst_190 : f32 to vector<8x128xf32>
    %650 = arith.mulf %649, %648 : vector<8x128xf32>
    %651 = vector.extract_strided_slice %634 {offsets = [0, 256], sizes = [8, 128], strides = [1, 1]} : vector<8x512xf32> to vector<8x128xf32>
    %652 = math.tanh %651 : vector<8x128xf32>
    %653 = vector.extract_strided_slice %634 {offsets = [0, 384], sizes = [8, 128], strides = [1, 1]} : vector<8x512xf32> to vector<8x128xf32>
    %cst_191 = arith.constant 5.000000e-01 : f32
    %654 = vector.broadcast %cst_191 : f32 to vector<8x128xf32>
    %655 = arith.mulf %654, %653 : vector<8x128xf32>
    %656 = math.tanh %655 : vector<8x128xf32>
    %cst_192 = arith.constant 1.000000e+00 : f32
    %657 = vector.broadcast %cst_192 : f32 to vector<8x128xf32>
    %658 = arith.addf %656, %657 : vector<8x128xf32>
    %cst_193 = arith.constant 5.000000e-01 : f32
    %659 = vector.broadcast %cst_193 : f32 to vector<8x128xf32>
    %660 = arith.mulf %659, %658 : vector<8x128xf32>
    %661 = arith.mulf %650, %596 : vector<8x128xf32>
    %662 = arith.mulf %642, %652 : vector<8x128xf32>
    %663 = arith.addf %661, %662 : vector<8x128xf32>
    %664 = math.tanh %663 : vector<8x128xf32>
    %665 = arith.mulf %660, %664 : vector<8x128xf32>
    %666 = vector.shape_cast %34 : vector<8x1xi1> to vector<8x1xi1>
    %667 = vector.broadcast %666 : vector<8x1xi1> to vector<8x128xi1>
    %668 = arith.select %667, %665, %593 : vector<8x128xi1>, vector<8x128xf32>
    %c0_194 = arith.constant 0 : index
    %c0_195 = arith.constant 0 : index
    %669 = vector.load %arg8[%c0_194, %c0_195] : memref<128x128xf32, #tpu.memory_space<vmem>>, vector<128x128xf32>
    %cst_196 = arith.constant dense<0.000000e+00> : vector<8x128xf32>
    %670 = tpu.matmul %668, %669, %cst_196 {dimension_numbers = #tpu.dot_dimension_numbers<[1], [0], [0], [1], [0, 0, 1, 1], [], []>} : vector<8x128xf32>, vector<128x128xf32>, vector<8x128xf32> -> vector<8x128xf32>
    %c0_197 = arith.constant 0 : index
    %c0_198 = arith.constant 0 : index
    %671 = vector.load %arg9[%c0_197, %c0_198] : memref<1x128xf32, #tpu.memory_space<vmem>>, vector<1x128xf32>
    %672 = vector.broadcast %671 : vector<1x128xf32> to vector<8x128xf32>
    %673 = arith.addf %670, %672 : vector<8x128xf32>
    %674 = math.tanh %673 : vector<8x128xf32>
    %c0_199 = arith.constant 0 : index
    %c0_200 = arith.constant 0 : index
    %675 = vector.load %arg10[%c0_199, %c0_200] : memref<128x128xf32, #tpu.memory_space<vmem>>, vector<128x128xf32>
    %cst_201 = arith.constant dense<0.000000e+00> : vector<8x128xf32>
    %676 = tpu.matmul %674, %675, %cst_201 {dimension_numbers = #tpu.dot_dimension_numbers<[1], [0], [0], [1], [0, 0, 1, 1], [], []>} : vector<8x128xf32>, vector<128x128xf32>, vector<8x128xf32> -> vector<8x128xf32>
    %c0_202 = arith.constant 0 : index
    %c0_203 = arith.constant 0 : index
    %677 = vector.load %arg11[%c0_202, %c0_203] : memref<1x128xf32, #tpu.memory_space<vmem>>, vector<1x128xf32>
    %678 = vector.broadcast %677 : vector<1x128xf32> to vector<8x128xf32>
    %679 = arith.addf %676, %678 : vector<8x128xf32>
    %680 = math.tanh %679 : vector<8x128xf32>
    %c0_204 = arith.constant 0 : index
    %c0_205 = arith.constant 0 : index
    %681 = vector.load %arg12[%c0_204, %c0_205] : memref<128x128xf32, #tpu.memory_space<vmem>>, vector<128x128xf32>
    %cst_206 = arith.constant dense<0.000000e+00> : vector<8x128xf32>
    %682 = tpu.matmul %680, %681, %cst_206 {dimension_numbers = #tpu.dot_dimension_numbers<[1], [0], [0], [1], [0, 0, 1, 1], [], []>} : vector<8x128xf32>, vector<128x128xf32>, vector<8x128xf32> -> vector<8x128xf32>
    %c0_207 = arith.constant 0 : index
    %c0_208 = arith.constant 0 : index
    %683 = vector.load %arg13[%c0_207, %c0_208] : memref<1x128xf32, #tpu.memory_space<vmem>>, vector<1x128xf32>
    %684 = vector.broadcast %683 : vector<1x128xf32> to vector<8x128xf32>
    %685 = arith.addf %682, %684 : vector<8x128xf32>
    %c0_209 = arith.constant 0 : index
    %c0_210 = arith.constant 0 : index
    %686 = vector.load %arg14[%c0_209, %c0_210] : memref<8x128xf32, #tpu.memory_space<vmem>>, vector<8x128xf32>
    tpu.vector_store %arg14[%c0_209, %c0_210], %685 {strides = array<i32>} : memref<8x128xf32, #tpu.memory_space<vmem>>, vector<8x128xf32>,
    return
  }
}

</mosaic_0001>

<bundles_post_ra>
// kernel: tpu_custom_call.1
= control target key start
LH: loop header
LB: loop body
LE: loop exit
PB: predicated region body
PF: predicated region fallthrough
CT: control target
= control target key end

     0   :  { %19 = vsyncpa [#allocation4], 0  ;;  %s8691_s0 = inlined_call_operand.vmem [shape: s32[64,1], index: 0, kind: input, shape index: {}]   ;;  %s8692_s1 = inlined_call_operand.vmem [shape: s32[8,1], index: 1, kind: input, shape index: {}]   ;;  %s8693_s2 = inlined_call_operand.hbm [shape: f32[128,512], index: 2, kind: input, shape index: {}]   ;;  %s8694_s3 = inlined_call_operand.vmem [shape: f32[1,512], index: 3, kind: input, shape index: {}]   ;;  %s8695_s4 = inlined_call_operand.hbm [shape: f32[128,512], index: 4, kind: input, shape index: {}]   ;;  %s8696_s5 = inlined_call_operand.hbm [shape: f32[128,512], index: 5, kind: input, shape index: {}]   ;;  %s8697_s6 = inlined_call_operand.hbm [shape: f32[128,512], index: 6, kind: input, shape index: {}]   ;;  %s8698_s7 = inlined_call_operand.vmem [shape: f32[1,512], index: 7, kind: input, shape index: {}]   ;;  %s8699_s8 = inlined_call_operand.hbm [shape: f32[128,128], index: 8, kind: input, shape index: {}]   ;;  %s8700_s9 = inlined_call_operand.vmem [shape: f32[1,128], index: 9, kind: input, shape index: {}]   ;;  %s8701_s10 = inlined_call_operand.hbm [shape: f32[128,128], index: 10, kind: input, shape index: {}]   ;;  %s8702_s11 = inlined_call_operand.vmem [shape: f32[1,128], index: 11, kind: input, shape index: {}]   ;;  %s8703_s12 = inlined_call_operand.hbm [shape: f32[128,128], index: 12, kind: input, shape index: {}]   ;;  %s8704_s13 = inlined_call_operand.vmem [shape: f32[1,128], index: 13, kind: input, shape index: {}]   ;;  %s8705_s14 = inlined_call_operand.hbm [shape: f32[8,128], index: 14, kind: output, shape index: {}]  }
   0x1   :  { %20 = vsyncpa [#allocation7], 0 }
   0x2   :  { %21 = vsyncpa [#allocation10], 0 }
   0x3   :  { %22 = vsyncpa [#allocation13], 0 }
   0x4   :  { %23 = vsyncpa [#allocation5], 0  ;;  %s7029_s29 = smov [#allocation6]   ;;  %s7030_s15 = smov [#allocation9]  }
   0x5   :  { %s47_s30 = sshll.u32 %s7029_s29, 4  ;;  %s71_s16 = sshll.u32 %s7030_s15, 4  ;;  %s48_s30 = int_to_ptr.vmem [resolvable:$true] %s47_s30  ;;  %s7121_s16 = int_to_ptr.vmem [resolvable:$true] %s71_s16 }
   0x6   :  { %s6843_s19 = scalar_lea.hbm %s8695_s4, 8192 }
   0x7   :  { %p6844_p0 = scmp.ne.s32.totalorder %s8695_s4, %s6843_s19  ;;  %p6847_p1 = scmp.lt.u32.totalorder %s6843_s19, %s8695_s4 }
   0x9   :  { %p6849_p2 = pnand %p6847_p1, %p6844_p0 }
   0xb   :  { %6852 = shalt.err (!%p6849_p2)
}
   0xc   :  { %s6853_s24 = scalar_lea.vmem %s48_s30, 8192  ;;  %p6858_p4 = scmp.lt.s32.totalorder %s48_s30, %s48_s30 }
   0xd   :  { %p6854_p3 = scmp.ne.s32.totalorder %s48_s30, %s6853_s24  ;;  %p6859_p5 = scmp.lt.s32.totalorder %s6853_s24, %s6853_s24 }
   0xf   :  { %p6860_p6 = por %p6859_p5, %p6858_p4 }
  0x11   :  { %p6861_p7 = pnand %p6860_p6, %p6854_p3 }
  0x13   :  { %6864 = shalt.err (!%p6861_p7)
}
  0x14   :  { %s7031_s25 = smov 512   ;;  %s7032_s26 = smov 32  }
  0x15   :  { %53 = dma.hbm_to_vmem [thread:$0]  %s8695_s4, 8192, %s48_s30, [#allocation7], %s7031_s25, %s7031_s25, %s7032_s26  }
  0x16   :  { %s6865_s17 = scalar_lea.hbm %s8697_s6, 8192 }
  0x17   :  { %p6866_p8 = scmp.ne.s32.totalorder %s8697_s6, %s6865_s17  ;;  %p6869_p9 = scmp.lt.u32.totalorder %s6865_s17, %s8697_s6 }
  0x19   :  { %p6871_p10 = pnand %p6869_p9, %p6866_p8 }
  0x1b   :  { %6874 = shalt.err (!%p6871_p10)
}
  0x1c   :  { %s6875_s22 = scalar_lea.vmem %s7121_s16, 8192  ;;  %p6880_p12 = scmp.lt.s32.totalorder %s7121_s16, %s7121_s16 }
  0x1d   :  { %p6876_p11 = scmp.ne.s32.totalorder %s7121_s16, %s6875_s22  ;;  %p6881_p13 = scmp.lt.s32.totalorder %s6875_s22, %s6875_s22 }
  0x1f   :  { %p6882_p0 = por %p6881_p13, %p6880_p12 }
  0x21   :  { %p6883_p1 = pnand %p6882_p0, %p6876_p11 }
  0x23   :  { %6886 = shalt.err (!%p6883_p1)
}
  0x24   :  { %77 = dma.hbm_to_vmem [thread:$0]  %s8697_s6, 8192, %s7121_s16, [#allocation10], %s7031_s25, %s7031_s25, %s7032_s26  }
  0x25   :  { %s7033_s23 = smov [#allocation12]   ;;  %s7034_s27 = smov [#allocation3]  }
  0x26   :  { %s99_s24 = sshll.u32 %s7033_s23, 4  ;;  %s33_s28 = sshll.u32 %s7034_s27, 4  ;;  %s100_s24 = int_to_ptr.vmem [resolvable:$true] %s99_s24  ;;  %s7158_s28 = int_to_ptr.vmem [resolvable:$true] %s33_s28 }
  0x27   :  { %s6887_s17 = scalar_lea.hbm %s8701_s10, 2048 }
  0x28   :  { %p6888_p2 = scmp.ne.s32.totalorder %s8701_s10, %s6887_s17  ;;  %p6891_p3 = scmp.lt.u32.totalorder %s6887_s17, %s8701_s10 }
  0x2a   :  { %p6893_p4 = pnand %p6891_p3, %p6888_p2 }
  0x2c   :  { %6896 = shalt.err (!%p6893_p4)
}
  0x2d   :  { %s6897_s6 = scalar_lea.vmem %s100_s24, 2048  ;;  %p6902_p6 = scmp.lt.s32.totalorder %s100_s24, %s100_s24 }
  0x2e   :  { %p6898_p5 = scmp.ne.s32.totalorder %s100_s24, %s6897_s6  ;;  %p6903_p7 = scmp.lt.s32.totalorder %s6897_s6, %s6897_s6 }
  0x30   :  { %p6904_p8 = por %p6903_p7, %p6902_p6 }
  0x32   :  { %p6905_p9 = pnand %p6904_p8, %p6898_p5 }
  0x34   :  { %6908 = shalt.err (!%p6905_p9)
}
  0x35   :  { %s7035_s16 = smov 128   ;;  %s7036_s22 = smov 8  }
  0x36   :  { %105 = dma.hbm_to_vmem [thread:$0]  %s8701_s10, 2048, %s100_s24, [#allocation13], %s7035_s16, %s7035_s16, %s7036_s22  }
  0x37   :  { %s6909_s29 = scalar_lea.hbm %s8693_s2, 8192 }
  0x38   :  { %p6910_p10 = scmp.ne.s32.totalorder %s8693_s2, %s6909_s29  ;;  %p6913_p11 = scmp.lt.u32.totalorder %s6909_s29, %s8693_s2 }
  0x3a   :  { %p6915_p12 = pnand %p6913_p11, %p6910_p10 }
  0x3c   :  { %6918 = shalt.err (!%p6915_p12)
}
  0x3d   :  { %s6919_s20 = scalar_lea.vmem %s7158_s28, 8192  ;;  %p6924_p0 = scmp.lt.s32.totalorder %s7158_s28, %s7158_s28 }
  0x3e   :  { %p6920_p13 = scmp.ne.s32.totalorder %s7158_s28, %s6919_s20  ;;  %p6925_p1 = scmp.lt.s32.totalorder %s6919_s20, %s6919_s20 }
  0x40   :  { %p6926_p2 = por %p6925_p1, %p6924_p0 }
  0x42   :  { %p6927_p3 = pnand %p6926_p2, %p6920_p13 }
  0x44   :  { %6930 = shalt.err (!%p6927_p3)
}
  0x45   :  { %39 = dma.hbm_to_vmem [thread:$0]  %s8693_s2, 8192, %s7158_s28, [#allocation4], %s7031_s25, %s7031_s25, %s7032_s26  }
  0x46   :  { %s7037_s21 = smov [#allocation8]   ;;  %s7038_s4 = smov [#allocation11]  }
  0x47   :  { %s59_s6 = sshll.u32 %s7037_s21, 4  ;;  %s85_s30 = sshll.u32 %s7038_s4, 4  ;;  %s60_s6 = int_to_ptr.vmem [resolvable:$true] %s59_s6  ;;  %s7195_s30 = int_to_ptr.vmem [resolvable:$true] %s85_s30 }
  0x48   :  { %s6931_s29 = scalar_lea.hbm %s8696_s5, 8192 }
  0x49   :  { %p6932_p4 = scmp.ne.s32.totalorder %s8696_s5, %s6931_s29  ;;  %p6935_p5 = scmp.lt.u32.totalorder %s6931_s29, %s8696_s5 }
  0x4b   :  { %p6937_p6 = pnand %p6935_p5, %p6932_p4 }
  0x4d   :  { %6940 = shalt.err (!%p6937_p6)
}
  0x4e   :  { %s6941_s2 = scalar_lea.vmem %s60_s6, 8192  ;;  %p6946_p8 = scmp.lt.s32.totalorder %s60_s6, %s60_s6 }
  0x4f   :  { %p6942_p7 = scmp.ne.s32.totalorder %s60_s6, %s6941_s2  ;;  %p6947_p9 = scmp.lt.s32.totalorder %s6941_s2, %s6941_s2 }
  0x51   :  { %p6948_p10 = por %p6947_p9, %p6946_p8 }
  0x53   :  { %p6949_p11 = pnand %p6948_p10, %p6942_p7 }
  0x55   :  { %6952 = shalt.err (!%p6949_p11)
}
  0x56   :  { %65 = dma.hbm_to_vmem [thread:$0]  %s8696_s5, 8192, %s60_s6, [#allocation7], %s7031_s25, %s7031_s25, %s7032_s26  }
  0x57   :  { %s6953_s21 = scalar_lea.hbm %s8699_s8, 2048 }
  0x58   :  { %p6954_p12 = scmp.ne.s32.totalorder %s8699_s8, %s6953_s21  ;;  %p6957_p13 = scmp.lt.u32.totalorder %s6953_s21, %s8699_s8 }
  0x5a   :  { %p6959_p0 = pnand %p6957_p13, %p6954_p12 }
  0x5c   :  { %6962 = shalt.err (!%p6959_p0)
}
  0x5d   :  { %s6963_s15 = scalar_lea.vmem %s7195_s30, 2048  ;;  %p6968_p2 = scmp.lt.s32.totalorder %s7195_s30, %s7195_s30 }
  0x5e   :  { %p6964_p1 = scmp.ne.s32.totalorder %s7195_s30, %s6963_s15  ;;  %p6969_p3 = scmp.lt.s32.totalorder %s6963_s15, %s6963_s15 }
  0x60   :  { %p6970_p4 = por %p6969_p3, %p6968_p2 }
  0x62   :  { %p6971_p5 = pnand %p6970_p4, %p6964_p1 }
  0x64   :  { %6974 = shalt.err (!%p6971_p5)
}
  0x65   :  { %91 = dma.hbm_to_vmem [thread:$0]  %s8699_s8, 2048, %s7195_s30, [#allocation10], %s7035_s16, %s7035_s16, %s7036_s22  }
  0x66   :  { %s7039_s26 = smov [#allocation14]   ;;  %s6975_s19 = scalar_lea.hbm %s8703_s12, 2048 }
  0x67   :  { %s113_s6 = sshll.u32 %s7039_s26, 4  ;;  %p6976_p6 = scmp.ne.s32.totalorder %s8703_s12, %s6975_s19  ;;  %s114_s6 = int_to_ptr.vmem [resolvable:$true] %s113_s6 }
  0x68   :  { %p6979_p7 = scmp.lt.u32.totalorder %s6975_s19, %s8703_s12 }
  0x6a   :  { %p6981_p8 = pnand %p6979_p7, %p6976_p6 }
  0x6c   :  { %6984 = shalt.err (!%p6981_p8)
}
  0x6d   :  { %s6985_s24 = scalar_lea.vmem %s114_s6, 2048  ;;  %p6990_p10 = scmp.lt.s32.totalorder %s114_s6, %s114_s6 }
  0x6e   :  { %p6986_p9 = scmp.ne.s32.totalorder %s114_s6, %s6985_s24  ;;  %p6991_p11 = scmp.lt.s32.totalorder %s6985_s24, %s6985_s24 }
  0x70   :  { %p6992_p12 = por %p6991_p11, %p6990_p10 }
  0x72   :  { %p6993_p13 = pnand %p6992_p12, %p6986_p9 }
  0x74   :  { %6996 = shalt.err (!%p6993_p13)
}
  0x75   :  { %119 = dma.hbm_to_vmem [thread:$0]  %s8703_s12, 2048, %s114_s6, [#allocation13], %s7035_s16, %s7035_s16, %s7036_s22  }
  0x76   :  { %7019 = dma.done.wait [#allocation4], 8192  }
  0x77   :  { %7020 = vsyncadd [#allocation4], 4294959104 }
  0x78   :  { %7021 = dma.done.wait [#allocation7], 16384  }
  0x79   :  { %7022 = vsyncadd [#allocation7], 4294950912 }
  0x7a   :  { %7023 = dma.done.wait [#allocation10], 10240  }
  0x7b   :  { %7024 = vsyncadd [#allocation10], 4294957056 }
  0x7c   :  { %7025 = dma.done.wait [#allocation13], 4096  }
  0x7d   :  { %7026 = vsyncadd [#allocation13], 4294963200  ;;  %v7040_v0 = vmov 0   ;;  %v143_v1 = vld [vmem:[%s8691_s0] sm:$0xff]  ;;  %v145_v2 = vld [vmem:[%s8691_s0 + $0x10] sm:$0xff]  ;;  %v8709_v6 = vmov 0.0  }
  0x7e   :  { %6679 = vset.pattern.permute.xlu0 %v7040_v0  ;;  %6680 = vset.pattern.permute.xlu1 %v7040_v0  ;;  %v144_v3 = vld [vmem:[%s8691_s0 + $0x8] sm:$0xff]  ;;  %v146_v4 = vld [vmem:[%s8691_s0 + $0x18] sm:$0xff]  ;;  %v147_v9 = vld [vmem:[%s8691_s0 + $0x20] sm:$0xff]  ;;  %s7045_s21 = smov [#allocation15]  }
  0x7f   :  { %154 = vperm.xlu0 %6679, %v143_v1   ;;  %160 = vperm.xlu1 %6680, %v145_v2   ;;  %v202_v5 = vld [vmem:[#allocation3 + $0x8] sm:$0xff]  ;;  %v204_v8 = vld [vmem:[#allocation3 + $0x18] sm:$0xff]  ;;  %v201_v12 = vld [vmem:[#allocation3] sm:$0xff]  ;;  %s4765_s4 = sshll.u32 %s7045_s21, 4  ;;  %s4766_s4 = int_to_ptr.vmem [resolvable:$true] %s4765_s4 }
  0x80   :  { %351 = vmatprep.mubr.f32.mxu0 %v8709_v6  ;;  %464 = vmatprep.mubr.f32.mxu1 %v8709_v6  ;;  %v206_v7 = vld [vmem:[#allocation3 + $0x28] sm:$0xff]  ;;  %v208_v11 = vld [vmem:[#allocation3 + $0x38] sm:$0xff]  ;;  %v205_v15 = vld [vmem:[#allocation3 + $0x20] sm:$0xff]  ;;  %s6997_s23 = scalar_lea.vmem %s4766_s4, 128  ;;  %p7002_p1 = scmp.lt.s32.totalorder %s4766_s4, %s4766_s4 }
  0x81   :  { %v148_v10 = vld [vmem:[%s8691_s0 + $0x28] sm:$0xff]  ;;  %v4966_v13 = vpack.c.bf16 %v206_v7, %v202_v5  ;;  %v4998_v14 = vpack.c.bf16 %v208_v11, %v204_v8  ;;  %v203_v16 = vld [vmem:[#allocation3 + $0x10] sm:$0xff]  ;;  %v7272_v18 = vld [vmem:[%s8692_s1] sm:$0xff]  ;;  %v4968_v19 = vpack.c.bf16 %v205_v15, %v201_v12  ;;  %p6998_p0 = scmp.ne.s32.totalorder %s4766_s4, %s6997_s23  ;;  %p7003_p2 = scmp.lt.s32.totalorder %s6997_s23, %s6997_s23 }
  0x82   :  { %v207_v17 = vld [vmem:[#allocation3 + $0x30] sm:$0xff]  ;;  %v210_v21 = vld [vmem:[#allocation3 + $0x48] sm:$0xff]  ;;  %v212_v23 = vld [vmem:[#allocation3 + $0x58] sm:$0xff]  ;;  %vm760_vm0 = vcmp.gt.s32.totalorder %v7272_v18, 0  ;;  %vm762_vm1 = vcmp.gt.s32.totalorder %v7272_v18, 2  ;;  %vm764_vm2 = vcmp.gt.s32.totalorder %v7272_v18, 4 }
  0x83   :  { %157 = vperm.xlu0 %6679, %v144_v3   ;;  %163 = vperm.xlu1 %6680, %v146_v4   ;;  %v5000_v20 = vpack.c.bf16 %v207_v17, %v203_v16  ;;  %v214_v22 = vld [vmem:[#allocation3 + $0x68] sm:$0xff]  ;;  %v216_v25 = vld [vmem:[#allocation3 + $0x78] sm:$0xff]  ;;  %v209_v26 = vld [vmem:[#allocation3 + $0x40] sm:$0xff]  ;;  %v783_v55 = vsel %vm760_vm0, 1, %v7040_v0  ;;  %v1749_v5 = vsel %vm762_vm1, 1, %v7040_v0  ;;  %vm766_vm3 = vcmp.gt.s32.totalorder %v7272_v18, 6  ;;  %p7004_p3 = por %p7003_p2, %p7002_p1 }
  0x84   :  { %4967 = vmatprep.subr.bf16.mxu0 %v4966_v13  ;;  %4999 = vmatprep.subr.bf16.mxu1 %v4998_v14  ;;  %v4970_v24 = vpack.c.bf16 %v214_v22, %v210_v21  ;;  %v213_v27 = vld [vmem:[#allocation3 + $0x60] sm:$0xff]  ;;  %v149_v28 = vld [vmem:[%s8691_s0 + $0x30] sm:$0xff]  ;;  %v5002_v29 = vpack.c.bf16 %v216_v25, %v212_v23  ;;  %v218_v33 = vld [vmem:[#allocation3 + $0x88] sm:$0xff]  ;;  %vm761_vm4 = vcmp.gt.s32.totalorder %v7272_v18, 1  ;;  %vm763_vm5 = vcmp.gt.s32.totalorder %v7272_v18, 3 }
  0x85   :  { %4969 = vmatpush1.bf16.msra.mxu0 %v4968_v19  ;;  %5001 = vmatpush1.bf16.msra.mxu1 %v5000_v20  ;;  %v4972_v30 = vpack.c.bf16 %v213_v27, %v209_v26  ;;  %v211_v31 = vld [vmem:[#allocation3 + $0x50] sm:$0xff]  ;;  %v222_v35 = vld [vmem:[#allocation3 + $0xa8] sm:$0xff]  ;;  %v220_v36 = vld [vmem:[#allocation3 + $0x98] sm:$0xff]  ;;  %v2715_v20 = vsel %vm764_vm2, 1, %v7040_v0  ;;  %vm765_vm6 = vcmp.gt.s32.totalorder %v7272_v18, 5  ;;  %vm767_vm7 = vcmp.gt.s32.totalorder %v7272_v18, 7  ;;  %p7005_p4 = pnand %p7004_p3, %p6998_p0 }
  0x86   :  { %v215_v32 = vld [vmem:[#allocation3 + $0x70] sm:$0xff]  ;;  %v224_v37 = vld [vmem:[#allocation3 + $0xb8] sm:$0xff]  ;;  %4971 = vmatprep.subr.bf16.mxu0 %v4970_v24  ;;  %5003 = vmatprep.subr.bf16.mxu1 %v5002_v29  ;;  %v4974_v38 = vpack.c.bf16 %v222_v35, %v218_v33  ;;  %v217_v40 = vld [vmem:[#allocation3 + $0x80] sm:$0xff] }
  0x87   :  { %166 = vperm.xlu0 %6679, %v147_v9   ;;  %169 = vperm.xlu1 %6680, %v148_v10   ;;  %v5004_v34 = vpack.c.bf16 %v215_v32, %v211_v31  ;;  %v5006_v39 = vpack.c.bf16 %v224_v37, %v220_v36  ;;  %v221_v41 = vld [vmem:[#allocation3 + $0xa0] sm:$0xff]  ;;  %v219_v42 = vld [vmem:[#allocation3 + $0x90] sm:$0xff]  ;;  %v226_v44 = vld [vmem:[#allocation3 + $0xc8] sm:$0xff] }
  0x88   :  { %v223_v43 = vld [vmem:[#allocation3 + $0xb0] sm:$0xff]  ;;  %v230_v45 = vld [vmem:[#allocation3 + $0xe8] sm:$0xff]  ;;  %v4976_v46 = vpack.c.bf16 %v221_v41, %v217_v40  ;;  %v228_v48 = vld [vmem:[#allocation3 + $0xd8] sm:$0xff] }
  0x89   :  { %4973 = vmatpush1.bf16.msra.mxu0 %v4972_v30  ;;  %5005 = vmatpush1.bf16.msra.mxu1 %v5004_v34  ;;  %v5008_v47 = vpack.c.bf16 %v223_v43, %v219_v42  ;;  %v232_v49 = vld [vmem:[#allocation3 + $0xf8] sm:$0xff]  ;;  %v225_v50 = vld [vmem:[#allocation3 + $0xc0] sm:$0xff]  ;;  %v4978_v51 = vpack.c.bf16 %v230_v45, %v226_v44  ;;  %v227_v53 = vld [vmem:[#allocation3 + $0xd0] sm:$0xff]  ;;  %v3681_v34 = vsel %vm766_vm3, 1, %v7040_v0 }
  0x8a   :  { %4975 = vmatprep.subr.bf16.mxu0 %v4974_v38  ;;  %v229_v52 = vld [vmem:[#allocation3 + $0xe0] sm:$0xff]  ;;  %v231_v54 = vld [vmem:[#allocation3 + $0xf0] sm:$0xff]  ;;  %5007 = vmatprep.subr.bf16.mxu1 %v5006_v39  ;;  %v5010_v56 = vpack.c.bf16 %v232_v49, %v228_v48  ;;  %v234_v57 = vld [vmem:[#allocation3 + $0x108] sm:$0xff]  ;;  %v1266_v48 = vsel %vm761_vm4, 1, %v7040_v0 }
  0x8b   :  { %172 = vperm.xlu0 %6679, %v149_v28   ;;  %v238_v58 = vld [vmem:[#allocation3 + $0x128] sm:$0xff]  ;;  %v236_v59 = vld [vmem:[#allocation3 + $0x118] sm:$0xff]  ;;  %v4980_v61 = vpack.c.bf16 %v229_v52, %v225_v50  ;;  %v5012_v62 = vpack.c.bf16 %v231_v54, %v227_v53  ;;  %v233_v63 = vld [vmem:[#allocation3 + $0x100] sm:$0xff]  ;;  %v3198_v52 = vsel %vm765_vm6, 1, %v7040_v0  ;;  %v4164_v53 = vsel %vm767_vm7, 1, %v7040_v0 }
  0x8c   :  { %v240_v60 = vld [vmem:[#allocation3 + $0x138] sm:$0xff]  ;;  %v4982_v1 = vpack.c.bf16 %v238_v58, %v234_v57  ;;  %v237_v2 = vld [vmem:[#allocation3 + $0x120] sm:$0xff]  ;;  %v235_v3 = vld [vmem:[#allocation3 + $0x110] sm:$0xff]  ;;  %v151_v54 = vlaneseq  ;;  %v7042_v57 = vmov 1.0  }
  0x8d   :  { %4977 = vmatpush1.bf16.msra.mxu0 %v4976_v46  ;;  %5009 = vmatpush1.bf16.msra.mxu1 %v5008_v47  ;;  %v239_v4 = vld [vmem:[#allocation3 + $0x130] sm:$0xff]  ;;  %v5014_v7 = vpack.c.bf16 %v240_v60, %v236_v59  ;;  %v242_v8 = vld [vmem:[#allocation3 + $0x148] sm:$0xff]  ;;  %v244_v10 = vld [vmem:[#allocation3 + $0x158] sm:$0xff]  ;;  %v4984_v12 = vpack.c.bf16 %v237_v2, %v233_v63 }
  0x8e   :  { %4979 = vmatprep.subr.bf16.mxu0 %v4978_v51  ;;  %5011 = vmatprep.subr.bf16.mxu1 %v5010_v56  ;;  %v246_v9 = vld [vmem:[#allocation3 + $0x168] sm:$0xff]  ;;  %v248_v11 = vld [vmem:[#allocation3 + $0x178] sm:$0xff]  ;;  %v5016_v13 = vpack.c.bf16 %v239_v4, %v235_v3  ;;  %v241_v14 = vld [vmem:[#allocation3 + $0x140] sm:$0xff]  ;;  %v2232_v51 = vsel %vm763_vm5, 1, %v7040_v0 }
  0x8f   :  { %785 = vperm.xlu0 %6679, %v783_v55   ;;  %v4986_v15 = vpack.c.bf16 %v246_v9, %v242_v8  ;;  %v245_v16 = vld [vmem:[#allocation3 + $0x160] sm:$0xff]  ;;  %v243_v17 = vld [vmem:[#allocation3 + $0x150] sm:$0xff]  ;;  %v5018_v21 = vpack.c.bf16 %v248_v11, %v244_v10  ;;  %v250_v22 = vld [vmem:[#allocation3 + $0x188] sm:$0xff]  ;;  %v152_v55 = vand.u32 127, %v151_v54 }
  0x90   :  { %v247_v19 = vld [vmem:[#allocation3 + $0x170] sm:$0xff]  ;;  %v254_v23 = vld [vmem:[#allocation3 + $0x1a8] sm:$0xff]  ;;  %v252_v24 = vld [vmem:[#allocation3 + $0x198] sm:$0xff]  ;;  %v4988_v26 = vpack.c.bf16 %v245_v16, %v241_v14 }
  0x91   :  { %4981 = vmatpush1.bf16.msra.mxu0 %v4980_v61  ;;  %5013 = vmatpush1.bf16.msra.mxu1 %v5012_v62  ;;  %v256_v25 = vld [vmem:[#allocation3 + $0x1b8] sm:$0xff]  ;;  %v5020_v27 = vpack.c.bf16 %v247_v19, %v243_v17  ;;  %v249_v28 = vld [vmem:[#allocation3 + $0x180] sm:$0xff]  ;;  %v4990_v30 = vpack.c.bf16 %v254_v23, %v250_v22  ;;  %v251_v31 = vld [vmem:[#allocation3 + $0x190] sm:$0xff] }
  0x92   :  { %4983 = vmatprep.subr.bf16.mxu0 %v4982_v1  ;;  %5015 = vmatprep.subr.bf16.mxu1 %v5014_v7  ;;  %v253_v29 = vld [vmem:[#allocation3 + $0x1a0] sm:$0xff]  ;;  %v255_v32 = vld [vmem:[#allocation3 + $0x1b0] sm:$0xff]  ;;  %v258_v33 = vld [vmem:[#allocation3 + $0x1c8] sm:$0xff]  ;;  %v5022_v35 = vpack.c.bf16 %v256_v25, %v252_v24 }
  0x93   :  { %1751 = vperm.xlu0 %6679, %v1749_v5   ;;  %v262_v36 = vld [vmem:[#allocation3 + $0x1e8] sm:$0xff]  ;;  %v260_v37 = vld [vmem:[#allocation3 + $0x1d8] sm:$0xff]  ;;  %v4992_v39 = vpack.c.bf16 %v253_v29, %v249_v28  ;;  %v5024_v40 = vpack.c.bf16 %v255_v32, %v251_v31  ;;  %v257_v41 = vld [vmem:[#allocation3 + $0x1c0] sm:$0xff] }
  0x94   :  { %v264_v38 = vld [vmem:[#allocation3 + $0x1f8] sm:$0xff]  ;;  %v261_v42 = vld [vmem:[#allocation3 + $0x1e0] sm:$0xff]  ;;  %v4994_v43 = vpack.c.bf16 %v262_v36, %v258_v33  ;;  %v259_v45 = vld [vmem:[#allocation3 + $0x1d0] sm:$0xff] }
  0x95   :  { %4985 = vmatpush1.bf16.msra.mxu0 %v4984_v12  ;;  %5017 = vmatpush1.bf16.msra.mxu1 %v5016_v13  ;;  %v5026_v44 = vpack.c.bf16 %v264_v38, %v260_v37  ;;  %v263_v46 = vld [vmem:[#allocation3 + $0x1f0] sm:$0xff]  ;;  %v150_v47 = vld [vmem:[%s8691_s0 + $0x38] sm:$0xff]  ;;  %v4996_v49 = vpack.c.bf16 %v261_v42, %v257_v41  ;;  %v546_v63 = vld [vmem:[#allocation6 + $0x8] sm:$0xff] }
  0x96   :  { %4987 = vmatprep.subr.bf16.mxu0 %v4986_v15  ;;  %5019 = vmatprep.subr.bf16.mxu1 %v5018_v21  ;;  %v5028_v50 = vpack.c.bf16 %v263_v46, %v259_v45  ;;  %v550_v1 = vld [vmem:[#allocation6 + $0x28] sm:$0xff]  ;;  %v548_v2 = vld [vmem:[#allocation6 + $0x18] sm:$0xff]  ;;  %v545_v5 = vld [vmem:[#allocation6] sm:$0xff] }
  0x97   :  { %2717 = vperm.xlu0 %6679, %v2715_v20   ;;  %175 = vperm.xlu1 %6680, %v150_v47   ;;  %v7315_v3 = vpack.c.bf16 %v550_v1, %v546_v63  ;;  %v552_v4 = vld [vmem:[#allocation6 + $0x38] sm:$0xff]  ;;  %v549_v7 = vld [vmem:[#allocation6 + $0x20] sm:$0xff]  ;;  %v547_v10 = vld [vmem:[#allocation6 + $0x10] sm:$0xff] }
  0x98   :  { %v7317_v8 = vpack.c.bf16 %v552_v4, %v548_v2  ;;  %v7319_v9 = vpack.c.bf16 %v549_v7, %v545_v5  ;;  %v551_v11 = vld [vmem:[#allocation6 + $0x30] sm:$0xff]  ;;  %v554_v13 = vld [vmem:[#allocation6 + $0x48] sm:$0xff]  ;;  %v556_v15 = vld [vmem:[#allocation6 + $0x58] sm:$0xff] }
  0x99   :  { %4989 = vmatpush1.bf16.msra.mxu0 %v4988_v26  ;;  %5021 = vmatpush1.bf16.msra.mxu1 %v5020_v27  ;;  %v7322_v12 = vpack.c.bf16 %v551_v11, %v547_v10  ;;  %v558_v14 = vld [vmem:[#allocation6 + $0x68] sm:$0xff]  ;;  %v560_v17 = vld [vmem:[#allocation6 + $0x78] sm:$0xff]  ;;  %v553_v19 = vld [vmem:[#allocation6 + $0x40] sm:$0xff] }
  0x9a   :  { %4991 = vmatprep.subr.bf16.mxu0 %v4990_v30  ;;  %5023 = vmatprep.subr.bf16.mxu1 %v5022_v35  ;;  %v7327_v16 = vpack.c.bf16 %v558_v14, %v554_v13  ;;  %v557_v20 = vld [vmem:[#allocation6 + $0x60] sm:$0xff]  ;;  %v7329_v21 = vpack.c.bf16 %v560_v17, %v556_v15  ;;  %v555_v23 = vld [vmem:[#allocation6 + $0x50] sm:$0xff]  ;;  %v562_v26 = vld [vmem:[#allocation6 + $0x88] sm:$0xff] }
  0x9b   :  { %3683 = vperm.xlu0 %6679, %v3681_v34   ;;  %1268 = vperm.xlu1 %6680, %v1266_v48   ;;  %v7331_v22 = vpack.c.bf16 %v557_v20, %v553_v19  ;;  %v559_v24 = vld [vmem:[#allocation6 + $0x70] sm:$0xff]  ;;  %v566_v27 = vld [vmem:[#allocation6 + $0xa8] sm:$0xff]  ;;  %v564_v28 = vld [vmem:[#allocation6 + $0x98] sm:$0xff] }
  0x9c   :  { %8896 = vst [vmem:[#allocation21_spill] sm:$0xff] %v7329_v21  ;;  %v7334_v25 = vpack.c.bf16 %v559_v24, %v555_v23  ;;  %v7339_v29 = vpack.c.bf16 %v566_v27, %v562_v26  ;;  %v568_v30 = vld [vmem:[#allocation6 + $0xb8] sm:$0xff]  ;;  %v561_v31 = vld [vmem:[#allocation6 + $0x80] sm:$0xff]  ;;  %v563_v35 = vld [vmem:[#allocation6 + $0x90] sm:$0xff] }
  0x9d   :  { %4993 = vmatpush1.bf16.msra.mxu0 %v4992_v39  ;;  %5025 = vmatpush1.bf16.msra.mxu1 %v5024_v40  ;;  %8897 = vst [vmem:[#allocation22_spill] sm:$0xff] %v7331_v22  ;;  %v565_v32 = vld [vmem:[#allocation6 + $0xa0] sm:$0xff]  ;;  %v7341_v33 = vpack.c.bf16 %v568_v30, %v564_v28  ;;  %v567_v36 = vld [vmem:[#allocation6 + $0xb0] sm:$0xff]  ;;  %v570_v38 = vld [vmem:[#allocation6 + $0xc8] sm:$0xff] }
  0x9e   :  { %4995 = vmatprep.subr.bf16.mxu0 %v4994_v43  ;;  %5027 = vmatprep.subr.bf16.mxu1 %v5026_v44  ;;  %8898 = vst [vmem:[#allocation23_spill] sm:$0xff] %v7334_v25  ;;  %8899 = vst [vmem:[#allocation24_spill] sm:$0xff] %v7339_v29  ;;  %v7343_v34 = vpack.c.bf16 %v565_v32, %v561_v31  ;;  %v7346_v37 = vpack.c.bf16 %v567_v36, %v563_v35  ;;  %v574_v39 = vld [vmem:[#allocation6 + $0xe8] sm:$0xff]  ;;  %v572_v40 = vld [vmem:[#allocation6 + $0xd8] sm:$0xff] }
  0x9f   :  { %2234 = vperm.xlu1 %6680, %v2232_v51   ;;  %8900 = vst [vmem:[#allocation25_spill] sm:$0xff] %v7341_v33  ;;  %v7351_v41 = vpack.c.bf16 %v574_v39, %v570_v38  ;;  %v576_v42 = vld [vmem:[#allocation6 + $0xf8] sm:$0xff]  ;;  %v569_v43 = vld [vmem:[#allocation6 + $0xc0] sm:$0xff]  ;;  %v571_v47 = vld [vmem:[#allocation6 + $0xd0] sm:$0xff] }
  0xa0   :  { %8901 = vst [vmem:[#allocation26_spill] sm:$0xff] %v7343_v34  ;;  %8902 = vst [vmem:[#allocation27_spill] sm:$0xff] %v7346_v37  ;;  %v573_v44 = vld [vmem:[#allocation6 + $0xe0] sm:$0xff]  ;;  %v7353_v45 = vpack.c.bf16 %v576_v42, %v572_v40  ;;  %v575_v48 = vld [vmem:[#allocation6 + $0xf0] sm:$0xff] }
  0xa1   :  { %4997 = vmatpush1.bf16.msra.mxu0 %v4996_v49  ;;  %5029 = vmatpush1.bf16.msra.mxu1 %v5028_v50  ;;  %8903 = vst [vmem:[#allocation28_spill] sm:$0xff] %v7351_v41  ;;  %v7355_v46 = vpack.c.bf16 %v573_v44, %v569_v43  ;;  %v7358_v49 = vpack.c.bf16 %v575_v48, %v571_v47  ;;  %v578_v50 = vld [vmem:[#allocation6 + $0x108] sm:$0xff]  ;;  %v588_v63 = vld [vmem:[#allocation6 + $0x158] sm:$0xff]  ;;  %v585_v4 = vld [vmem:[#allocation6 + $0x140] sm:$0xff] }
  0xa2   :  { %5031 = vmatprep.subr.bf16.mxu0 %v7315_v3  ;;  %5063 = vmatprep.subr.bf16.mxu1 %v7317_v8  ;;  %8904 = vst [vmem:[#allocation29_spill] sm:$0xff] %v7353_v45  ;;  %v582_v51 = vld [vmem:[#allocation6 + $0x128] sm:$0xff]  ;;  %v592_v2 = vld [vmem:[#allocation6 + $0x178] sm:$0xff]  ;;  %v589_v5 = vld [vmem:[#allocation6 + $0x160] sm:$0xff] }
  0xa3   :  { %3200 = vperm.xlu1 %6680, %v3198_v52   ;;  %8905 = vst [vmem:[#allocation30_spill] sm:$0xff] %v7355_v46  ;;  %8906 = vst [vmem:[#allocation31_spill] sm:$0xff] %v7358_v49  ;;  %v580_v52 = vld [vmem:[#allocation6 + $0x118] sm:$0xff]  ;;  %v7377_v7 = vpack.c.bf16 %v592_v2, %v588_v63  ;;  %v7379_v10 = vpack.c.bf16 %v589_v5, %v585_v4  ;;  %v587_v11 = vld [vmem:[#allocation6 + $0x150] sm:$0xff] }
  0xa4   :  { %v591_v13 = vld [vmem:[#allocation6 + $0x170] sm:$0xff]  ;;  %v594_v15 = vld [vmem:[#allocation6 + $0x188] sm:$0xff]  ;;  %v596_v19 = vld [vmem:[#allocation6 + $0x198] sm:$0xff] }
  0xa5   :  { %8912 = vst [vmem:[#allocation37_spill] sm:$0xff] %v7377_v7  ;;  %8913 = vst [vmem:[#allocation38_spill] sm:$0xff] %v7379_v10  ;;  %v7382_v14 = vpack.c.bf16 %v591_v13, %v587_v11  ;;  %v598_v17 = vld [vmem:[#allocation6 + $0x1a8] sm:$0xff]  ;;  %v600_v23 = vld [vmem:[#allocation6 + $0x1b8] sm:$0xff] }
  0xa6   :  { %v7387_v20 = vpack.c.bf16 %v598_v17, %v594_v15  ;;  %v593_v24 = vld [vmem:[#allocation6 + $0x180] sm:$0xff]  ;;  %v7389_v27 = vpack.c.bf16 %v600_v23, %v596_v19  ;;  %v595_v30 = vld [vmem:[#allocation6 + $0x190] sm:$0xff]  ;;  %v602_v35 = vld [vmem:[#allocation6 + $0x1c8] sm:$0xff] }
  0xa7   :  { %4166 = vperm.xlu1 %6680, %v4164_v53   ;;  %v7363_v53 = vpack.c.bf16 %v582_v51, %v578_v50  ;;  %8914 = vst [vmem:[#allocation39_spill] sm:$0xff] %v7382_v14  ;;  %v597_v26 = vld [vmem:[#allocation6 + $0x1a0] sm:$0xff]  ;;  %v599_v31 = vld [vmem:[#allocation6 + $0x1b0] sm:$0xff]  ;;  %v606_v36 = vld [vmem:[#allocation6 + $0x1e8] sm:$0xff] }
  0xa8   :  { %8915 = vst [vmem:[#allocation40_spill] sm:$0xff] %v7387_v20  ;;  %8916 = vst [vmem:[#allocation41_spill] sm:$0xff] %v7389_v27  ;;  %v7391_v28 = vpack.c.bf16 %v597_v26, %v593_v24  ;;  %v7394_v32 = vpack.c.bf16 %v599_v31, %v595_v30  ;;  %v604_v38 = vld [vmem:[#allocation6 + $0x1d8] sm:$0xff]  ;;  %v7399_v39 = vpack.c.bf16 %v606_v36, %v602_v35  ;;  %v601_v42 = vld [vmem:[#allocation6 + $0x1c0] sm:$0xff] }
  0xa9   :  { %8907 = vst [vmem:[#allocation32_spill] sm:$0xff] %v7363_v53  ;;  %v608_v40 = vld [vmem:[#allocation6 + $0x1f8] sm:$0xff]  ;;  %v605_v43 = vld [vmem:[#allocation6 + $0x1e0] sm:$0xff]  ;;  %v603_v48 = vld [vmem:[#allocation6 + $0x1d0] sm:$0xff] }
  0xaa   :  { %8917 = vst [vmem:[#allocation42_spill] sm:$0xff] %v7391_v28  ;;  %8918 = vst [vmem:[#allocation43_spill] sm:$0xff] %v7394_v32  ;;  %v7401_v44 = vpack.c.bf16 %v608_v40, %v604_v38  ;;  %v7403_v47 = vpack.c.bf16 %v605_v43, %v601_v42  ;;  %v607_v50 = vld [vmem:[#allocation6 + $0x1f0] sm:$0xff]  ;;  %v7424_v63 = vld [vmem:[%s8694_s3] sm:$0xf] }
  0xab   :  { %8919 = vst [vmem:[#allocation44_spill] sm:$0xff] %v7399_v39  ;;  %v7406_v51 = vpack.c.bf16 %v607_v50, %v603_v48  ;;  %v673_v50 = vld [vmem:[#allocation9] sm:$0xff] }
  0xac   :  { %8920 = vst [vmem:[#allocation45_spill] sm:$0xff] %v7401_v44  ;;  %8921 = vst [vmem:[#allocation46_spill] sm:$0xff] %v7403_v47 }
  0xad   :  { %8922 = vst [vmem:[#allocation47_spill] sm:$0xff] %v7406_v51 }
  0xfe   :  { %v155_v56 = vpop.permute.xlu0 %154  ;;  %v161_v58 = vpop.permute.xlu1 %160 }
  0xff   :  { %vm177_vm8 = vcmp.eq.s32.totalorder %v155_v56, %v152_v55  ;;  %vm179_vm10 = vcmp.eq.s32.totalorder %v161_v58, %v152_v55  ;;  %v577_v56 = vld [vmem:[#allocation6 + $0x100] sm:$0xff] }
 0x100   :  { %4785 = vmatmul.mubr.msk.f32.vlgmr.msra.gmra.mrb[0].mxu0 %vm177_vm8, %v7042_v57  ;;  %4793 = vmatmul.mubr.msk.f32.vlgmr.msra.gmra.mrb[0].mxu1 %vm177_vm8, %v7042_v57  ;;  %vm7044_vm8 = vmmov 0  }
 0x101   :  { %357 = vmatprep.mubr.f32.mxu0 %v8709_v6  ;;  %470 = vmatprep.mubr.f32.mxu1 %v8709_v6 }
 0x102   :  { %v158_v59 = vpop.permute.xlu0 %157  ;;  %v164_v0 = vpop.permute.xlu1 %163  ;;  %5033 = vmatpush1.bf16.msra.mxu0 %v7319_v9  ;;  %5065 = vmatpush1.bf16.msra.mxu1 %v7322_v12 }
 0x103   :  { %vm178_vm9 = vcmp.eq.s32.totalorder %v158_v59, %v152_v55  ;;  %vm180_vm11 = vcmp.eq.s32.totalorder %v164_v0, %v152_v55  ;;  %5035 = vmatprep.subr.bf16.mxu0 %v7327_v16  ;;  %5067 = vmatprep.subr.bf16.mxu1 %v7329_v21  ;;  %v579_v0 = vld [vmem:[#allocation6 + $0x110] sm:$0xff] }
 0x104   :  { %4786 = vmatmul.mubr.msk.f32.gmra.mrb[2].mxu0 %vm178_vm9, %v7042_v57  ;;  %4794 = vmatmul.mubr.msk.f32.gmra.mrb[2].mxu1 %vm178_vm9, %v7042_v57 }
 0x105   :  { %363 = vmatprep.mubr.f32.mxu0 %v8709_v6  ;;  %476 = vmatprep.mubr.f32.mxu1 %v8709_v6 }
 0x106   :  { %v167_v18 = vpop.permute.xlu0 %166  ;;  %v170_v60 = vpop.permute.xlu1 %169  ;;  %5037 = vmatpush1.bf16.msra.mxu0 %v7331_v22  ;;  %5069 = vmatpush1.bf16.msra.mxu1 %v7334_v25 }
 0x107   :  { %vm181_vm12 = vcmp.eq.s32.totalorder %v167_v18, %v152_v55  ;;  %vm182_vm13 = vcmp.eq.s32.totalorder %v170_v60, %v152_v55  ;;  %5039 = vmatprep.subr.bf16.mxu0 %v7339_v29  ;;  %5071 = vmatprep.subr.bf16.mxu1 %v7341_v33  ;;  %v583_v18 = vld [vmem:[#allocation6 + $0x130] sm:$0xff] }
 0x108   :  { %4787 = vmatmul.mubr.msk.f32.gmra.mrb[4].mxu0 %vm179_vm10, %v7042_v57  ;;  %4795 = vmatmul.mubr.msk.f32.gmra.mrb[4].mxu1 %vm179_vm10, %v7042_v57  ;;  %v7370_v60 = vpack.c.bf16 %v583_v18, %v579_v0  ;;  %v680_v0 = vld [vmem:[#allocation9 + $0x38] sm:$0xff] }
 0x109   :  { %369 = vmatprep.mubr.f32.mxu0 %v8709_v6  ;;  %482 = vmatprep.mubr.f32.mxu1 %v8709_v6 }
 0x10a   :  { %v173_v61 = vpop.permute.xlu0 %172  ;;  %5041 = vmatpush1.bf16.msra.mxu0 %v7343_v34  ;;  %5073 = vmatpush1.bf16.msra.mxu1 %v7346_v37  ;;  %8910 = vst [vmem:[#allocation35_spill] sm:$0xff] %v7370_v60 }
 0x10b   :  { %vm183_vm14 = vcmp.eq.s32.totalorder %v173_v61, %v152_v55  ;;  %5043 = vmatprep.subr.bf16.mxu0 %v7351_v41  ;;  %5075 = vmatprep.subr.bf16.mxu1 %v7353_v45  ;;  %v586_v61 = vld [vmem:[#allocation6 + $0x148] sm:$0xff] }
 0x10c   :  { %4788 = vmatmul.mubr.msk.f32.gmra.mrb[6].mxu0 %vm180_vm11, %v7042_v57  ;;  %4796 = vmatmul.mubr.msk.f32.gmra.mrb[6].mxu1 %vm180_vm11, %v7042_v57 }
 0x10d   :  { %375 = vmatprep.mubr.f32.mxu0 %v8709_v6  ;;  %488 = vmatprep.mubr.f32.mxu1 %v8709_v6 }
 0x10e   :  { %5045 = vmatpush1.bf16.msra.mxu0 %v7355_v46  ;;  %5077 = vmatpush1.bf16.msra.mxu1 %v7358_v49 }
 0x10f   :  { %5047 = vmatprep.subr.bf16.mxu0 %v7363_v53 }
 0x110   :  { %4789 = vmatmul.mubr.msk.f32.gmra.mrb[8].mxu0 %vm181_vm12, %v7042_v57  ;;  %4797 = vmatmul.mubr.msk.f32.gmra.mrb[8].mxu1 %vm181_vm12, %v7042_v57 }
 0x111   :  { %381 = vmatprep.mubr.f32.mxu0 %v8709_v6  ;;  %494 = vmatprep.mubr.f32.mxu1 %v8709_v6 }
 0x114   :  { %4790 = vmatmul.mubr.msk.f32.gmra.mrb[10].mxu0 %vm182_vm13, %v7042_v57  ;;  %4798 = vmatmul.mubr.msk.f32.gmra.mrb[10].mxu1 %vm182_vm13, %v7042_v57 }
 0x115   :  { %387 = vmatprep.mubr.f32.mxu0 %v8709_v6  ;;  %500 = vmatprep.mubr.f32.mxu1 %v8709_v6 }
 0x116   :  { %v176_v62 = vpop.permute.xlu1 %175 }
 0x117   :  { %vm184_vm15 = vcmp.eq.s32.totalorder %v176_v62, %v152_v55  ;;  %v584_v55 = vld [vmem:[#allocation6 + $0x138] sm:$0xff]  ;;  %v590_v62 = vld [vmem:[#allocation6 + $0x168] sm:$0xff] }
 0x118   :  { %4791 = vmatmul.mubr.msk.f32.gmra.mrb[12].mxu0 %vm183_vm14, %v7042_v57  ;;  %4799 = vmatmul.mubr.msk.f32.gmra.mrb[12].mxu1 %vm183_vm14, %v7042_v57  ;;  %v7365_v58 = vpack.c.bf16 %v584_v55, %v580_v52  ;;  %v7375_v1 = vpack.c.bf16 %v590_v62, %v586_v61  ;;  %v674_v52 = vld [vmem:[#allocation9 + $0x8] sm:$0xff]  ;;  %v7418_v61 = vshrl.u32 %v151_v54, 7 }
 0x119   :  { %393 = vmatprep.mubr.f32.mxu0 %v8709_v6  ;;  %506 = vmatprep.mubr.f32.mxu1 %v8709_v6  ;;  %v678_v55 = vld [vmem:[#allocation9 + $0x28] sm:$0xff] }
 0x11a   :  { %8908 = vst [vmem:[#allocation33_spill] sm:$0xff] %v7365_v58  ;;  %5079 = vmatprep.subr.bf16.mxu1 %v7365_v58  ;;  %8911 = vst [vmem:[#allocation36_spill] sm:$0xff] %v7375_v1  ;;  %v8708_v62 = vsub.s32 0, %v7418_v61  ;;  %v8707_v4 = vsub.s32 2, %v7418_v61  ;;  %v8706_v5 = vsub.s32 3, %v7418_v61 }
 0x11b   :  { %5081 = vmatpush1.bf16.msra.mxu1 %v7370_v60 }
 0x11c   :  { %4792 = vmatmul.mubr.msk.f32.gmra.mrb[14].mxu0 %vm184_vm15, %v7042_v57  ;;  %4800 = vmatmul.mubr.msk.f32.gmra.mrb[14].mxu1 %vm184_vm15, %v7042_v57  ;;  %v581_v57 = vld [vmem:[#allocation6 + $0x120] sm:$0xff]  ;;  %v7429_v2 = vrot.slane %v7424_v63, %v8708_v62  ;;  %v7437_v15 = vrot.slane %v7424_v63, %v8707_v4  ;;  %v7442_v23 = vrot.slane %v7424_v63, %v8706_v5  ;;  %v687_v5 = vld [vmem:[#allocation9 + $0x70] sm:$0xff]  ;;  %v690_v4 = vld [vmem:[#allocation9 + $0x88] sm:$0xff] }
 0x11d   :  { %858 = vmatprep.mubr.f32.mxu0 %v8709_v6  ;;  %929 = vmatprep.mubr.f32.mxu1 %v8709_v6  ;;  %v7367_v59 = vpack.c.bf16 %v581_v57, %v577_v56  ;;  %v676_v56 = vld [vmem:[#allocation9 + $0x18] sm:$0xff]  ;;  %v7411_v57 = vpack.c.bf16 %v678_v55, %v674_v52  ;;  %v677_v52 = vld [vmem:[#allocation9 + $0x20] sm:$0xff]  ;;  %v675_v55 = vld [vmem:[#allocation9 + $0x10] sm:$0xff] }
 0x11e   :  { %5083 = vmatprep.subr.bf16.mxu1 %v7377_v7  ;;  %v7413_v18 = vpack.c.bf16 %v680_v0, %v676_v56  ;;  %8925 = vst [vmem:[#allocation50_spill] sm:$0xff] %v7429_v2  ;;  %v679_v56 = vld [vmem:[#allocation9 + $0x30] sm:$0xff]  ;;  %v682_v0 = vld [vmem:[#allocation9 + $0x48] sm:$0xff]  ;;  %v696_v6 = vld [vmem:[#allocation9 + $0xb8] sm:$0xff] }
 0x11f   :  { %8909 = vst [vmem:[#allocation34_spill] sm:$0xff] %v7367_v59  ;;  %5049 = vmatpush1.bf16.msra.mxu0 %v7367_v59  ;;  %5085 = vmatpush1.bf16.msra.mxu1 %v7382_v14  ;;  %8923 = vst [vmem:[#allocation48_spill] sm:$0xff] %v7411_v57  ;;  %v694_v62 = vld [vmem:[#allocation9 + $0xa8] sm:$0xff] }
 0x120   :  { %5051 = vmatprep.subr.bf16.mxu0 %v7375_v1  ;;  %5087 = vmatprep.subr.bf16.mxu1 %v7389_v27  ;;  %8924 = vst [vmem:[#allocation49_spill] sm:$0xff] %v7413_v18 }
 0x123   :  { %5053 = vmatpush1.bf16.msra.mxu0 %v7379_v10  ;;  %5089 = vmatpush1.bf16.msra.mxu1 %v7394_v32 }
 0x124   :  { %5055 = vmatprep.subr.bf16.mxu0 %v7387_v20  ;;  %5091 = vmatprep.subr.bf16.mxu1 %v7401_v44 }
 0x127   :  { %5057 = vmatpush1.bf16.msra.mxu0 %v7391_v28  ;;  %5093 = vmatpush1.bf16.msra.mxu1 %v7406_v51 }
 0x128   :  { %5059 = vmatprep.subr.bf16.mxu0 %v7399_v39  ;;  %5127 = vmatprep.subr.bf16.mxu1 %v7413_v18 }
 0x12b   :  { %5061 = vmatpush1.bf16.msra.mxu0 %v7403_v47 }
 0x12c   :  { %5095 = vmatprep.subr.bf16.mxu0 %v7411_v57 }
 0x1d3   :  { %v353_v11 = vpop.f32.mrb[0].mxu0  ;;  %v466_v13 = vpop.f32.mrb[0].mxu1 }
 0x1d4   :  { %v354_v54 = vadd.f32 %v353_v11, %v7429_v2  ;;  %v355_v17 = vpop.f32.mrb[1].mxu0  ;;  %v468_v19 = vpop.f32.mrb[1].mxu1  ;;  %v467_v26 = vadd.f32 %v466_v13, %v7437_v15  ;;  %v686_v11 = vld [vmem:[#allocation9 + $0x68] sm:$0xff]  ;;  %v684_v13 = vld [vmem:[#allocation9 + $0x58] sm:$0xff] }
 0x1d5   :  { %v469_v30 = vadd.f32 %v468_v19, %v7442_v23  ;;  %v7449_v17 = vpop.permute.xlu0 %785 }
 0x1d6   :  { %v771_v24 = vmul.f32 0.5, %v354_v54  ;;  %v688_v54 = vld [vmem:[#allocation9 + $0x78] sm:$0xff]  ;;  %vm787_vm0 = vcmp.eq.s32.totalorder %v7449_v17, 1 }
 0x1d7   :  { %v776_v31 = vmul.f32 0.5, %v469_v30  ;;  %v7453_v30 = vpack.c.bf16 %v679_v56, %v675_v55  ;;  %v689_v55 = vld [vmem:[#allocation9 + $0x80] sm:$0xff] }
 0x1d8   :  { %6681 = vtanh.f32 %v771_v24  ;;  %v693_v56 = vld [vmem:[#allocation9 + $0xa0] sm:$0xff] }
 0x1d9   :  { %6683 = vtanh.f32 %v467_v26  ;;  %v7451_v26 = vpack.c.bf16 %v677_v52, %v673_v50  ;;  %8928 = vst [vmem:[#allocation53_spill] sm:$0xff] %v7453_v30 }
 0x1da   :  { %6685 = vtanh.f32 %v776_v31  ;;  %v681_v31 = vld [vmem:[#allocation9 + $0x40] sm:$0xff] }
 0x1db   :  { %8927 = vst [vmem:[#allocation52_spill] sm:$0xff] %v7451_v26 }
 0x1e2   :  { %v6682_v35 = vpop.eup %6681 }
 0x1e3   :  { %v773_v36 = vadd.f32 1.0, %v6682_v35  ;;  %v6684_v40 = vpop.eup %6683  ;;  %v685_v35 = vld [vmem:[#allocation9 + $0x60] sm:$0xff] }
 0x1e4   :  { %v6686_v43 = vpop.eup %6685  ;;  %v7470_v50 = vpack.c.bf16 %v685_v35, %v681_v31  ;;  %v8935_v31 = vmov 0.0  }
 0x1e5   :  { %v774_v38 = vmul.f32 0.5, %v773_v36  ;;  %v778_v48 = vadd.f32 1.0, %v6686_v43  ;;  %v683_v43 = vld [vmem:[#allocation9 + $0x50] sm:$0xff] }
 0x1e6   :  { %8931 = vst [vmem:[#allocation56_spill] sm:$0xff] %v7470_v50  ;;  %v7472_v52 = vpack.c.bf16 %v687_v5, %v683_v43  ;;  %v7484_v5 = vpack.c.bf16 %v693_v56, %v689_v55 }
 0x1e7   :  { %v7446_v42 = vmul.f32 %v6684_v40, %v774_v38  ;;  %v779_v19 = vmul.f32 0.5, %v778_v48  ;;  %v7457_v38 = vpack.c.bf16 %v686_v11, %v682_v0  ;;  %v7459_v40 = vpack.c.bf16 %v688_v54, %v684_v13  ;;  %v692_v48 = vld [vmem:[#allocation9 + $0x98] sm:$0xff]  ;;  %v691_v13 = vld [vmem:[#allocation9 + $0x90] sm:$0xff] }
 0x1e8   :  { %8932 = vst [vmem:[#allocation57_spill] sm:$0xff] %v7472_v52  ;;  %v7476_v0 = vpack.c.bf16 %v694_v62, %v690_v4  ;;  %v7478_v11 = vpack.c.bf16 %v696_v6, %v692_v48  ;;  %v695_v54 = vld [vmem:[#allocation9 + $0xb0] sm:$0xff]  ;;  %8936 = vst [vmem:[#allocation60_spill] sm:$0xff] %v7484_v5  ;;  %v697_v6 = vld [vmem:[#allocation9 + $0xc0] sm:$0xff] }
 0x1e9   :  { %8926 = vst [vmem:[#allocation51_spill] sm:$0xff] %v7446_v42  ;;  %6687 = vtanh.f32 %v7446_v42  ;;  %8929 = vst [vmem:[#allocation54_spill] sm:$0xff] %v7457_v38  ;;  %v7486_v62 = vpack.c.bf16 %v695_v54, %v691_v13  ;;  %v701_v4 = vld [vmem:[#allocation9 + $0xe0] sm:$0xff]  ;;  %v699_v48 = vld [vmem:[#allocation9 + $0xd0] sm:$0xff] }
 0x1ea   :  { %8930 = vst [vmem:[#allocation55_spill] sm:$0xff] %v7459_v40  ;;  %8933 = vst [vmem:[#allocation58_spill] sm:$0xff] %v7476_v0  ;;  %v708_v42 = vld [vmem:[#allocation9 + $0x118] sm:$0xff]  ;;  %v7496_v55 = vpack.c.bf16 %v701_v4, %v697_v6  ;;  %v705_v13 = vld [vmem:[#allocation9 + $0x100] sm:$0xff] }
 0x1eb   :  { %8934 = vst [vmem:[#allocation59_spill] sm:$0xff] %v7478_v11  ;;  %8937 = vst [vmem:[#allocation61_spill] sm:$0xff] %v7486_v62  ;;  %v709_v54 = vld [vmem:[#allocation9 + $0x120] sm:$0xff] }
 0x1ec   :  { %8940 = vst [vmem:[#allocation64_spill] sm:$0xff] %v7496_v55  ;;  %v713_v4 = vld [vmem:[#allocation9 + $0x140] sm:$0xff] }
 0x1f3   :  { %v6688_v24 = vpop.eup %6687 }
 0x1f4   :  { %v7455_v36 = vmul.f32 %v6688_v24, %v779_v19  ;;  %v698_v19 = vld [vmem:[#allocation9 + $0xc8] sm:$0xff] }
 0x1f5   :  { %v702_v24 = vld [vmem:[#allocation9 + $0xe8] sm:$0xff] }
 0x1f6   :  { %4801 = vmatmul.mubr.msk.f32.vlgmr.msra.gmra.mrb[2].mxu0 %vm787_vm0, %v7455_v36  ;;  %4802 = vmatmul.mubr.msk.f32.vlgmr.msra.gmra.mrb[2].mxu1 %vm787_vm0, %v7455_v36  ;;  %v7490_v35 = vpack.c.bf16 %v702_v24, %v698_v19  ;;  %v707_v19 = vld [vmem:[#allocation9 + $0x110] sm:$0xff] }
 0x1f7   :  { %5097 = vmatpush1.bf16.msra.mxu0 %v7451_v26  ;;  %5129 = vmatpush1.bf16.msra.mxu1 %v7453_v30  ;;  %v700_v26 = vld [vmem:[#allocation9 + $0xd8] sm:$0xff]  ;;  %v711_v24 = vld [vmem:[#allocation9 + $0x130] sm:$0xff] }
 0x1f8   :  { %5099 = vmatprep.subr.bf16.mxu0 %v7457_v38  ;;  %5131 = vmatprep.subr.bf16.mxu1 %v7459_v40  ;;  %v704_v30 = vld [vmem:[#allocation9 + $0xf8] sm:$0xff]  ;;  %8938 = vst [vmem:[#allocation62_spill] sm:$0xff] %v7490_v35  ;;  %v703_v40 = vld [vmem:[#allocation9 + $0xf0] sm:$0xff]  ;;  %v706_v38 = vld [vmem:[#allocation9 + $0x108] sm:$0xff]  ;;  %v7510_v6 = vpack.c.bf16 %v711_v24, %v707_v19 }
 0x1f9   :  { %1004 = vmatprep.mubr.f32.mxu0 %v8935_v31  ;;  %1075 = vmatprep.mubr.f32.mxu1 %v8935_v31  ;;  %v7492_v43 = vpack.c.bf16 %v704_v30, %v700_v26  ;;  %v7498_v56 = vpack.c.bf16 %v703_v40, %v699_v48  ;;  %v7508_v40 = vpack.c.bf16 %v709_v54, %v705_v13  ;;  %v717_v48 = vld [vmem:[#allocation9 + $0x160] sm:$0xff] }
 0x1fa   :  { %8945 = vst [vmem:[#allocation69_spill] sm:$0xff] %v7510_v6  ;;  %v7520_v13 = vpack.c.bf16 %v717_v48, %v713_v4  ;;  %v721_v19 = vld [vmem:[#allocation9 + $0x180] sm:$0xff] }
 0x1fb   :  { %5101 = vmatpush1.bf16.msra.mxu0 %v7470_v50  ;;  %5133 = vmatpush1.bf16.msra.mxu1 %v7472_v52  ;;  %8939 = vst [vmem:[#allocation63_spill] sm:$0xff] %v7492_v43  ;;  %v710_v50 = vld [vmem:[#allocation9 + $0x128] sm:$0xff]  ;;  %v712_v52 = vld [vmem:[#allocation9 + $0x138] sm:$0xff]  ;;  %8941 = vst [vmem:[#allocation65_spill] sm:$0xff] %v7498_v56 }
 0x1fc   :  { %5103 = vmatprep.subr.bf16.mxu0 %v7476_v0  ;;  %5135 = vmatprep.subr.bf16.mxu1 %v7478_v11  ;;  %v7502_v26 = vpack.c.bf16 %v710_v50, %v706_v38  ;;  %v7504_v30 = vpack.c.bf16 %v712_v52, %v708_v42  ;;  %v714_v11 = vld [vmem:[#allocation9 + $0x148] sm:$0xff]  ;;  %v716_v0 = vld [vmem:[#allocation9 + $0x158] sm:$0xff]  ;;  %8944 = vst [vmem:[#allocation68_spill] sm:$0xff] %v7508_v40  ;;  %v715_v50 = vld [vmem:[#allocation9 + $0x150] sm:$0xff] }
 0x1fd   :  { %v719_v52 = vld [vmem:[#allocation9 + $0x170] sm:$0xff]  ;;  %8948 = vst [vmem:[#allocation72_spill] sm:$0xff] %v7520_v13  ;;  %v725_v24 = vld [vmem:[#allocation9 + $0x1a0] sm:$0xff] }
 0x1fe   :  { %8942 = vst [vmem:[#allocation66_spill] sm:$0xff] %v7502_v26  ;;  %8943 = vst [vmem:[#allocation67_spill] sm:$0xff] %v7504_v30  ;;  %v7522_v54 = vpack.c.bf16 %v719_v52, %v715_v50  ;;  %v7532_v4 = vpack.c.bf16 %v725_v24, %v721_v19  ;;  %v729_v50 = vld [vmem:[#allocation9 + $0x1c0] sm:$0xff] }
 0x1ff   :  { %5105 = vmatpush1.bf16.msra.mxu0 %v7484_v5  ;;  %5137 = vmatpush1.bf16.msra.mxu1 %v7486_v62  ;;  %v718_v5 = vld [vmem:[#allocation9 + $0x168] sm:$0xff]  ;;  %v720_v62 = vld [vmem:[#allocation9 + $0x178] sm:$0xff]  ;;  %v733_v52 = vld [vmem:[#allocation9 + $0x1e0] sm:$0xff] }
 0x200   :  { %5107 = vmatprep.subr.bf16.mxu0 %v7490_v35  ;;  %5139 = vmatprep.subr.bf16.mxu1 %v7492_v43  ;;  %v7514_v42 = vpack.c.bf16 %v718_v5, %v714_v11  ;;  %v7516_v38 = vpack.c.bf16 %v720_v62, %v716_v0  ;;  %v722_v43 = vld [vmem:[#allocation9 + $0x188] sm:$0xff]  ;;  %v724_v35 = vld [vmem:[#allocation9 + $0x198] sm:$0xff]  ;;  %8949 = vst [vmem:[#allocation73_spill] sm:$0xff] %v7522_v54  ;;  %v723_v5 = vld [vmem:[#allocation9 + $0x190] sm:$0xff] }
 0x201   :  { %v727_v62 = vld [vmem:[#allocation9 + $0x1b0] sm:$0xff]  ;;  %8952 = vst [vmem:[#allocation76_spill] sm:$0xff] %v7532_v4  ;;  %v7544_v19 = vpack.c.bf16 %v733_v52, %v729_v50 }
 0x202   :  { %8946 = vst [vmem:[#allocation70_spill] sm:$0xff] %v7514_v42  ;;  %8947 = vst [vmem:[#allocation71_spill] sm:$0xff] %v7516_v38  ;;  %v7534_v48 = vpack.c.bf16 %v727_v62, %v723_v5  ;;  %v609_v5 = vld [vmem:[#allocation8] sm:$0xff] }
 0x203   :  { %5109 = vmatpush1.bf16.msra.mxu0 %v7496_v55  ;;  %5141 = vmatpush1.bf16.msra.mxu1 %v7498_v56  ;;  %v726_v55 = vld [vmem:[#allocation9 + $0x1a8] sm:$0xff]  ;;  %v728_v56 = vld [vmem:[#allocation9 + $0x1b8] sm:$0xff]  ;;  %8956 = vst [vmem:[#allocation80_spill] sm:$0xff] %v7544_v19  ;;  %v613_v62 = vld [vmem:[#allocation8 + $0x20] sm:$0xff] }
 0x204   :  { %5111 = vmatprep.subr.bf16.mxu0 %v7502_v26  ;;  %5143 = vmatprep.subr.bf16.mxu1 %v7504_v30  ;;  %v7526_v0 = vpack.c.bf16 %v726_v55, %v722_v43  ;;  %v7528_v11 = vpack.c.bf16 %v728_v56, %v724_v35  ;;  %v730_v30 = vld [vmem:[#allocation9 + $0x1c8] sm:$0xff]  ;;  %v732_v26 = vld [vmem:[#allocation9 + $0x1d8] sm:$0xff]  ;;  %8953 = vst [vmem:[#allocation77_spill] sm:$0xff] %v7534_v48  ;;  %v731_v55 = vld [vmem:[#allocation9 + $0x1d0] sm:$0xff] }
 0x205   :  { %v735_v56 = vld [vmem:[#allocation9 + $0x1f0] sm:$0xff]  ;;  %v7556_v50 = vpack.c.bf16 %v613_v62, %v609_v5 }
 0x206   :  { %8950 = vst [vmem:[#allocation74_spill] sm:$0xff] %v7526_v0  ;;  %8951 = vst [vmem:[#allocation75_spill] sm:$0xff] %v7528_v11  ;;  %v7546_v24 = vpack.c.bf16 %v735_v56, %v731_v55  ;;  %v617_v55 = vld [vmem:[#allocation8 + $0x40] sm:$0xff] }
 0x207   :  { %5113 = vmatpush1.bf16.msra.mxu0 %v7508_v40  ;;  %5145 = vmatpush1.bf16.msra.mxu1 %v7510_v6  ;;  %v734_v40 = vld [vmem:[#allocation9 + $0x1e8] sm:$0xff]  ;;  %v736_v6 = vld [vmem:[#allocation9 + $0x1f8] sm:$0xff]  ;;  %8960 = vst [vmem:[#allocation84_spill] sm:$0xff] %v7556_v50  ;;  %v621_v56 = vld [vmem:[#allocation8 + $0x60] sm:$0xff] }
 0x208   :  { %5115 = vmatprep.subr.bf16.mxu0 %v7514_v42  ;;  %5147 = vmatprep.subr.bf16.mxu1 %v7516_v38  ;;  %v7538_v35 = vpack.c.bf16 %v734_v40, %v730_v30  ;;  %v7540_v43 = vpack.c.bf16 %v736_v6, %v732_v26  ;;  %v610_v38 = vld [vmem:[#allocation8 + $0x8] sm:$0xff]  ;;  %v612_v42 = vld [vmem:[#allocation8 + $0x18] sm:$0xff]  ;;  %8957 = vst [vmem:[#allocation81_spill] sm:$0xff] %v7546_v24  ;;  %v611_v40 = vld [vmem:[#allocation8 + $0x10] sm:$0xff] }
 0x209   :  { %v615_v6 = vld [vmem:[#allocation8 + $0x30] sm:$0xff]  ;;  %v7570_v5 = vpack.c.bf16 %v621_v56, %v617_v55 }
 0x20a   :  { %8954 = vst [vmem:[#allocation78_spill] sm:$0xff] %v7538_v35  ;;  %8955 = vst [vmem:[#allocation79_spill] sm:$0xff] %v7540_v43  ;;  %v7558_v52 = vpack.c.bf16 %v615_v6, %v611_v40  ;;  %v627_v40 = vld [vmem:[#allocation8 + $0x90] sm:$0xff] }
 0x20b   :  { %5117 = vmatpush1.bf16.msra.mxu0 %v7520_v13  ;;  %5149 = vmatpush1.bf16.msra.mxu1 %v7522_v54  ;;  %v614_v13 = vld [vmem:[#allocation8 + $0x28] sm:$0xff]  ;;  %v616_v54 = vld [vmem:[#allocation8 + $0x38] sm:$0xff]  ;;  %8964 = vst [vmem:[#allocation88_spill] sm:$0xff] %v7570_v5  ;;  %v631_v6 = vld [vmem:[#allocation8 + $0xb0] sm:$0xff] }
 0x20c   :  { %5119 = vmatprep.subr.bf16.mxu0 %v7526_v0  ;;  %5151 = vmatprep.subr.bf16.mxu1 %v7528_v11  ;;  %v7550_v26 = vpack.c.bf16 %v614_v13, %v610_v38  ;;  %v7552_v30 = vpack.c.bf16 %v616_v54, %v612_v42  ;;  %v618_v11 = vld [vmem:[#allocation8 + $0x48] sm:$0xff]  ;;  %v620_v0 = vld [vmem:[#allocation8 + $0x58] sm:$0xff]  ;;  %8961 = vst [vmem:[#allocation85_spill] sm:$0xff] %v7558_v52  ;;  %v619_v13 = vld [vmem:[#allocation8 + $0x50] sm:$0xff] }
 0x20d   :  { %v623_v54 = vld [vmem:[#allocation8 + $0x70] sm:$0xff] }
 0x20e   :  { %8958 = vst [vmem:[#allocation82_spill] sm:$0xff] %v7550_v26  ;;  %8959 = vst [vmem:[#allocation83_spill] sm:$0xff] %v7552_v30 }
 0x20f   :  { %5121 = vmatpush1.bf16.msra.mxu0 %v7532_v4  ;;  %5153 = vmatpush1.bf16.msra.mxu1 %v7534_v48  ;;  %v622_v4 = vld [vmem:[#allocation8 + $0x68] sm:$0xff]  ;;  %v624_v48 = vld [vmem:[#allocation8 + $0x78] sm:$0xff] }
 0x210   :  { %5123 = vmatprep.subr.bf16.mxu0 %v7538_v35  ;;  %5155 = vmatprep.subr.bf16.mxu1 %v7540_v43  ;;  %v7562_v42 = vpack.c.bf16 %v622_v4, %v618_v11  ;;  %v7564_v38 = vpack.c.bf16 %v624_v48, %v620_v0  ;;  %v626_v43 = vld [vmem:[#allocation8 + $0x88] sm:$0xff]  ;;  %v628_v35 = vld [vmem:[#allocation8 + $0x98] sm:$0xff]  ;;  %v7572_v11 = vpack.c.bf16 %v623_v54, %v619_v13  ;;  %v625_v0 = vld [vmem:[#allocation8 + $0x80] sm:$0xff] }
 0x211   :  { %v629_v4 = vld [vmem:[#allocation8 + $0xa0] sm:$0xff]  ;;  %v635_v13 = vld [vmem:[#allocation8 + $0xd0] sm:$0xff] }
 0x212   :  { %8962 = vst [vmem:[#allocation86_spill] sm:$0xff] %v7562_v42  ;;  %8963 = vst [vmem:[#allocation87_spill] sm:$0xff] %v7564_v38  ;;  %v7584_v55 = vpack.c.bf16 %v629_v4, %v625_v0  ;;  %v639_v54 = vld [vmem:[#allocation8 + $0xf0] sm:$0xff]  ;;  %v9084_v17 = vld [vmem:[#allocation88_spill] sm:$0xff] }
 0x213   :  { %5125 = vmatpush1.bf16.msra.mxu0 %v7544_v19  ;;  %5157 = vmatpush1.bf16.msra.mxu1 %v7546_v24  ;;  %v630_v19 = vld [vmem:[#allocation8 + $0xa8] sm:$0xff]  ;;  %v632_v24 = vld [vmem:[#allocation8 + $0xb8] sm:$0xff]  ;;  %8965 = vst [vmem:[#allocation89_spill] sm:$0xff] %v7572_v11  ;;  %v7598_v4 = vpack.c.bf16 %v639_v54, %v635_v13  ;;  %v649_v13 = vld [vmem:[#allocation8 + $0x140] sm:$0xff] }
 0x214   :  { %5159 = vmatprep.subr.bf16.mxu0 %v7550_v26  ;;  %5191 = vmatprep.subr.bf16.mxu1 %v7552_v30  ;;  %v7576_v48 = vpack.c.bf16 %v630_v19, %v626_v43  ;;  %v7578_v62 = vpack.c.bf16 %v632_v24, %v628_v35  ;;  %v634_v30 = vld [vmem:[#allocation8 + $0xc8] sm:$0xff]  ;;  %v636_v26 = vld [vmem:[#allocation8 + $0xd8] sm:$0xff]  ;;  %8968 = vst [vmem:[#allocation92_spill] sm:$0xff] %v7584_v55  ;;  %v633_v35 = vld [vmem:[#allocation8 + $0xc0] sm:$0xff] }
 0x215   :  { %v7586_v43 = vpack.c.bf16 %v631_v6, %v627_v40  ;;  %v637_v19 = vld [vmem:[#allocation8 + $0xe0] sm:$0xff]  ;;  %8973 = vst [vmem:[#allocation97_spill] sm:$0xff] %v7598_v4 }
 0x216   :  { %1005 = vmatmul.mubr.f32.vlgmr.msra.gmra.mrb[16].mxu0 %v8935_v31  ;;  %1076 = vmatmul.mubr.f32.vlgmr.msra.gmra.mrb[16].mxu1 %v8935_v31  ;;  %8966 = vst [vmem:[#allocation90_spill] sm:$0xff] %v7576_v48  ;;  %8967 = vst [vmem:[#allocation91_spill] sm:$0xff] %v7578_v62  ;;  %v7596_v0 = vpack.c.bf16 %v637_v19, %v633_v35  ;;  %v641_v40 = vld [vmem:[#allocation8 + $0x100] sm:$0xff] }
 0x217   :  { %5161 = vmatpush1.bf16.msra.mxu0 %v7556_v50  ;;  %5193 = vmatpush1.bf16.msra.mxu1 %v7558_v52  ;;  %v638_v50 = vld [vmem:[#allocation8 + $0xe8] sm:$0xff]  ;;  %v640_v52 = vld [vmem:[#allocation8 + $0xf8] sm:$0xff]  ;;  %8969 = vst [vmem:[#allocation93_spill] sm:$0xff] %v7586_v43  ;;  %v645_v6 = vld [vmem:[#allocation8 + $0x120] sm:$0xff] }
 0x218   :  { %5163 = vmatprep.subr.bf16.mxu0 %v7562_v42  ;;  %5195 = vmatprep.subr.bf16.mxu1 %v7564_v38  ;;  %v7590_v24 = vpack.c.bf16 %v638_v50, %v634_v30  ;;  %v7592_v56 = vpack.c.bf16 %v640_v52, %v636_v26  ;;  %v642_v38 = vld [vmem:[#allocation8 + $0x108] sm:$0xff]  ;;  %v644_v42 = vld [vmem:[#allocation8 + $0x118] sm:$0xff]  ;;  %8972 = vst [vmem:[#allocation96_spill] sm:$0xff] %v7596_v0  ;;  %v643_v50 = vld [vmem:[#allocation8 + $0x110] sm:$0xff] }
 0x219   :  { %1146 = vmatprep.mubr.f32.mxu0 %v8935_v31  ;;  %1217 = vmatprep.mubr.f32.mxu1 %v8935_v31  ;;  %v647_v52 = vld [vmem:[#allocation8 + $0x130] sm:$0xff]  ;;  %v7608_v35 = vpack.c.bf16 %v645_v6, %v641_v40  ;;  %v653_v54 = vld [vmem:[#allocation8 + $0x160] sm:$0xff] }
 0x21a   :  { %8970 = vst [vmem:[#allocation94_spill] sm:$0xff] %v7590_v24  ;;  %8971 = vst [vmem:[#allocation95_spill] sm:$0xff] %v7592_v56  ;;  %v7610_v19 = vpack.c.bf16 %v647_v52, %v643_v50  ;;  %v7620_v40 = vpack.c.bf16 %v653_v54, %v649_v13  ;;  %v657_v50 = vld [vmem:[#allocation8 + $0x180] sm:$0xff] }
 0x21b   :  { %5165 = vmatpush1.bf16.msra.mxu0 %v7570_v5  ;;  %5197 = vmatpush1.bf16.msra.mxu1 %v7572_v11  ;;  %v646_v5 = vld [vmem:[#allocation8 + $0x128] sm:$0xff]  ;;  %v648_v11 = vld [vmem:[#allocation8 + $0x138] sm:$0xff]  ;;  %8976 = vst [vmem:[#allocation100_spill] sm:$0xff] %v7608_v35  ;;  %v661_v52 = vld [vmem:[#allocation8 + $0x1a0] sm:$0xff] }
 0x21c   :  { %5167 = vmatprep.subr.bf16.mxu0 %v7576_v48  ;;  %5199 = vmatprep.subr.bf16.mxu1 %v7578_v62  ;;  %v7602_v26 = vpack.c.bf16 %v646_v5, %v642_v38  ;;  %v7604_v30 = vpack.c.bf16 %v648_v11, %v644_v42  ;;  %v650_v62 = vld [vmem:[#allocation8 + $0x148] sm:$0xff]  ;;  %v652_v48 = vld [vmem:[#allocation8 + $0x158] sm:$0xff]  ;;  %8977 = vst [vmem:[#allocation101_spill] sm:$0xff] %v7610_v19  ;;  %v651_v5 = vld [vmem:[#allocation8 + $0x150] sm:$0xff] }
 0x21d   :  { %v655_v11 = vld [vmem:[#allocation8 + $0x170] sm:$0xff]  ;;  %v7632_v13 = vpack.c.bf16 %v661_v52, %v657_v50 }
 0x21e   :  { %8974 = vst [vmem:[#allocation98_spill] sm:$0xff] %v7602_v26  ;;  %8975 = vst [vmem:[#allocation99_spill] sm:$0xff] %v7604_v30  ;;  %v7622_v6 = vpack.c.bf16 %v655_v11, %v651_v5  ;;  %v665_v5 = vld [vmem:[#allocation8 + $0x1c0] sm:$0xff]  ;;  %v671_v11 = vld [vmem:[#allocation8 + $0x1f0] sm:$0xff] }
 0x21f   :  { %5169 = vmatpush1.bf16.msra.mxu0 %v7584_v55  ;;  %5201 = vmatpush1.bf16.msra.mxu1 %v7586_v43  ;;  %v654_v55 = vld [vmem:[#allocation8 + $0x168] sm:$0xff]  ;;  %v656_v43 = vld [vmem:[#allocation8 + $0x178] sm:$0xff] }
 0x220   :  { %5171 = vmatprep.subr.bf16.mxu0 %v7590_v24  ;;  %5203 = vmatprep.subr.bf16.mxu1 %v7592_v56  ;;  %v7614_v42 = vpack.c.bf16 %v654_v55, %v650_v62  ;;  %v7616_v38 = vpack.c.bf16 %v656_v43, %v652_v48  ;;  %v658_v56 = vld [vmem:[#allocation8 + $0x188] sm:$0xff]  ;;  %v660_v24 = vld [vmem:[#allocation8 + $0x198] sm:$0xff]  ;;  %v659_v55 = vld [vmem:[#allocation8 + $0x190] sm:$0xff] }
 0x221   :  { %v663_v43 = vld [vmem:[#allocation8 + $0x1b0] sm:$0xff] }
 0x222   :  { %v7634_v54 = vpack.c.bf16 %v663_v43, %v659_v55 }
 0x223   :  { %5173 = vmatpush1.bf16.msra.mxu0 %v7596_v0  ;;  %5205 = vmatpush1.bf16.msra.mxu1 %v7598_v4  ;;  %v662_v0 = vld [vmem:[#allocation8 + $0x1a8] sm:$0xff]  ;;  %v664_v4 = vld [vmem:[#allocation8 + $0x1b8] sm:$0xff] }
 0x224   :  { %5175 = vmatprep.subr.bf16.mxu0 %v7602_v26  ;;  %5207 = vmatprep.subr.bf16.mxu1 %v7604_v30  ;;  %v7626_v48 = vpack.c.bf16 %v662_v0, %v658_v56  ;;  %v7628_v62 = vpack.c.bf16 %v664_v4, %v660_v24  ;;  %v666_v30 = vld [vmem:[#allocation8 + $0x1c8] sm:$0xff]  ;;  %v668_v26 = vld [vmem:[#allocation8 + $0x1d8] sm:$0xff]  ;;  %v669_v0 = vld [vmem:[#allocation8 + $0x1e0] sm:$0xff] }
 0x225   :  { %v667_v4 = vld [vmem:[#allocation8 + $0x1d0] sm:$0xff]  ;;  %v7644_v50 = vpack.c.bf16 %v669_v0, %v665_v5 }
 0x226   :  { %v7646_v52 = vpack.c.bf16 %v671_v11, %v667_v4 }
 0x227   :  { %5177 = vmatpush1.bf16.msra.mxu0 %v7608_v35  ;;  %5209 = vmatpush1.bf16.msra.mxu1 %v7610_v19  ;;  %v670_v35 = vld [vmem:[#allocation8 + $0x1e8] sm:$0xff]  ;;  %v672_v19 = vld [vmem:[#allocation8 + $0x1f8] sm:$0xff] }
 0x228   :  { %5179 = vmatprep.subr.bf16.mxu0 %v7614_v42  ;;  %5211 = vmatprep.subr.bf16.mxu1 %v7616_v38  ;;  %v7638_v24 = vpack.c.bf16 %v670_v35, %v666_v30  ;;  %v7640_v56 = vpack.c.bf16 %v672_v19, %v668_v26  ;;  %v8818_v26 = vsub.s32 1, %v7418_v61 }
 0x22a   :  { %v7698_v30 = vrot.slane %v7424_v63, %v8818_v26 }
 0x22b   :  { %5181 = vmatpush1.bf16.msra.mxu0 %v7620_v40  ;;  %5213 = vmatpush1.bf16.msra.mxu1 %v7622_v6 }
 0x22c   :  { %5183 = vmatprep.subr.bf16.mxu0 %v7626_v48  ;;  %5215 = vmatprep.subr.bf16.mxu1 %v7628_v62 }
 0x22f   :  { %5185 = vmatpush1.bf16.msra.mxu0 %v7632_v13  ;;  %5217 = vmatpush1.bf16.msra.mxu1 %v7634_v54 }
 0x230   :  { %5187 = vmatprep.subr.bf16.mxu0 %v7638_v24  ;;  %5219 = vmatprep.subr.bf16.mxu1 %v7640_v56 }
 0x233   :  { %5189 = vmatpush1.bf16.msra.mxu0 %v7644_v50  ;;  %5221 = vmatpush1.bf16.msra.mxu1 %v7646_v52 }
 0x234   :  { %5223 = vmatprep.subr.bf16.mxu0 %v7315_v3  ;;  %5255 = vmatprep.subr.bf16.mxu1 %v7317_v8 }
 0x236   :  { %4803 = vmatmul.mubr.msk.f32.vlgmr.msra.gmra.mrb[16].mxu0 %vm787_vm0, %v7455_v36  ;;  %4804 = vmatmul.mubr.msk.f32.vlgmr.msra.gmra.mrb[16].mxu1 %vm787_vm0, %v7455_v36 }
 0x237   :  { %5225 = vmatpush1.bf16.msra.mxu0 %v7319_v9  ;;  %5257 = vmatpush1.bf16.msra.mxu1 %v7322_v12 }
 0x238   :  { %5227 = vmatprep.subr.bf16.mxu0 %v7327_v16  ;;  %5259 = vmatprep.subr.bf16.mxu1 %v7329_v21 }
 0x239   :  { %1341 = vmatprep.mubr.f32.mxu0 %v8935_v31  ;;  %1412 = vmatprep.mubr.f32.mxu1 %v8935_v31 }
 0x23b   :  { %5229 = vmatpush1.bf16.msra.mxu0 %v7331_v22  ;;  %5261 = vmatpush1.bf16.msra.mxu1 %v7334_v25 }
 0x23c   :  { %5231 = vmatprep.subr.bf16.mxu0 %v7339_v29  ;;  %5263 = vmatprep.subr.bf16.mxu1 %v7341_v33 }
 0x23f   :  { %5233 = vmatpush1.bf16.msra.mxu0 %v7343_v34  ;;  %5265 = vmatpush1.bf16.msra.mxu1 %v7346_v37 }
 0x240   :  { %5235 = vmatprep.subr.bf16.mxu0 %v7351_v41  ;;  %5267 = vmatprep.subr.bf16.mxu1 %v7353_v45 }
 0x243   :  { %5237 = vmatpush1.bf16.msra.mxu0 %v7355_v46  ;;  %5269 = vmatpush1.bf16.msra.mxu1 %v7358_v49 }
 0x244   :  { %5239 = vmatprep.subr.bf16.mxu0 %v7363_v53  ;;  %5271 = vmatprep.subr.bf16.mxu1 %v7365_v58 }
 0x247   :  { %5241 = vmatpush1.bf16.msra.mxu0 %v7367_v59  ;;  %5273 = vmatpush1.bf16.msra.mxu1 %v7370_v60 }
 0x248   :  { %5243 = vmatprep.subr.bf16.mxu0 %v7375_v1  ;;  %5275 = vmatprep.subr.bf16.mxu1 %v7377_v7 }
 0x24b   :  { %5245 = vmatpush1.bf16.msra.mxu0 %v7379_v10  ;;  %5277 = vmatpush1.bf16.msra.mxu1 %v7382_v14 }
 0x24c   :  { %5247 = vmatprep.subr.bf16.mxu0 %v7387_v20  ;;  %5279 = vmatprep.subr.bf16.mxu1 %v7389_v27 }
 0x24f   :  { %5249 = vmatpush1.bf16.msra.mxu0 %v7391_v28  ;;  %5281 = vmatpush1.bf16.msra.mxu1 %v7394_v32  ;;  %v8978_v32 = vld [vmem:[#allocation51_spill] sm:$0xff] }
 0x250   :  { %5251 = vmatprep.subr.bf16.mxu0 %v7399_v39  ;;  %5283 = vmatprep.subr.bf16.mxu1 %v7401_v44 }
 0x253   :  { %5253 = vmatpush1.bf16.msra.mxu0 %v7403_v47  ;;  %5285 = vmatpush1.bf16.msra.mxu1 %v7406_v51 }
 0x254   :  { %5287 = vmatprep.subr.bf16.mxu0 %v7411_v57  ;;  %5319 = vmatprep.subr.bf16.mxu1 %v7413_v18 }
 0x2c9   :  { %v860_v35 = vpop.f32.mrb[2].mxu0  ;;  %v931_v19 = vpop.f32.mrb[2].mxu1 }
 0x2ca   :  { %v6574_v55 = vadd.f32 %v860_v35, %v7429_v2  ;;  %v862_v43 = vpop.f32.mrb[3].mxu0  ;;  %v933_v5 = vpop.f32.mrb[3].mxu1  ;;  %v6588_v18 = vadd.f32 %v931_v19, %v7437_v15 }
 0x2cb   :  { %v6575_v0 = vadd.f32 %v862_v43, %v7698_v30  ;;  %v6589_v57 = vadd.f32 %v933_v5, %v7442_v23  ;;  %v7707_v19 = vpop.permute.xlu1 %1268 }
 0x2cc   :  { %v1248_v4 = vmul.f32 0.5, %v6574_v55  ;;  %v789_v55 = vsel %vm787_vm0, %v8978_v32, 0.0  ;;  %8979 = vst [vmem:[#allocation51_spill] sm:$0xff] %v7707_v19  ;;  %vm1270_vm1 = vcmp.eq.s32.totalorder %v7707_v19, 1  ;;  %v788_v32 = vsel %vm787_vm0, %v7455_v36, 0.0  ;;  %v8985_v36 = vld [vmem:[#allocation56_spill] sm:$0xff] }
 0x2cd   :  { %v1252_v11 = vmul.f32 0.5, %v6575_v0  ;;  %v1257_v51 = vmul.f32 0.5, %v6589_v57  ;;  %v8997_v19 = vld [vmem:[#allocation68_spill] sm:$0xff] }
 0x2ce   :  { %6689 = vtanh.f32 %v1248_v4  ;;  %v8982_v4 = vld [vmem:[#allocation53_spill] sm:$0xff] }
 0x2cf   :  { %6691 = vtanh.f32 %v1252_v11  ;;  %v8983_v11 = vld [vmem:[#allocation54_spill] sm:$0xff] }
 0x2d0   :  { %6693 = vtanh.f32 %v6588_v18 }
 0x2d1   :  { %6695 = vtanh.f32 %v1257_v51 }
 0x2d8   :  { %v6690_v63 = vpop.eup %6689 }
 0x2d9   :  { %v6692_v26 = vpop.eup %6691  ;;  %v1250_v47 = vadd.f32 1.0, %v6690_v63  ;;  %v8984_v63 = vld [vmem:[#allocation55_spill] sm:$0xff] }
 0x2da   :  { %v1254_v44 = vadd.f32 1.0, %v6692_v26  ;;  %v6694_v2 = vpop.eup %6693 }
 0x2db   :  { %v1251_v35 = vmul.f32 0.5, %v1250_v47  ;;  %v6696_v51 = vpop.eup %6695 }
 0x2dc   :  { %v1255_v39 = vmul.f32 0.5, %v1254_v44  ;;  %v1259_v47 = vadd.f32 1.0, %v6696_v51  ;;  %v8991_v51 = vld [vmem:[#allocation62_spill] sm:$0xff] }
 0x2dd   :  { %v1262_v43 = vmul.f32 %v6694_v2, %v1251_v35  ;;  %v8981_v2 = vld [vmem:[#allocation52_spill] sm:$0xff]  ;;  %v8986_v35 = vld [vmem:[#allocation57_spill] sm:$0xff] }
 0x2de   :  { %v1261_v0 = vmul.f32 %v1255_v39, %v789_v55  ;;  %v1260_v26 = vmul.f32 0.5, %v1259_v47  ;;  %v8992_v47 = vld [vmem:[#allocation63_spill] sm:$0xff] }
 0x2e0   :  { %v1263_v18 = vadd.f32 %v1262_v43, %v1261_v0  ;;  %v8988_v43 = vld [vmem:[#allocation59_spill] sm:$0xff]  ;;  %v8989_v0 = vld [vmem:[#allocation60_spill] sm:$0xff] }
 0x2e2   :  { %6697 = vtanh.f32 %v1263_v18  ;;  %v7712_v57 = vsel %vm1270_vm1, %v1263_v18, %v789_v55  ;;  %v8987_v55 = vld [vmem:[#allocation58_spill] sm:$0xff]  ;;  %v8990_v18 = vld [vmem:[#allocation61_spill] sm:$0xff] }
 0x2e3   :  { %8980 = vst [vmem:[#allocation102_spill] sm:$0xff] %v7712_v57  ;;  %v9015_v57 = vld [vmem:[#allocation80_spill] sm:$0xff] }
 0x2ec   :  { %v6698_v44 = vpop.eup %6697 }
 0x2ed   :  { %v1265_v5 = vmul.f32 %v6698_v44, %v1260_v26  ;;  %v8993_v26 = vld [vmem:[#allocation64_spill] sm:$0xff]  ;;  %v8994_v44 = vld [vmem:[#allocation65_spill] sm:$0xff] }
 0x2ef   :  { %v7719_v39 = vsel %vm1270_vm1, %v1265_v5, %v788_v32  ;;  %v8995_v5 = vld [vmem:[#allocation66_spill] sm:$0xff]  ;;  %v8996_v32 = vld [vmem:[#allocation67_spill] sm:$0xff] }
 0x2f0   :  { %1342 = vmatmul.mubr.f32.vlgmr.msra.gmra.mrb[4].mxu0 %v7719_v39  ;;  %1413 = vmatmul.mubr.f32.vlgmr.msra.gmra.mrb[4].mxu1 %v7719_v39 }
 0x2f1   :  { %5289 = vmatpush1.bf16.msra.mxu0 %v8981_v2  ;;  %5321 = vmatpush1.bf16.msra.mxu1 %v8982_v4 }
 0x2f2   :  { %5291 = vmatprep.subr.bf16.mxu0 %v8983_v11  ;;  %5323 = vmatprep.subr.bf16.mxu1 %v8984_v63  ;;  %v9013_v11 = vld [vmem:[#allocation78_spill] sm:$0xff] }
 0x2f3   :  { %1487 = vmatprep.mubr.f32.mxu0 %v8935_v31  ;;  %1558 = vmatprep.mubr.f32.mxu1 %v8935_v31 }
 0x2f5   :  { %5293 = vmatpush1.bf16.msra.mxu0 %v8985_v36  ;;  %5325 = vmatpush1.bf16.msra.mxu1 %v8986_v35  ;;  %v9009_v35 = vld [vmem:[#allocation76_spill] sm:$0xff]  ;;  %v9010_v36 = vld [vmem:[#allocation77_spill] sm:$0xff] }
 0x2f6   :  { %5295 = vmatprep.subr.bf16.mxu0 %v8987_v55  ;;  %5327 = vmatprep.subr.bf16.mxu1 %v8988_v43  ;;  %v8998_v55 = vld [vmem:[#allocation69_spill] sm:$0xff]  ;;  %v8999_v43 = vld [vmem:[#allocation70_spill] sm:$0xff] }
 0x2f9   :  { %5297 = vmatpush1.bf16.msra.mxu0 %v8989_v0  ;;  %5329 = vmatpush1.bf16.msra.mxu1 %v8990_v18  ;;  %v9000_v0 = vld [vmem:[#allocation71_spill] sm:$0xff] }
 0x2fa   :  { %5299 = vmatprep.subr.bf16.mxu0 %v8991_v51  ;;  %5331 = vmatprep.subr.bf16.mxu1 %v8992_v47  ;;  %v737_v47 = vld [vmem:[%s8698_s7] sm:$0xf] }
 0x2fb   :  { %v9001_v51 = vld [vmem:[#allocation72_spill] sm:$0xff] }
 0x2fd   :  { %5301 = vmatpush1.bf16.msra.mxu0 %v8993_v26  ;;  %5333 = vmatpush1.bf16.msra.mxu1 %v8994_v44  ;;  %v9002_v26 = vld [vmem:[#allocation73_spill] sm:$0xff] }
 0x2fe   :  { %5303 = vmatprep.subr.bf16.mxu0 %v8995_v5  ;;  %5335 = vmatprep.subr.bf16.mxu1 %v8996_v32  ;;  %v9003_v5 = vsub.s32 0, %v7418_v61  ;;  %v9005_v32 = vld [vmem:[#allocation74_spill] sm:$0xff] }
 0x300   :  { %v7752_v44 = vrot.slane %v737_v47, %v9003_v5 }
 0x301   :  { %5305 = vmatpush1.bf16.msra.mxu0 %v8997_v19  ;;  %5337 = vmatpush1.bf16.msra.mxu1 %v8998_v55  ;;  %v9006_v19 = vld [vmem:[#allocation75_spill] sm:$0xff] }
 0x302   :  { %5307 = vmatprep.subr.bf16.mxu0 %v8999_v43  ;;  %5339 = vmatprep.subr.bf16.mxu1 %v9000_v0  ;;  %9004 = vst [vmem:[#allocation103_spill] sm:$0xff] %v7752_v44  ;;  %v9007_v43 = vsub.s32 1, %v7418_v61 }
 0x304   :  { %v7758_v55 = vrot.slane %v737_v47, %v9007_v43 }
 0x305   :  { %5309 = vmatpush1.bf16.msra.mxu0 %v9001_v51  ;;  %5341 = vmatpush1.bf16.msra.mxu1 %v9002_v26  ;;  %v9011_v51 = vsub.s32 2, %v7418_v61 }
 0x306   :  { %5311 = vmatprep.subr.bf16.mxu0 %v9005_v32  ;;  %5343 = vmatprep.subr.bf16.mxu1 %v9006_v19  ;;  %9008 = vst [vmem:[#allocation104_spill] sm:$0xff] %v7758_v55  ;;  %v9014_v19 = vld [vmem:[#allocation79_spill] sm:$0xff] }
 0x307   :  { %v7765_v5 = vrot.slane %v737_v47, %v9011_v51  ;;  %v9017_v51 = vsub.s32 3, %v7418_v61 }
 0x309   :  { %v1148_v0 = vpop.f32.mrb[16].mxu0  ;;  %v1219_v18 = vpop.f32.mrb[16].mxu1  ;;  %5313 = vmatpush1.bf16.msra.mxu0 %v9009_v35  ;;  %5345 = vmatpush1.bf16.msra.mxu1 %v9010_v36  ;;  %9012 = vst [vmem:[#allocation105_spill] sm:$0xff] %v7765_v5  ;;  %v9016_v35 = vld [vmem:[#allocation81_spill] sm:$0xff]  ;;  %v9018_v36 = vld [vmem:[#allocation82_spill] sm:$0xff] }
 0x30a   :  { %v1224_v26 = vadd.f32 %v1148_v0, %v7752_v44  ;;  %v1150_v63 = vpop.f32.mrb[17].mxu0  ;;  %v1221_v32 = vpop.f32.mrb[17].mxu1  ;;  %5315 = vmatprep.subr.bf16.mxu0 %v9013_v11  ;;  %5347 = vmatprep.subr.bf16.mxu1 %v9014_v19  ;;  %v1226_v0 = vadd.f32 %v1219_v18, %v7765_v5  ;;  %v7775_v44 = vrot.slane %v737_v47, %v9017_v51  ;;  %v9019_v11 = vld [vmem:[#allocation83_spill] sm:$0xff] }
 0x30b   :  { %v1225_v43 = vadd.f32 %v1150_v63, %v7758_v55 }
 0x30c   :  { %v1228_v4 = vmul.f32 0.5, %v1224_v26  ;;  %v1227_v63 = vadd.f32 %v1221_v32, %v7775_v44 }
 0x30d   :  { %v1232_v2 = vmul.f32 0.5, %v1225_v43  ;;  %5317 = vmatpush1.bf16.msra.mxu0 %v9015_v57  ;;  %5349 = vmatpush1.bf16.msra.mxu1 %v9016_v35 }
 0x30e   :  { %6699 = vtanh.f32 %v1228_v4  ;;  %5351 = vmatprep.subr.bf16.mxu0 %v9018_v36  ;;  %5383 = vmatprep.subr.bf16.mxu1 %v9019_v11  ;;  %v1237_v26 = vmul.f32 0.5, %v1227_v63  ;;  %v9026_v63 = vld [vmem:[#allocation90_spill] sm:$0xff] }
 0x30f   :  { %6701 = vtanh.f32 %v1232_v2 }
 0x310   :  { %6703 = vtanh.f32 %v1226_v0 }
 0x311   :  { %6705 = vtanh.f32 %v1237_v26  ;;  %v9027_v26 = vld [vmem:[#allocation91_spill] sm:$0xff] }
 0x318   :  { %v6700_v43 = vpop.eup %6699 }
 0x319   :  { %v6702_v55 = vpop.eup %6701  ;;  %v1230_v57 = vadd.f32 1.0, %v6700_v43  ;;  %v9028_v43 = vld [vmem:[#allocation92_spill] sm:$0xff] }
 0x31a   :  { %v1234_v35 = vadd.f32 1.0, %v6702_v55  ;;  %v6704_v18 = vpop.eup %6703  ;;  %v9022_v55 = vld [vmem:[#allocation86_spill] sm:$0xff] }
 0x31b   :  { %v1231_v4 = vmul.f32 0.5, %v1230_v57  ;;  %v6706_v11 = vpop.eup %6705  ;;  %v9020_v57 = vld [vmem:[#allocation84_spill] sm:$0xff] }
 0x31c   :  { %v1235_v5 = vmul.f32 0.5, %v1234_v35  ;;  %v1239_v2 = vadd.f32 1.0, %v6706_v11  ;;  %v9021_v35 = vld [vmem:[#allocation85_spill] sm:$0xff]  ;;  %v9024_v11 = vld [vmem:[#allocation88_spill] sm:$0xff] }
 0x31d   :  { %v1242_v61 = vmul.f32 %v6704_v18, %v1231_v4  ;;  %v9029_v4 = vld [vmem:[#allocation93_spill] sm:$0xff]  ;;  %v9030_v18 = vld [vmem:[#allocation94_spill] sm:$0xff] }
 0x31e   :  { %v1241_v47 = vmul.f32 0.0, %v1235_v5  ;;  %v1240_v0 = vmul.f32 0.5, %v1239_v2  ;;  %v9023_v5 = vld [vmem:[#allocation87_spill] sm:$0xff]  ;;  %v9033_v2 = vld [vmem:[#allocation97_spill] sm:$0xff] }
 0x320   :  { %v7780_v51 = vadd.f32 %v1242_v61, %v1241_v47  ;;  %v9031_v61 = vld [vmem:[#allocation95_spill] sm:$0xff]  ;;  %v9032_v47 = vld [vmem:[#allocation96_spill] sm:$0xff] }
 0x322   :  { %6707 = vtanh.f32 %v7780_v51 }
 0x32c   :  { %v6708_v36 = vpop.eup %6707 }
 0x32d   :  { %v7783_v32 = vmul.f32 %v6708_v36, %v1240_v0  ;;  %v9025_v36 = vld [vmem:[#allocation89_spill] sm:$0xff]  ;;  %v9034_v0 = vld [vmem:[#allocation98_spill] sm:$0xff] }
 0x32f   :  { %4805 = vmatmul.mubr.msk.f32.vlgmr.msra.gmra.mrb[18].mxu0 %vm787_vm0, %v7783_v32  ;;  %4806 = vmatmul.mubr.msk.f32.vlgmr.msra.gmra.mrb[18].mxu1 %vm787_vm0, %v7783_v32 }
 0x330   :  { %5353 = vmatpush1.bf16.msra.mxu0 %v9020_v57  ;;  %5385 = vmatpush1.bf16.msra.mxu1 %v9021_v35 }
 0x331   :  { %5355 = vmatprep.subr.bf16.mxu0 %v9022_v55  ;;  %5387 = vmatprep.subr.bf16.mxu1 %v9023_v5 }
 0x332   :  { %1629 = vmatprep.mubr.f32.mxu0 %v8935_v31  ;;  %1700 = vmatprep.mubr.f32.mxu1 %v8935_v31 }
 0x334   :  { %5357 = vmatpush1.bf16.msra.mxu0 %v9024_v11  ;;  %5389 = vmatpush1.bf16.msra.mxu1 %v9025_v36  ;;  %v9035_v11 = vld [vmem:[#allocation99_spill] sm:$0xff]  ;;  %v9036_v36 = vld [vmem:[#allocation100_spill] sm:$0xff] }
 0x335   :  { %5359 = vmatprep.subr.bf16.mxu0 %v9026_v63  ;;  %5391 = vmatprep.subr.bf16.mxu1 %v9027_v26  ;;  %v9037_v63 = vld [vmem:[#allocation101_spill] sm:$0xff] }
 0x338   :  { %5361 = vmatpush1.bf16.msra.mxu0 %v9028_v43  ;;  %5393 = vmatpush1.bf16.msra.mxu1 %v9029_v4 }
 0x339   :  { %5363 = vmatprep.subr.bf16.mxu0 %v9030_v18  ;;  %5395 = vmatprep.subr.bf16.mxu1 %v9031_v61 }
 0x33c   :  { %5365 = vmatpush1.bf16.msra.mxu0 %v9032_v47  ;;  %5397 = vmatpush1.bf16.msra.mxu1 %v9033_v2 }
 0x33d   :  { %5367 = vmatprep.subr.bf16.mxu0 %v9034_v0  ;;  %5399 = vmatprep.subr.bf16.mxu1 %v9035_v11 }
 0x340   :  { %5369 = vmatpush1.bf16.msra.mxu0 %v9036_v36  ;;  %5401 = vmatpush1.bf16.msra.mxu1 %v9037_v63 }
 0x341   :  { %5371 = vmatprep.subr.bf16.mxu0 %v7614_v42  ;;  %5403 = vmatprep.subr.bf16.mxu1 %v7616_v38 }
 0x344   :  { %5373 = vmatpush1.bf16.msra.mxu0 %v7620_v40  ;;  %5405 = vmatpush1.bf16.msra.mxu1 %v7622_v6 }
 0x345   :  { %5375 = vmatprep.subr.bf16.mxu0 %v7626_v48  ;;  %5407 = vmatprep.subr.bf16.mxu1 %v7628_v62 }
 0x348   :  { %5377 = vmatpush1.bf16.msra.mxu0 %v7632_v13  ;;  %5409 = vmatpush1.bf16.msra.mxu1 %v7634_v54 }
 0x349   :  { %5379 = vmatprep.subr.bf16.mxu0 %v7638_v24  ;;  %5411 = vmatprep.subr.bf16.mxu1 %v7640_v56 }
 0x34c   :  { %5381 = vmatpush1.bf16.msra.mxu0 %v7644_v50  ;;  %5413 = vmatpush1.bf16.msra.mxu1 %v7646_v52 }
 0x34d   :  { %5415 = vmatprep.subr.bf16.mxu0 %v7315_v3  ;;  %5447 = vmatprep.subr.bf16.mxu1 %v7317_v8 }
 0x34f   :  { %1630 = vmatmul.mubr.f32.vlgmr.msra.gmra.mrb[18].mxu0 %v7719_v39  ;;  %1701 = vmatmul.mubr.f32.vlgmr.msra.gmra.mrb[18].mxu1 %v7719_v39 }
 0x350   :  { %5417 = vmatpush1.bf16.msra.mxu0 %v7319_v9  ;;  %5449 = vmatpush1.bf16.msra.mxu1 %v7322_v12 }
 0x351   :  { %5419 = vmatprep.subr.bf16.mxu0 %v7327_v16  ;;  %5451 = vmatprep.subr.bf16.mxu1 %v7329_v21 }
 0x352   :  { %1824 = vmatprep.mubr.f32.mxu0 %v8935_v31  ;;  %1895 = vmatprep.mubr.f32.mxu1 %v8935_v31 }
 0x354   :  { %5421 = vmatpush1.bf16.msra.mxu0 %v7331_v22  ;;  %5453 = vmatpush1.bf16.msra.mxu1 %v7334_v25 }
 0x355   :  { %5423 = vmatprep.subr.bf16.mxu0 %v7339_v29  ;;  %5455 = vmatprep.subr.bf16.mxu1 %v7341_v33 }
 0x358   :  { %5425 = vmatpush1.bf16.msra.mxu0 %v7343_v34  ;;  %5457 = vmatpush1.bf16.msra.mxu1 %v7346_v37 }
 0x359   :  { %5427 = vmatprep.subr.bf16.mxu0 %v7351_v41  ;;  %5459 = vmatprep.subr.bf16.mxu1 %v7353_v45 }
 0x35c   :  { %5429 = vmatpush1.bf16.msra.mxu0 %v7355_v46  ;;  %5461 = vmatpush1.bf16.msra.mxu1 %v7358_v49  ;;  %v9045_v49 = vld [vmem:[#allocation50_spill] sm:$0xff] }
 0x35d   :  { %5431 = vmatprep.subr.bf16.mxu0 %v7363_v53  ;;  %5463 = vmatprep.subr.bf16.mxu1 %v7365_v58  ;;  %v9038_v53 = vld [vmem:[#allocation43_spill] sm:$0xff]  ;;  %v9039_v58 = vld [vmem:[#allocation44_spill] sm:$0xff] }
 0x360   :  { %5433 = vmatpush1.bf16.msra.mxu0 %v7367_v59  ;;  %5465 = vmatpush1.bf16.msra.mxu1 %v7370_v60  ;;  %v9040_v59 = vld [vmem:[#allocation45_spill] sm:$0xff]  ;;  %v9041_v60 = vld [vmem:[#allocation46_spill] sm:$0xff] }
 0x361   :  { %5435 = vmatprep.subr.bf16.mxu0 %v7375_v1  ;;  %5467 = vmatprep.subr.bf16.mxu1 %v7377_v7  ;;  %v9042_v1 = vld [vmem:[#allocation47_spill] sm:$0xff]  ;;  %v9043_v7 = vld [vmem:[#allocation48_spill] sm:$0xff] }
 0x364   :  { %5437 = vmatpush1.bf16.msra.mxu0 %v7379_v10  ;;  %5469 = vmatpush1.bf16.msra.mxu1 %v7382_v14  ;;  %v9044_v10 = vld [vmem:[#allocation49_spill] sm:$0xff] }
 0x365   :  { %5439 = vmatprep.subr.bf16.mxu0 %v7387_v20  ;;  %5471 = vmatprep.subr.bf16.mxu1 %v7389_v27 }
 0x368   :  { %5441 = vmatpush1.bf16.msra.mxu0 %v7391_v28  ;;  %5473 = vmatpush1.bf16.msra.mxu1 %v9038_v53 }
 0x369   :  { %5443 = vmatprep.subr.bf16.mxu0 %v9039_v58  ;;  %5475 = vmatprep.subr.bf16.mxu1 %v9040_v59 }
 0x36c   :  { %5445 = vmatpush1.bf16.msra.mxu0 %v9041_v60  ;;  %5477 = vmatpush1.bf16.msra.mxu1 %v9042_v1 }
 0x36d   :  { %5479 = vmatprep.subr.bf16.mxu0 %v9043_v7  ;;  %5511 = vmatprep.subr.bf16.mxu1 %v9044_v10 }
 0x3c3   :  { %v1343_v14 = vpop.f32.mrb[4].mxu0  ;;  %v1414_v20 = vpop.f32.mrb[4].mxu1 }
 0x3c4   :  { %v6576_v27 = vadd.f32 %v1343_v14, %v9045_v49  ;;  %v1345_v46 = vpop.f32.mrb[5].mxu0  ;;  %v1416_v28 = vpop.f32.mrb[5].mxu1  ;;  %v6590_v59 = vadd.f32 %v1414_v20, %v7437_v15  ;;  %v9053_v20 = vld [vmem:[#allocation56_spill] sm:$0xff] }
 0x3c5   :  { %v6577_v53 = vadd.f32 %v1345_v46, %v7698_v30  ;;  %v6591_v1 = vadd.f32 %v1416_v28, %v7442_v23  ;;  %v7865_v46 = vpop.permute.xlu0 %1751  ;;  %v9054_v28 = vld [vmem:[#allocation57_spill] sm:$0xff] }
 0x3c6   :  { %v1731_v45 = vmul.f32 0.5, %v6576_v27  ;;  %9046 = vst [vmem:[#allocation84_spill] sm:$0xff] %v7865_v46  ;;  %vm1753_vm2 = vcmp.eq.s32.totalorder %v7865_v46, 1  ;;  %v9065_v46 = vld [vmem:[#allocation68_spill] sm:$0xff] }
 0x3c7   :  { %v1735_v58 = vmul.f32 0.5, %v6577_v53  ;;  %v1740_v7 = vmul.f32 0.5, %v6591_v1  ;;  %v9047_v53 = vld [vmem:[#allocation102_spill] sm:$0xff] }
 0x3c8   :  { %6709 = vtanh.f32 %v1731_v45 }
 0x3c9   :  { %6711 = vtanh.f32 %v1735_v58 }
 0x3ca   :  { %6713 = vtanh.f32 %v6590_v59 }
 0x3cb   :  { %6715 = vtanh.f32 %v1740_v7 }
 0x3d2   :  { %v6710_v60 = vpop.eup %6709 }
 0x3d3   :  { %v6712_v10 = vpop.eup %6711  ;;  %v1733_v41 = vadd.f32 1.0, %v6710_v60 }
 0x3d4   :  { %v1737_v37 = vadd.f32 1.0, %v6712_v10  ;;  %v6714_v49 = vpop.eup %6713  ;;  %v9052_v10 = vld [vmem:[#allocation55_spill] sm:$0xff] }
 0x3d5   :  { %v1734_v14 = vmul.f32 0.5, %v1733_v41  ;;  %v6716_v59 = vpop.eup %6715 }
 0x3d6   :  { %v1738_v34 = vmul.f32 0.5, %v1737_v37  ;;  %v1742_v60 = vadd.f32 1.0, %v6716_v59  ;;  %v9060_v59 = vld [vmem:[#allocation63_spill] sm:$0xff] }
 0x3d7   :  { %v1745_v33 = vmul.f32 %v6714_v49, %v1734_v14  ;;  %v9051_v49 = vld [vmem:[#allocation54_spill] sm:$0xff]  ;;  %v9056_v14 = vld [vmem:[#allocation59_spill] sm:$0xff] }
 0x3d8   :  { %v1744_v45 = vmul.f32 %v1738_v34, %v9047_v53  ;;  %v1743_v1 = vmul.f32 0.5, %v1742_v60  ;;  %v9050_v34 = vld [vmem:[#allocation53_spill] sm:$0xff]  ;;  %v9061_v60 = vld [vmem:[#allocation64_spill] sm:$0xff] }
 0x3da   :  { %v1746_v27 = vadd.f32 %v1745_v33, %v1744_v45  ;;  %v9049_v33 = vld [vmem:[#allocation52_spill] sm:$0xff]  ;;  %v9058_v45 = vld [vmem:[#allocation61_spill] sm:$0xff] }
 0x3dc   :  { %6717 = vtanh.f32 %v1746_v27  ;;  %v7872_v58 = vsel %vm1753_vm2, %v1746_v27, %v9047_v53  ;;  %v9057_v53 = vld [vmem:[#allocation60_spill] sm:$0xff]  ;;  %v9059_v27 = vld [vmem:[#allocation62_spill] sm:$0xff] }
 0x3dd   :  { %9048 = vst [vmem:[#allocation85_spill] sm:$0xff] %v7872_v58 }
 0x3e6   :  { %v6718_v41 = vpop.eup %6717 }
 0x3e7   :  { %v1748_v7 = vmul.f32 %v6718_v41, %v1743_v1  ;;  %v9062_v1 = vld [vmem:[#allocation65_spill] sm:$0xff]  ;;  %v9063_v41 = vld [vmem:[#allocation66_spill] sm:$0xff] }
 0x3e9   :  { %v7877_v37 = vsel %vm1753_vm2, %v1748_v7, %v7719_v39  ;;  %v9055_v39 = vld [vmem:[#allocation58_spill] sm:$0xff]  ;;  %v9064_v7 = vld [vmem:[#allocation67_spill] sm:$0xff] }
 0x3ea   :  { %1825 = vmatmul.mubr.f32.vlgmr.msra.gmra.mrb[6].mxu0 %v7877_v37  ;;  %1896 = vmatmul.mubr.f32.vlgmr.msra.gmra.mrb[6].mxu1 %v7877_v37 }
 0x3eb   :  { %5481 = vmatpush1.bf16.msra.mxu0 %v9049_v33  ;;  %5513 = vmatpush1.bf16.msra.mxu1 %v9050_v34 }
 0x3ec   :  { %5483 = vmatprep.subr.bf16.mxu0 %v9051_v49  ;;  %5515 = vmatprep.subr.bf16.mxu1 %v9052_v10 }
 0x3ed   :  { %1970 = vmatprep.mubr.f32.mxu0 %v8935_v31  ;;  %2041 = vmatprep.mubr.f32.mxu1 %v8935_v31 }
 0x3ef   :  { %5485 = vmatpush1.bf16.msra.mxu0 %v9053_v20  ;;  %5517 = vmatpush1.bf16.msra.mxu1 %v9054_v28  ;;  %v9081_v20 = vld [vmem:[#allocation104_spill] sm:$0xff] }
 0x3f0   :  { %5487 = vmatprep.subr.bf16.mxu0 %v9055_v39  ;;  %5519 = vmatprep.subr.bf16.mxu1 %v9056_v14  ;;  %v9066_v39 = vld [vmem:[#allocation69_spill] sm:$0xff]  ;;  %v9067_v14 = vld [vmem:[#allocation70_spill] sm:$0xff] }
 0x3f3   :  { %5489 = vmatpush1.bf16.msra.mxu0 %v9057_v53  ;;  %5521 = vmatpush1.bf16.msra.mxu1 %v9058_v45  ;;  %v9068_v53 = vld [vmem:[#allocation71_spill] sm:$0xff]  ;;  %v9069_v45 = vld [vmem:[#allocation72_spill] sm:$0xff] }
 0x3f4   :  { %5491 = vmatprep.subr.bf16.mxu0 %v9059_v27  ;;  %5523 = vmatprep.subr.bf16.mxu1 %v9060_v59  ;;  %v9070_v27 = vld [vmem:[#allocation73_spill] sm:$0xff]  ;;  %v9071_v59 = vld [vmem:[#allocation74_spill] sm:$0xff] }
 0x3f7   :  { %5493 = vmatpush1.bf16.msra.mxu0 %v9061_v60  ;;  %5525 = vmatpush1.bf16.msra.mxu1 %v9062_v1  ;;  %v9072_v60 = vld [vmem:[#allocation75_spill] sm:$0xff]  ;;  %v9073_v1 = vld [vmem:[#allocation76_spill] sm:$0xff] }
 0x3f8   :  { %5495 = vmatprep.subr.bf16.mxu0 %v9063_v41  ;;  %5527 = vmatprep.subr.bf16.mxu1 %v9064_v7  ;;  %v9074_v41 = vld [vmem:[#allocation77_spill] sm:$0xff]  ;;  %v9075_v7 = vld [vmem:[#allocation78_spill] sm:$0xff] }
 0x3fb   :  { %5497 = vmatpush1.bf16.msra.mxu0 %v9065_v46  ;;  %5529 = vmatpush1.bf16.msra.mxu1 %v9066_v39  ;;  %v9076_v39 = vld [vmem:[#allocation80_spill] sm:$0xff]  ;;  %v9080_v46 = vld [vmem:[#allocation103_spill] sm:$0xff] }
 0x3fc   :  { %5499 = vmatprep.subr.bf16.mxu0 %v9067_v14  ;;  %5531 = vmatprep.subr.bf16.mxu1 %v9068_v53  ;;  %v9077_v14 = vld [vmem:[#allocation81_spill] sm:$0xff]  ;;  %v9078_v53 = vld [vmem:[#allocation82_spill] sm:$0xff] }
 0x3ff   :  { %5501 = vmatpush1.bf16.msra.mxu0 %v9069_v45  ;;  %5533 = vmatpush1.bf16.msra.mxu1 %v9070_v27  ;;  %v9079_v45 = vld [vmem:[#allocation83_spill] sm:$0xff] }
 0x400   :  { %5503 = vmatprep.subr.bf16.mxu0 %v9071_v59  ;;  %5535 = vmatprep.subr.bf16.mxu1 %v9072_v60 }
 0x403   :  { %5505 = vmatpush1.bf16.msra.mxu0 %v9073_v1  ;;  %5537 = vmatpush1.bf16.msra.mxu1 %v9074_v41 }
 0x404   :  { %5507 = vmatprep.subr.bf16.mxu0 %v9075_v7  ;;  %5539 = vmatprep.subr.bf16.mxu1 %v9014_v19  ;;  %v9082_v19 = vld [vmem:[#allocation105_spill] sm:$0xff] }
 0x407   :  { %5509 = vmatpush1.bf16.msra.mxu0 %v9076_v39  ;;  %5541 = vmatpush1.bf16.msra.mxu1 %v9077_v14 }
 0x408   :  { %5543 = vmatprep.subr.bf16.mxu0 %v9078_v53  ;;  %5575 = vmatprep.subr.bf16.mxu1 %v9079_v45 }
 0x422   :  { %v1631_v27 = vpop.f32.mrb[18].mxu0  ;;  %v1702_v59 = vpop.f32.mrb[18].mxu1 }
 0x423   :  { %v1707_v60 = vadd.f32 %v1631_v27, %v9080_v46  ;;  %v1633_v28 = vpop.f32.mrb[19].mxu0  ;;  %v1704_v1 = vpop.f32.mrb[19].mxu1  ;;  %v1709_v49 = vadd.f32 %v1702_v59, %v9082_v19 }
 0x424   :  { %v1708_v41 = vadd.f32 %v1633_v28, %v9081_v20  ;;  %v1710_v14 = vadd.f32 %v1704_v1, %v7775_v44  ;;  %v1247_v28 = vsel %vm787_vm0, %v7780_v51, 0.0 }
 0x425   :  { %v1711_v10 = vmul.f32 0.5, %v1707_v60 }
 0x426   :  { %v1715_v7 = vmul.f32 0.5, %v1708_v41  ;;  %v1720_v53 = vmul.f32 0.5, %v1710_v14 }
 0x427   :  { %6719 = vtanh.f32 %v1711_v10 }
 0x428   :  { %6721 = vtanh.f32 %v1715_v7  ;;  %v9089_v7 = vld [vmem:[#allocation27_spill] sm:$0xff] }
 0x429   :  { %6723 = vtanh.f32 %v1709_v49  ;;  %v9095_v49 = vld [vmem:[#allocation33_spill] sm:$0xff] }
 0x42a   :  { %6725 = vtanh.f32 %v1720_v53 }
 0x431   :  { %v6720_v39 = vpop.eup %6719 }
 0x432   :  { %v6722_v45 = vpop.eup %6721  ;;  %v1713_v34 = vadd.f32 1.0, %v6720_v39 }
 0x433   :  { %v1717_v33 = vadd.f32 1.0, %v6722_v45  ;;  %v6724_v46 = vpop.eup %6723 }
 0x434   :  { %v1714_v27 = vmul.f32 0.5, %v1713_v34  ;;  %v6726_v14 = vpop.eup %6725  ;;  %v9088_v34 = vld [vmem:[#allocation26_spill] sm:$0xff] }
 0x435   :  { %v1718_v58 = vmul.f32 0.5, %v1717_v33  ;;  %v1722_v41 = vadd.f32 1.0, %v6726_v14  ;;  %v1246_v33 = vsel %vm787_vm0, %v7783_v32, 0.0  ;;  %v9085_v32 = vld [vmem:[#allocation89_spill] sm:$0xff]  ;;  %v9096_v14 = vld [vmem:[#allocation34_spill] sm:$0xff] }
 0x436   :  { %v1725_v10 = vmul.f32 %v6724_v46, %v1714_v27  ;;  %v9086_v46 = vld [vmem:[#allocation90_spill] sm:$0xff]  ;;  %v9090_v27 = vld [vmem:[#allocation28_spill] sm:$0xff] }
 0x437   :  { %v1724_v60 = vmul.f32 %v1718_v58, %v1247_v28  ;;  %v1723_v39 = vmul.f32 0.5, %v1722_v41  ;;  %v9087_v58 = vld [vmem:[#allocation25_spill] sm:$0xff]  ;;  %v9097_v41 = vld [vmem:[#allocation35_spill] sm:$0xff] }
 0x439   :  { %v1726_v59 = vadd.f32 %v1725_v10, %v1724_v60  ;;  %v9092_v10 = vld [vmem:[#allocation30_spill] sm:$0xff]  ;;  %v9093_v60 = vld [vmem:[#allocation31_spill] sm:$0xff] }
 0x43b   :  { %6727 = vtanh.f32 %v1726_v59  ;;  %v7924_v1 = vsel %vm1270_vm1, %v1726_v59, %v1247_v28  ;;  %v9091_v28 = vld [vmem:[#allocation29_spill] sm:$0xff]  ;;  %v9094_v59 = vld [vmem:[#allocation32_spill] sm:$0xff] }
 0x445   :  { %v6728_v45 = vpop.eup %6727 }
 0x446   :  { %v1728_v53 = vmul.f32 %v6728_v45, %v1723_v39  ;;  %v9098_v39 = vld [vmem:[#allocation36_spill] sm:$0xff]  ;;  %v9099_v45 = vld [vmem:[#allocation37_spill] sm:$0xff] }
 0x448   :  { %v7931_v51 = vsel %vm1270_vm1, %v1728_v53, %v1246_v33  ;;  %v9100_v53 = vld [vmem:[#allocation38_spill] sm:$0xff]  ;;  %v9101_v33 = vld [vmem:[#allocation39_spill] sm:$0xff] }
 0x449   :  { %1971 = vmatmul.mubr.f32.vlgmr.msra.gmra.mrb[20].mxu0 %v7931_v51  ;;  %2042 = vmatmul.mubr.f32.vlgmr.msra.gmra.mrb[20].mxu1 %v7931_v51 }
 0x44a   :  { %5545 = vmatpush1.bf16.msra.mxu0 %v9020_v57  ;;  %5577 = vmatpush1.bf16.msra.mxu1 %v9021_v35 }
 0x44b   :  { %5547 = vmatprep.subr.bf16.mxu0 %v9022_v55  ;;  %5579 = vmatprep.subr.bf16.mxu1 %v9023_v5 }
 0x44c   :  { %2112 = vmatprep.mubr.f32.mxu0 %v8935_v31  ;;  %2183 = vmatprep.mubr.f32.mxu1 %v8935_v31 }
 0x44e   :  { %5549 = vmatpush1.bf16.msra.mxu0 %v9084_v17  ;;  %5581 = vmatpush1.bf16.msra.mxu1 %v9085_v32 }
 0x44f   :  { %5551 = vmatprep.subr.bf16.mxu0 %v9086_v46  ;;  %5583 = vmatprep.subr.bf16.mxu1 %v9027_v26 }
 0x452   :  { %5553 = vmatpush1.bf16.msra.mxu0 %v9028_v43  ;;  %5585 = vmatpush1.bf16.msra.mxu1 %v9029_v4 }
 0x453   :  { %5555 = vmatprep.subr.bf16.mxu0 %v9030_v18  ;;  %5587 = vmatprep.subr.bf16.mxu1 %v9031_v61 }
 0x456   :  { %5557 = vmatpush1.bf16.msra.mxu0 %v9032_v47  ;;  %5589 = vmatpush1.bf16.msra.mxu1 %v9033_v2 }
 0x457   :  { %5559 = vmatprep.subr.bf16.mxu0 %v9034_v0  ;;  %5591 = vmatprep.subr.bf16.mxu1 %v9035_v11 }
 0x45a   :  { %5561 = vmatpush1.bf16.msra.mxu0 %v9036_v36  ;;  %5593 = vmatpush1.bf16.msra.mxu1 %v9037_v63 }
 0x45b   :  { %5563 = vmatprep.subr.bf16.mxu0 %v7614_v42  ;;  %5595 = vmatprep.subr.bf16.mxu1 %v7616_v38 }
 0x45e   :  { %5565 = vmatpush1.bf16.msra.mxu0 %v7620_v40  ;;  %5597 = vmatpush1.bf16.msra.mxu1 %v7622_v6 }
 0x45f   :  { %5567 = vmatprep.subr.bf16.mxu0 %v7626_v48  ;;  %5599 = vmatprep.subr.bf16.mxu1 %v7628_v62 }
 0x462   :  { %5569 = vmatpush1.bf16.msra.mxu0 %v7632_v13  ;;  %5601 = vmatpush1.bf16.msra.mxu1 %v7634_v54 }
 0x463   :  { %5571 = vmatprep.subr.bf16.mxu0 %v7638_v24  ;;  %5603 = vmatprep.subr.bf16.mxu1 %v7640_v56 }
 0x466   :  { %5573 = vmatpush1.bf16.msra.mxu0 %v7644_v50  ;;  %5605 = vmatpush1.bf16.msra.mxu1 %v7646_v52 }
 0x467   :  { %5607 = vmatprep.subr.bf16.mxu0 %v7315_v3  ;;  %5639 = vmatprep.subr.bf16.mxu1 %v7317_v8 }
 0x469   :  { %2113 = vmatmul.mubr.f32.vlgmr.msra.gmra.mrb[20].mxu0 %v7877_v37  ;;  %2184 = vmatmul.mubr.f32.vlgmr.msra.gmra.mrb[20].mxu1 %v7877_v37 }
 0x46a   :  { %5609 = vmatpush1.bf16.msra.mxu0 %v7319_v9  ;;  %5641 = vmatpush1.bf16.msra.mxu1 %v7322_v12 }
 0x46b   :  { %5611 = vmatprep.subr.bf16.mxu0 %v7327_v16  ;;  %5643 = vmatprep.subr.bf16.mxu1 %v7329_v21 }
 0x46c   :  { %2307 = vmatprep.mubr.f32.mxu0 %v8935_v31  ;;  %2378 = vmatprep.mubr.f32.mxu1 %v8935_v31 }
 0x46e   :  { %5613 = vmatpush1.bf16.msra.mxu0 %v7331_v22  ;;  %5645 = vmatpush1.bf16.msra.mxu1 %v7334_v25 }
 0x46f   :  { %5615 = vmatprep.subr.bf16.mxu0 %v7339_v29  ;;  %5647 = vmatprep.subr.bf16.mxu1 %v9087_v58 }
 0x472   :  { %5617 = vmatpush1.bf16.msra.mxu0 %v9088_v34  ;;  %5649 = vmatpush1.bf16.msra.mxu1 %v9089_v7 }
 0x473   :  { %5619 = vmatprep.subr.bf16.mxu0 %v9090_v27  ;;  %5651 = vmatprep.subr.bf16.mxu1 %v9091_v28  ;;  %v9102_v28 = vld [vmem:[#allocation40_spill] sm:$0xff]  ;;  %v9112_v27 = vld [vmem:[#allocation50_spill] sm:$0xff] }
 0x476   :  { %5621 = vmatpush1.bf16.msra.mxu0 %v9092_v10  ;;  %5653 = vmatpush1.bf16.msra.mxu1 %v9093_v60  ;;  %v9103_v10 = vld [vmem:[#allocation41_spill] sm:$0xff]  ;;  %v9104_v60 = vld [vmem:[#allocation42_spill] sm:$0xff] }
 0x477   :  { %5623 = vmatprep.subr.bf16.mxu0 %v9094_v59  ;;  %5655 = vmatprep.subr.bf16.mxu1 %v9095_v49  ;;  %v9105_v59 = vld [vmem:[#allocation43_spill] sm:$0xff]  ;;  %v9106_v49 = vld [vmem:[#allocation44_spill] sm:$0xff] }
 0x47a   :  { %5625 = vmatpush1.bf16.msra.mxu0 %v9096_v14  ;;  %5657 = vmatpush1.bf16.msra.mxu1 %v9097_v41  ;;  %v9107_v14 = vld [vmem:[#allocation45_spill] sm:$0xff]  ;;  %v9108_v41 = vld [vmem:[#allocation46_spill] sm:$0xff] }
 0x47b   :  { %5627 = vmatprep.subr.bf16.mxu0 %v9098_v39  ;;  %5659 = vmatprep.subr.bf16.mxu1 %v9099_v45  ;;  %v9109_v39 = vld [vmem:[#allocation47_spill] sm:$0xff]  ;;  %v9110_v45 = vld [vmem:[#allocation48_spill] sm:$0xff] }
 0x47e   :  { %5629 = vmatpush1.bf16.msra.mxu0 %v9100_v53  ;;  %5661 = vmatpush1.bf16.msra.mxu1 %v9101_v33  ;;  %v9111_v53 = vld [vmem:[#allocation49_spill] sm:$0xff] }
 0x47f   :  { %5631 = vmatprep.subr.bf16.mxu0 %v9102_v28  ;;  %5663 = vmatprep.subr.bf16.mxu1 %v9103_v10 }
 0x482   :  { %5633 = vmatpush1.bf16.msra.mxu0 %v9104_v60  ;;  %5665 = vmatpush1.bf16.msra.mxu1 %v9105_v59 }
 0x483   :  { %5635 = vmatprep.subr.bf16.mxu0 %v9106_v49  ;;  %5667 = vmatprep.subr.bf16.mxu1 %v9107_v14 }
 0x486   :  { %5637 = vmatpush1.bf16.msra.mxu0 %v9108_v41  ;;  %5669 = vmatpush1.bf16.msra.mxu1 %v9109_v39 }
 0x487   :  { %5671 = vmatprep.subr.bf16.mxu0 %v9110_v45  ;;  %5703 = vmatprep.subr.bf16.mxu1 %v9111_v53 }
 0x4bd   :  { %v1826_v33 = vpop.f32.mrb[6].mxu0  ;;  %v1897_v28 = vpop.f32.mrb[6].mxu1 }
 0x4be   :  { %v6578_v10 = vadd.f32 %v1826_v33, %v9112_v27  ;;  %v1828_v7 = vpop.f32.mrb[7].mxu0  ;;  %v1899_v60 = vpop.f32.mrb[7].mxu1  ;;  %v6592_v14 = vadd.f32 %v1897_v28, %v7437_v15 }
 0x4bf   :  { %v6579_v59 = vadd.f32 %v1828_v7, %v7698_v30  ;;  %v6593_v39 = vadd.f32 %v1899_v60, %v7442_v23  ;;  %v9113_v7 = vld [vmem:[#allocation85_spill] sm:$0xff] }
 0x4c0   :  { %v2214_v34 = vmul.f32 0.5, %v6578_v10 }
 0x4c1   :  { %v2218_v49 = vmul.f32 0.5, %v6579_v59  ;;  %v2223_v45 = vmul.f32 0.5, %v6593_v39  ;;  %v8010_v59 = vpop.permute.xlu1 %2234  ;;  %v9119_v39 = vld [vmem:[#allocation55_spill] sm:$0xff] }
 0x4c2   :  { %6729 = vtanh.f32 %v2214_v34  ;;  %9114 = vst [vmem:[#allocation86_spill] sm:$0xff] %v8010_v59  ;;  %vm2236_vm3 = vcmp.eq.s32.totalorder %v8010_v59, 1  ;;  %v9132_v59 = vld [vmem:[#allocation68_spill] sm:$0xff] }
 0x4c3   :  { %6731 = vtanh.f32 %v2218_v49 }
 0x4c4   :  { %6733 = vtanh.f32 %v6592_v14 }
 0x4c5   :  { %6735 = vtanh.f32 %v2223_v45  ;;  %v9120_v45 = vld [vmem:[#allocation56_spill] sm:$0xff] }
 0x4cc   :  { %v6730_v41 = vpop.eup %6729 }
 0x4cd   :  { %v6732_v53 = vpop.eup %6731  ;;  %v2216_v58 = vadd.f32 1.0, %v6730_v41 }
 0x4ce   :  { %v2220_v29 = vadd.f32 1.0, %v6732_v53  ;;  %v6734_v27 = vpop.eup %6733  ;;  %v9122_v53 = vld [vmem:[#allocation58_spill] sm:$0xff] }
 0x4cf   :  { %v2217_v33 = vmul.f32 0.5, %v2216_v58  ;;  %v6736_v60 = vpop.eup %6735 }
 0x4d0   :  { %v2221_v25 = vmul.f32 0.5, %v2220_v29  ;;  %v2225_v49 = vadd.f32 1.0, %v6736_v60  ;;  %v9117_v29 = vld [vmem:[#allocation53_spill] sm:$0xff]  ;;  %v9127_v60 = vld [vmem:[#allocation63_spill] sm:$0xff] }
 0x4d1   :  { %v2228_v22 = vmul.f32 %v6734_v27, %v2217_v33  ;;  %v9118_v27 = vld [vmem:[#allocation54_spill] sm:$0xff]  ;;  %v9123_v33 = vld [vmem:[#allocation59_spill] sm:$0xff] }
 0x4d2   :  { %v2227_v10 = vmul.f32 %v2221_v25, %v9113_v7  ;;  %v2226_v14 = vmul.f32 0.5, %v2225_v49  ;;  %v9128_v49 = vld [vmem:[#allocation64_spill] sm:$0xff] }
 0x4d4   :  { %v2229_v34 = vadd.f32 %v2228_v22, %v2227_v10  ;;  %v9116_v22 = vld [vmem:[#allocation52_spill] sm:$0xff]  ;;  %v9125_v10 = vld [vmem:[#allocation61_spill] sm:$0xff] }
 0x4d6   :  { %6737 = vtanh.f32 %v2229_v34  ;;  %v8016_v28 = vsel %vm2236_vm3, %v2229_v34, %v9113_v7  ;;  %v9124_v7 = vld [vmem:[#allocation60_spill] sm:$0xff]  ;;  %v9126_v34 = vld [vmem:[#allocation62_spill] sm:$0xff] }
 0x4d7   :  { %9115 = vst [vmem:[#allocation87_spill] sm:$0xff] %v8016_v28 }
 0x4e0   :  { %v6738_v58 = vpop.eup %6737 }
 0x4e1   :  { %v2231_v41 = vmul.f32 %v6738_v58, %v2226_v14  ;;  %v9129_v14 = vld [vmem:[#allocation65_spill] sm:$0xff]  ;;  %v9130_v58 = vld [vmem:[#allocation66_spill] sm:$0xff] }
 0x4e3   :  { %v8021_v25 = vsel %vm2236_vm3, %v2231_v41, %v7877_v37  ;;  %v9121_v37 = vld [vmem:[#allocation57_spill] sm:$0xff]  ;;  %v9131_v41 = vld [vmem:[#allocation67_spill] sm:$0xff] }
 0x4e4   :  { %2308 = vmatmul.mubr.f32.vlgmr.msra.gmra.mrb[8].mxu0 %v8021_v25  ;;  %2379 = vmatmul.mubr.f32.vlgmr.msra.gmra.mrb[8].mxu1 %v8021_v25 }
 0x4e5   :  { %5673 = vmatpush1.bf16.msra.mxu0 %v9116_v22  ;;  %5705 = vmatpush1.bf16.msra.mxu1 %v9117_v29 }
 0x4e6   :  { %5675 = vmatprep.subr.bf16.mxu0 %v9118_v27  ;;  %5707 = vmatprep.subr.bf16.mxu1 %v9119_v39 }
 0x4e7   :  { %2453 = vmatprep.mubr.f32.mxu0 %v8935_v31  ;;  %2524 = vmatprep.mubr.f32.mxu1 %v8935_v31 }
 0x4e9   :  { %5677 = vmatpush1.bf16.msra.mxu0 %v9120_v45  ;;  %5709 = vmatpush1.bf16.msra.mxu1 %v9121_v37  ;;  %v9148_v37 = vld [vmem:[#allocation103_spill] sm:$0xff] }
 0x4ea   :  { %5679 = vmatprep.subr.bf16.mxu0 %v9122_v53  ;;  %5711 = vmatprep.subr.bf16.mxu1 %v9123_v33  ;;  %v9133_v53 = vld [vmem:[#allocation69_spill] sm:$0xff]  ;;  %v9134_v33 = vld [vmem:[#allocation70_spill] sm:$0xff] }
 0x4ed   :  { %5681 = vmatpush1.bf16.msra.mxu0 %v9124_v7  ;;  %5713 = vmatpush1.bf16.msra.mxu1 %v9125_v10  ;;  %v9135_v7 = vld [vmem:[#allocation71_spill] sm:$0xff]  ;;  %v9136_v10 = vld [vmem:[#allocation72_spill] sm:$0xff] }
 0x4ee   :  { %5683 = vmatprep.subr.bf16.mxu0 %v9126_v34  ;;  %5715 = vmatprep.subr.bf16.mxu1 %v9127_v60  ;;  %v9137_v34 = vld [vmem:[#allocation73_spill] sm:$0xff]  ;;  %v9138_v60 = vld [vmem:[#allocation74_spill] sm:$0xff] }
 0x4f1   :  { %5685 = vmatpush1.bf16.msra.mxu0 %v9128_v49  ;;  %5717 = vmatpush1.bf16.msra.mxu1 %v9129_v14  ;;  %v9139_v49 = vld [vmem:[#allocation75_spill] sm:$0xff]  ;;  %v9140_v14 = vld [vmem:[#allocation76_spill] sm:$0xff] }
 0x4f2   :  { %5687 = vmatprep.subr.bf16.mxu0 %v9130_v58  ;;  %5719 = vmatprep.subr.bf16.mxu1 %v9131_v41  ;;  %v9141_v58 = vld [vmem:[#allocation77_spill] sm:$0xff]  ;;  %v9142_v41 = vld [vmem:[#allocation78_spill] sm:$0xff] }
 0x4f5   :  { %5689 = vmatpush1.bf16.msra.mxu0 %v9132_v59  ;;  %5721 = vmatpush1.bf16.msra.mxu1 %v9133_v53  ;;  %v9143_v59 = vld [vmem:[#allocation79_spill] sm:$0xff]  ;;  %v9144_v53 = vld [vmem:[#allocation80_spill] sm:$0xff] }
 0x4f6   :  { %5691 = vmatprep.subr.bf16.mxu0 %v9134_v33  ;;  %5723 = vmatprep.subr.bf16.mxu1 %v9135_v7  ;;  %v9145_v33 = vld [vmem:[#allocation81_spill] sm:$0xff]  ;;  %v9146_v7 = vld [vmem:[#allocation82_spill] sm:$0xff] }
 0x4f9   :  { %5693 = vmatpush1.bf16.msra.mxu0 %v9136_v10  ;;  %5725 = vmatpush1.bf16.msra.mxu1 %v9137_v34  ;;  %v9147_v10 = vld [vmem:[#allocation83_spill] sm:$0xff] }
 0x4fa   :  { %5695 = vmatprep.subr.bf16.mxu0 %v9138_v60  ;;  %5727 = vmatprep.subr.bf16.mxu1 %v9139_v49 }
 0x4fd   :  { %5697 = vmatpush1.bf16.msra.mxu0 %v9140_v14  ;;  %5729 = vmatpush1.bf16.msra.mxu1 %v9141_v58 }
 0x4fe   :  { %5699 = vmatprep.subr.bf16.mxu0 %v9142_v41  ;;  %5731 = vmatprep.subr.bf16.mxu1 %v9143_v59 }
 0x501   :  { %5701 = vmatpush1.bf16.msra.mxu0 %v9144_v53  ;;  %5733 = vmatpush1.bf16.msra.mxu1 %v9145_v33 }
 0x502   :  { %5735 = vmatprep.subr.bf16.mxu0 %v9146_v7  ;;  %5767 = vmatprep.subr.bf16.mxu1 %v9147_v10 }
 0x53c   :  { %v2114_v34 = vpop.f32.mrb[20].mxu0  ;;  %v2185_v60 = vpop.f32.mrb[20].mxu1 }
 0x53d   :  { %v2190_v49 = vadd.f32 %v2114_v34, %v9148_v37  ;;  %v2116_v45 = vpop.f32.mrb[21].mxu0  ;;  %v2187_v14 = vpop.f32.mrb[21].mxu1  ;;  %v2192_v59 = vadd.f32 %v2185_v60, %v9082_v19 }
 0x53e   :  { %v2191_v58 = vadd.f32 %v2116_v45, %v9081_v20  ;;  %v2193_v33 = vadd.f32 %v2187_v14, %v7775_v44 }
 0x53f   :  { %v2194_v39 = vmul.f32 0.5, %v2190_v49 }
 0x540   :  { %v2198_v41 = vmul.f32 0.5, %v2191_v58  ;;  %v2203_v7 = vmul.f32 0.5, %v2193_v33 }
 0x541   :  { %6739 = vtanh.f32 %v2194_v39  ;;  %v9162_v39 = vld [vmem:[#allocation34_spill] sm:$0xff] }
 0x542   :  { %6741 = vtanh.f32 %v2198_v41  ;;  %v9158_v41 = vld [vmem:[#allocation30_spill] sm:$0xff] }
 0x543   :  { %6743 = vtanh.f32 %v2192_v59 }
 0x544   :  { %6745 = vtanh.f32 %v2203_v7  ;;  %v9156_v7 = vld [vmem:[#allocation28_spill] sm:$0xff] }
 0x54b   :  { %v6740_v53 = vpop.eup %6739 }
 0x54c   :  { %v6742_v10 = vpop.eup %6741  ;;  %v2196_v27 = vadd.f32 1.0, %v6740_v53 }
 0x54d   :  { %v2200_v29 = vadd.f32 1.0, %v6742_v10  ;;  %v6744_v37 = vpop.eup %6743  ;;  %v9157_v10 = vld [vmem:[#allocation29_spill] sm:$0xff] }
 0x54e   :  { %v2197_v34 = vmul.f32 0.5, %v2196_v27  ;;  %v6746_v60 = vpop.eup %6745 }
 0x54f   :  { %v2201_v22 = vmul.f32 0.5, %v2200_v29  ;;  %v2205_v33 = vadd.f32 1.0, %v6746_v60  ;;  %v9154_v29 = vld [vmem:[#allocation26_spill] sm:$0xff]  ;;  %v9163_v60 = vld [vmem:[#allocation35_spill] sm:$0xff] }
 0x550   :  { %v2208_v28 = vmul.f32 %v6744_v37, %v2197_v34  ;;  %v9155_v37 = vld [vmem:[#allocation27_spill] sm:$0xff] }
 0x551   :  { %v2207_v45 = vmul.f32 %v2201_v22, %v7924_v1  ;;  %v2206_v14 = vmul.f32 0.5, %v2205_v33  ;;  %v9153_v22 = vld [vmem:[#allocation25_spill] sm:$0xff]  ;;  %v9159_v34 = vld [vmem:[#allocation31_spill] sm:$0xff]  ;;  %v9164_v33 = vld [vmem:[#allocation36_spill] sm:$0xff] }
 0x553   :  { %v2209_v49 = vadd.f32 %v2208_v28, %v2207_v45  ;;  %v9152_v28 = vld [vmem:[#allocation24_spill] sm:$0xff] }
 0x554   :  { %v9160_v45 = vld [vmem:[#allocation32_spill] sm:$0xff] }
 0x555   :  { %6747 = vtanh.f32 %v2209_v49  ;;  %v8067_v59 = vsel %vm1753_vm2, %v2209_v49, %v7924_v1  ;;  %v9150_v1 = vld [vmem:[#allocation22_spill] sm:$0xff]  ;;  %v9161_v49 = vld [vmem:[#allocation33_spill] sm:$0xff] }
 0x55f   :  { %v6748_v58 = vpop.eup %6747 }
 0x560   :  { %v2211_v53 = vmul.f32 %v6748_v58, %v2206_v14  ;;  %v9165_v14 = vld [vmem:[#allocation37_spill] sm:$0xff]  ;;  %v9166_v58 = vld [vmem:[#allocation38_spill] sm:$0xff] }
 0x562   :  { %v8072_v27 = vsel %vm1753_vm2, %v2211_v53, %v7931_v51  ;;  %v9151_v51 = vld [vmem:[#allocation23_spill] sm:$0xff] }
 0x563   :  { %2454 = vmatmul.mubr.f32.vlgmr.msra.gmra.mrb[22].mxu0 %v8072_v27  ;;  %2525 = vmatmul.mubr.f32.vlgmr.msra.gmra.mrb[22].mxu1 %v8072_v27  ;;  %v9167_v53 = vld [vmem:[#allocation39_spill] sm:$0xff] }
 0x564   :  { %5737 = vmatpush1.bf16.msra.mxu0 %v9020_v57  ;;  %5769 = vmatpush1.bf16.msra.mxu1 %v9021_v35 }
 0x565   :  { %5739 = vmatprep.subr.bf16.mxu0 %v9022_v55  ;;  %5771 = vmatprep.subr.bf16.mxu1 %v9023_v5 }
 0x566   :  { %2595 = vmatprep.mubr.f32.mxu0 %v8935_v31  ;;  %2666 = vmatprep.mubr.f32.mxu1 %v8935_v31 }
 0x568   :  { %5741 = vmatpush1.bf16.msra.mxu0 %v9084_v17  ;;  %5773 = vmatpush1.bf16.msra.mxu1 %v9085_v32 }
 0x569   :  { %5743 = vmatprep.subr.bf16.mxu0 %v9086_v46  ;;  %5775 = vmatprep.subr.bf16.mxu1 %v9027_v26 }
 0x56c   :  { %5745 = vmatpush1.bf16.msra.mxu0 %v9028_v43  ;;  %5777 = vmatpush1.bf16.msra.mxu1 %v9029_v4 }
 0x56d   :  { %5747 = vmatprep.subr.bf16.mxu0 %v9030_v18  ;;  %5779 = vmatprep.subr.bf16.mxu1 %v9031_v61 }
 0x570   :  { %5749 = vmatpush1.bf16.msra.mxu0 %v9032_v47  ;;  %5781 = vmatpush1.bf16.msra.mxu1 %v9033_v2 }
 0x571   :  { %5751 = vmatprep.subr.bf16.mxu0 %v9034_v0  ;;  %5783 = vmatprep.subr.bf16.mxu1 %v9035_v11 }
 0x574   :  { %5753 = vmatpush1.bf16.msra.mxu0 %v9036_v36  ;;  %5785 = vmatpush1.bf16.msra.mxu1 %v9037_v63 }
 0x575   :  { %5755 = vmatprep.subr.bf16.mxu0 %v7614_v42  ;;  %5787 = vmatprep.subr.bf16.mxu1 %v7616_v38 }
 0x578   :  { %5757 = vmatpush1.bf16.msra.mxu0 %v7620_v40  ;;  %5789 = vmatpush1.bf16.msra.mxu1 %v7622_v6 }
 0x579   :  { %5759 = vmatprep.subr.bf16.mxu0 %v7626_v48  ;;  %5791 = vmatprep.subr.bf16.mxu1 %v7628_v62 }
 0x57c   :  { %5761 = vmatpush1.bf16.msra.mxu0 %v7632_v13  ;;  %5793 = vmatpush1.bf16.msra.mxu1 %v7634_v54 }
 0x57d   :  { %5763 = vmatprep.subr.bf16.mxu0 %v7638_v24  ;;  %5795 = vmatprep.subr.bf16.mxu1 %v7640_v56 }
 0x580   :  { %5765 = vmatpush1.bf16.msra.mxu0 %v7644_v50  ;;  %5797 = vmatpush1.bf16.msra.mxu1 %v7646_v52 }
 0x581   :  { %5799 = vmatprep.subr.bf16.mxu0 %v7315_v3  ;;  %5831 = vmatprep.subr.bf16.mxu1 %v7317_v8 }
 0x583   :  { %2596 = vmatmul.mubr.f32.vlgmr.msra.gmra.mrb[22].mxu0 %v8021_v25  ;;  %2667 = vmatmul.mubr.f32.vlgmr.msra.gmra.mrb[22].mxu1 %v8021_v25 }
 0x584   :  { %5801 = vmatpush1.bf16.msra.mxu0 %v7319_v9  ;;  %5833 = vmatpush1.bf16.msra.mxu1 %v7322_v12 }
 0x585   :  { %5803 = vmatprep.subr.bf16.mxu0 %v7327_v16  ;;  %5835 = vmatprep.subr.bf16.mxu1 %v7329_v21 }
 0x586   :  { %2790 = vmatprep.mubr.f32.mxu0 %v8935_v31  ;;  %2861 = vmatprep.mubr.f32.mxu1 %v8935_v31 }
 0x588   :  { %5805 = vmatpush1.bf16.msra.mxu0 %v9150_v1  ;;  %5837 = vmatpush1.bf16.msra.mxu1 %v9151_v51 }
 0x589   :  { %5807 = vmatprep.subr.bf16.mxu0 %v9152_v28  ;;  %5839 = vmatprep.subr.bf16.mxu1 %v9153_v22 }
 0x58c   :  { %5809 = vmatpush1.bf16.msra.mxu0 %v9154_v29  ;;  %5841 = vmatpush1.bf16.msra.mxu1 %v9155_v37 }
 0x58d   :  { %5811 = vmatprep.subr.bf16.mxu0 %v9156_v7  ;;  %5843 = vmatprep.subr.bf16.mxu1 %v9157_v10  ;;  %v9168_v10 = vld [vmem:[#allocation40_spill] sm:$0xff]  ;;  %v9178_v7 = vld [vmem:[#allocation50_spill] sm:$0xff] }
 0x590   :  { %5813 = vmatpush1.bf16.msra.mxu0 %v9158_v41  ;;  %5845 = vmatpush1.bf16.msra.mxu1 %v9159_v34  ;;  %v9169_v41 = vld [vmem:[#allocation41_spill] sm:$0xff]  ;;  %v9170_v34 = vld [vmem:[#allocation42_spill] sm:$0xff] }
 0x591   :  { %5815 = vmatprep.subr.bf16.mxu0 %v9160_v45  ;;  %5847 = vmatprep.subr.bf16.mxu1 %v9161_v49  ;;  %v9171_v45 = vld [vmem:[#allocation43_spill] sm:$0xff]  ;;  %v9172_v49 = vld [vmem:[#allocation44_spill] sm:$0xff] }
 0x594   :  { %5817 = vmatpush1.bf16.msra.mxu0 %v9162_v39  ;;  %5849 = vmatpush1.bf16.msra.mxu1 %v9163_v60  ;;  %v9173_v39 = vld [vmem:[#allocation45_spill] sm:$0xff]  ;;  %v9174_v60 = vld [vmem:[#allocation46_spill] sm:$0xff] }
 0x595   :  { %5819 = vmatprep.subr.bf16.mxu0 %v9164_v33  ;;  %5851 = vmatprep.subr.bf16.mxu1 %v9165_v14  ;;  %v9175_v33 = vld [vmem:[#allocation47_spill] sm:$0xff]  ;;  %v9176_v14 = vld [vmem:[#allocation48_spill] sm:$0xff] }
 0x598   :  { %5821 = vmatpush1.bf16.msra.mxu0 %v9166_v58  ;;  %5853 = vmatpush1.bf16.msra.mxu1 %v9167_v53  ;;  %v9177_v58 = vld [vmem:[#allocation49_spill] sm:$0xff] }
 0x599   :  { %5823 = vmatprep.subr.bf16.mxu0 %v9168_v10  ;;  %5855 = vmatprep.subr.bf16.mxu1 %v9169_v41 }
 0x59c   :  { %5825 = vmatpush1.bf16.msra.mxu0 %v9170_v34  ;;  %5857 = vmatpush1.bf16.msra.mxu1 %v9171_v45 }
 0x59d   :  { %5827 = vmatprep.subr.bf16.mxu0 %v9172_v49  ;;  %5859 = vmatprep.subr.bf16.mxu1 %v9173_v39 }
 0x5a0   :  { %5829 = vmatpush1.bf16.msra.mxu0 %v9174_v60  ;;  %5861 = vmatpush1.bf16.msra.mxu1 %v9175_v33 }
 0x5a1   :  { %5863 = vmatprep.subr.bf16.mxu0 %v9176_v14  ;;  %5895 = vmatprep.subr.bf16.mxu1 %v9177_v58 }
 0x5b7   :  { %v2309_v53 = vpop.f32.mrb[8].mxu0  ;;  %v2380_v10 = vpop.f32.mrb[8].mxu1 }
 0x5b8   :  { %v6580_v41 = vadd.f32 %v2309_v53, %v9178_v7  ;;  %v2311_v37 = vpop.f32.mrb[9].mxu0  ;;  %v2382_v34 = vpop.f32.mrb[9].mxu1  ;;  %v6594_v39 = vadd.f32 %v2380_v10, %v7437_v15 }
 0x5b9   :  { %v6581_v45 = vadd.f32 %v2311_v37, %v7698_v30  ;;  %v6595_v33 = vadd.f32 %v2382_v34, %v7442_v23  ;;  %v8150_v37 = vpop.permute.xlu0 %2717 }
 0x5ba   :  { %v2697_v29 = vmul.f32 0.5, %v6580_v41  ;;  %9179 = vst [vmem:[#allocation91_spill] sm:$0xff] %v8150_v37  ;;  %v9180_v41 = vld [vmem:[#allocation87_spill] sm:$0xff]  ;;  %vm2719_vm4 = vcmp.eq.s32.totalorder %v8150_v37, 1  ;;  %v9198_v37 = vld [vmem:[#allocation68_spill] sm:$0xff] }
 0x5bb   :  { %v2701_v49 = vmul.f32 0.5, %v6581_v45  ;;  %v2706_v14 = vmul.f32 0.5, %v6595_v33  ;;  %v9185_v33 = vld [vmem:[#allocation55_spill] sm:$0xff] }
 0x5bc   :  { %6749 = vtanh.f32 %v2697_v29 }
 0x5bd   :  { %6751 = vtanh.f32 %v2701_v49 }
 0x5be   :  { %6753 = vtanh.f32 %v6594_v39 }
 0x5bf   :  { %6755 = vtanh.f32 %v2706_v14  ;;  %v9186_v14 = vld [vmem:[#allocation56_spill] sm:$0xff] }
 0x5c6   :  { %v6750_v60 = vpop.eup %6749 }
 0x5c7   :  { %v6752_v58 = vpop.eup %6751  ;;  %v2699_v22 = vadd.f32 1.0, %v6750_v60 }
 0x5c8   :  { %v2703_v28 = vadd.f32 1.0, %v6752_v58  ;;  %v6754_v7 = vpop.eup %6753  ;;  %v9188_v58 = vld [vmem:[#allocation58_spill] sm:$0xff] }
 0x5c9   :  { %v2700_v53 = vmul.f32 0.5, %v2699_v22  ;;  %v6756_v34 = vpop.eup %6755 }
 0x5ca   :  { %v2704_v51 = vmul.f32 0.5, %v2703_v28  ;;  %v2708_v49 = vadd.f32 1.0, %v6756_v34  ;;  %v9193_v34 = vld [vmem:[#allocation63_spill] sm:$0xff] }
 0x5cb   :  { %v2711_v1 = vmul.f32 %v6754_v7, %v2700_v53  ;;  %v9184_v7 = vld [vmem:[#allocation54_spill] sm:$0xff]  ;;  %v9189_v53 = vld [vmem:[#allocation59_spill] sm:$0xff] }
 0x5cc   :  { %v2710_v29 = vmul.f32 %v2704_v51, %v9180_v41  ;;  %v2709_v39 = vmul.f32 0.5, %v2708_v49  ;;  %v9183_v51 = vld [vmem:[#allocation53_spill] sm:$0xff]  ;;  %v9194_v49 = vld [vmem:[#allocation64_spill] sm:$0xff] }
 0x5ce   :  { %v2712_v45 = vadd.f32 %v2711_v1, %v2710_v29  ;;  %v9182_v1 = vld [vmem:[#allocation52_spill] sm:$0xff]  ;;  %v9191_v29 = vld [vmem:[#allocation61_spill] sm:$0xff] }
 0x5d0   :  { %6757 = vtanh.f32 %v2712_v45  ;;  %v8157_v10 = vsel %vm2719_vm4, %v2712_v45, %v9180_v41  ;;  %v9190_v41 = vld [vmem:[#allocation60_spill] sm:$0xff]  ;;  %v9192_v45 = vld [vmem:[#allocation62_spill] sm:$0xff] }
 0x5d1   :  { %9181 = vst [vmem:[#allocation92_spill] sm:$0xff] %v8157_v10 }
 0x5da   :  { %v6758_v22 = vpop.eup %6757 }
 0x5db   :  { %v2714_v60 = vmul.f32 %v6758_v22, %v2709_v39  ;;  %v9195_v39 = vld [vmem:[#allocation65_spill] sm:$0xff]  ;;  %v9196_v22 = vld [vmem:[#allocation66_spill] sm:$0xff] }
 0x5dd   :  { %v8162_v28 = vsel %vm2719_vm4, %v2714_v60, %v8021_v25  ;;  %v9187_v25 = vld [vmem:[#allocation57_spill] sm:$0xff]  ;;  %v9197_v60 = vld [vmem:[#allocation67_spill] sm:$0xff] }
 0x5de   :  { %2791 = vmatmul.mubr.f32.vlgmr.msra.gmra.mrb[10].mxu0 %v8162_v28  ;;  %2862 = vmatmul.mubr.f32.vlgmr.msra.gmra.mrb[10].mxu1 %v8162_v28 }
 0x5df   :  { %5865 = vmatpush1.bf16.msra.mxu0 %v9182_v1  ;;  %5897 = vmatpush1.bf16.msra.mxu1 %v9183_v51 }
 0x5e0   :  { %5867 = vmatprep.subr.bf16.mxu0 %v9184_v7  ;;  %5899 = vmatprep.subr.bf16.mxu1 %v9185_v33 }
 0x5e1   :  { %2936 = vmatprep.mubr.f32.mxu0 %v8935_v31  ;;  %3007 = vmatprep.mubr.f32.mxu1 %v8935_v31 }
 0x5e3   :  { %5869 = vmatpush1.bf16.msra.mxu0 %v9186_v14  ;;  %5901 = vmatpush1.bf16.msra.mxu1 %v9187_v25  ;;  %v9214_v25 = vld [vmem:[#allocation103_spill] sm:$0xff] }
 0x5e4   :  { %5871 = vmatprep.subr.bf16.mxu0 %v9188_v58  ;;  %5903 = vmatprep.subr.bf16.mxu1 %v9189_v53  ;;  %v9199_v58 = vld [vmem:[#allocation69_spill] sm:$0xff]  ;;  %v9200_v53 = vld [vmem:[#allocation70_spill] sm:$0xff] }
 0x5e7   :  { %5873 = vmatpush1.bf16.msra.mxu0 %v9190_v41  ;;  %5905 = vmatpush1.bf16.msra.mxu1 %v9191_v29  ;;  %v9201_v41 = vld [vmem:[#allocation71_spill] sm:$0xff]  ;;  %v9202_v29 = vld [vmem:[#allocation72_spill] sm:$0xff] }
 0x5e8   :  { %5875 = vmatprep.subr.bf16.mxu0 %v9192_v45  ;;  %5907 = vmatprep.subr.bf16.mxu1 %v9193_v34  ;;  %v9203_v45 = vld [vmem:[#allocation73_spill] sm:$0xff]  ;;  %v9204_v34 = vld [vmem:[#allocation74_spill] sm:$0xff] }
 0x5eb   :  { %5877 = vmatpush1.bf16.msra.mxu0 %v9194_v49  ;;  %5909 = vmatpush1.bf16.msra.mxu1 %v9195_v39  ;;  %v9205_v49 = vld [vmem:[#allocation75_spill] sm:$0xff]  ;;  %v9206_v39 = vld [vmem:[#allocation76_spill] sm:$0xff] }
 0x5ec   :  { %5879 = vmatprep.subr.bf16.mxu0 %v9196_v22  ;;  %5911 = vmatprep.subr.bf16.mxu1 %v9197_v60  ;;  %v9207_v22 = vld [vmem:[#allocation77_spill] sm:$0xff]  ;;  %v9208_v60 = vld [vmem:[#allocation78_spill] sm:$0xff] }
 0x5ef   :  { %5881 = vmatpush1.bf16.msra.mxu0 %v9198_v37  ;;  %5913 = vmatpush1.bf16.msra.mxu1 %v9199_v58  ;;  %v9209_v37 = vld [vmem:[#allocation79_spill] sm:$0xff]  ;;  %v9210_v58 = vld [vmem:[#allocation80_spill] sm:$0xff] }
 0x5f0   :  { %5883 = vmatprep.subr.bf16.mxu0 %v9200_v53  ;;  %5915 = vmatprep.subr.bf16.mxu1 %v9201_v41  ;;  %v9211_v53 = vld [vmem:[#allocation81_spill] sm:$0xff]  ;;  %v9212_v41 = vld [vmem:[#allocation82_spill] sm:$0xff] }
 0x5f3   :  { %5885 = vmatpush1.bf16.msra.mxu0 %v9202_v29  ;;  %5917 = vmatpush1.bf16.msra.mxu1 %v9203_v45  ;;  %v9213_v29 = vld [vmem:[#allocation83_spill] sm:$0xff] }
 0x5f4   :  { %5887 = vmatprep.subr.bf16.mxu0 %v9204_v34  ;;  %5919 = vmatprep.subr.bf16.mxu1 %v9205_v49 }
 0x5f7   :  { %5889 = vmatpush1.bf16.msra.mxu0 %v9206_v39  ;;  %5921 = vmatpush1.bf16.msra.mxu1 %v9207_v22 }
 0x5f8   :  { %5891 = vmatprep.subr.bf16.mxu0 %v9208_v60  ;;  %5923 = vmatprep.subr.bf16.mxu1 %v9209_v37 }
 0x5fb   :  { %5893 = vmatpush1.bf16.msra.mxu0 %v9210_v58  ;;  %5925 = vmatpush1.bf16.msra.mxu1 %v9211_v53 }
 0x5fc   :  { %5927 = vmatprep.subr.bf16.mxu0 %v9212_v41  ;;  %5959 = vmatprep.subr.bf16.mxu1 %v9213_v29 }
 0x656   :  { %v2597_v45 = vpop.f32.mrb[22].mxu0  ;;  %v2668_v34 = vpop.f32.mrb[22].mxu1 }
 0x657   :  { %v2673_v49 = vadd.f32 %v2597_v45, %v9214_v25  ;;  %v2599_v14 = vpop.f32.mrb[23].mxu0  ;;  %v2670_v39 = vpop.f32.mrb[23].mxu1  ;;  %v2675_v37 = vadd.f32 %v2668_v34, %v9082_v19 }
 0x658   :  { %v2674_v22 = vadd.f32 %v2599_v14, %v9081_v20  ;;  %v2676_v53 = vadd.f32 %v2670_v39, %v7775_v44 }
 0x659   :  { %v2677_v33 = vmul.f32 0.5, %v2673_v49 }
 0x65a   :  { %v2681_v60 = vmul.f32 0.5, %v2674_v22  ;;  %v2686_v41 = vmul.f32 0.5, %v2676_v53 }
 0x65b   :  { %6759 = vtanh.f32 %v2677_v33  ;;  %v9228_v33 = vld [vmem:[#allocation34_spill] sm:$0xff] }
 0x65c   :  { %6761 = vtanh.f32 %v2681_v60  ;;  %v9224_v60 = vld [vmem:[#allocation30_spill] sm:$0xff] }
 0x65d   :  { %6763 = vtanh.f32 %v2675_v37 }
 0x65e   :  { %6765 = vtanh.f32 %v2686_v41  ;;  %v9222_v41 = vld [vmem:[#allocation28_spill] sm:$0xff] }
 0x665   :  { %v6760_v58 = vpop.eup %6759 }
 0x666   :  { %v6762_v29 = vpop.eup %6761  ;;  %v2679_v7 = vadd.f32 1.0, %v6760_v58 }
 0x667   :  { %v2683_v51 = vadd.f32 1.0, %v6762_v29  ;;  %v6764_v25 = vpop.eup %6763  ;;  %v9223_v29 = vld [vmem:[#allocation29_spill] sm:$0xff] }
 0x668   :  { %v2680_v45 = vmul.f32 0.5, %v2679_v7  ;;  %v6766_v34 = vpop.eup %6765 }
 0x669   :  { %v2684_v1 = vmul.f32 0.5, %v2683_v51  ;;  %v2688_v53 = vadd.f32 1.0, %v6766_v34  ;;  %v9220_v51 = vld [vmem:[#allocation26_spill] sm:$0xff]  ;;  %v9229_v34 = vld [vmem:[#allocation35_spill] sm:$0xff] }
 0x66a   :  { %v2691_v10 = vmul.f32 %v6764_v25, %v2680_v45  ;;  %v9221_v25 = vld [vmem:[#allocation27_spill] sm:$0xff] }
 0x66b   :  { %v2690_v14 = vmul.f32 %v2684_v1, %v8067_v59  ;;  %v2689_v39 = vmul.f32 0.5, %v2688_v53  ;;  %v9219_v1 = vld [vmem:[#allocation25_spill] sm:$0xff]  ;;  %v9225_v45 = vld [vmem:[#allocation31_spill] sm:$0xff]  ;;  %v9230_v53 = vld [vmem:[#allocation36_spill] sm:$0xff] }
 0x66d   :  { %v2692_v49 = vadd.f32 %v2691_v10, %v2690_v14  ;;  %v9218_v10 = vld [vmem:[#allocation24_spill] sm:$0xff] }
 0x66e   :  { %v9226_v14 = vld [vmem:[#allocation32_spill] sm:$0xff] }
 0x66f   :  { %6767 = vtanh.f32 %v2692_v49  ;;  %v8208_v37 = vsel %vm2236_vm3, %v2692_v49, %v8067_v59  ;;  %v9216_v59 = vld [vmem:[#allocation22_spill] sm:$0xff]  ;;  %v9227_v49 = vld [vmem:[#allocation33_spill] sm:$0xff] }
 0x679   :  { %v6768_v22 = vpop.eup %6767 }
 0x67a   :  { %v2694_v58 = vmul.f32 %v6768_v22, %v2689_v39  ;;  %v9231_v39 = vld [vmem:[#allocation37_spill] sm:$0xff] }
 0x67c   :  { %v8213_v7 = vsel %vm2236_vm3, %v2694_v58, %v8072_v27  ;;  %v9217_v27 = vld [vmem:[#allocation23_spill] sm:$0xff] }
 0x67d   :  { %2937 = vmatmul.mubr.f32.vlgmr.msra.gmra.mrb[24].mxu0 %v8213_v7  ;;  %3008 = vmatmul.mubr.f32.vlgmr.msra.gmra.mrb[24].mxu1 %v8213_v7 }
 0x67e   :  { %5929 = vmatpush1.bf16.msra.mxu0 %v9020_v57  ;;  %5961 = vmatpush1.bf16.msra.mxu1 %v9021_v35 }
 0x67f   :  { %5931 = vmatprep.subr.bf16.mxu0 %v9022_v55  ;;  %5963 = vmatprep.subr.bf16.mxu1 %v9023_v5 }
 0x680   :  { %3078 = vmatprep.mubr.f32.mxu0 %v8935_v31  ;;  %3149 = vmatprep.mubr.f32.mxu1 %v8935_v31 }
 0x682   :  { %5933 = vmatpush1.bf16.msra.mxu0 %v9084_v17  ;;  %5965 = vmatpush1.bf16.msra.mxu1 %v9085_v32 }
 0x683   :  { %5935 = vmatprep.subr.bf16.mxu0 %v9086_v46  ;;  %5967 = vmatprep.subr.bf16.mxu1 %v9027_v26 }
 0x686   :  { %5937 = vmatpush1.bf16.msra.mxu0 %v9028_v43  ;;  %5969 = vmatpush1.bf16.msra.mxu1 %v9029_v4 }
 0x687   :  { %5939 = vmatprep.subr.bf16.mxu0 %v9030_v18  ;;  %5971 = vmatprep.subr.bf16.mxu1 %v9031_v61 }
 0x68a   :  { %5941 = vmatpush1.bf16.msra.mxu0 %v9032_v47  ;;  %5973 = vmatpush1.bf16.msra.mxu1 %v9033_v2 }
 0x68b   :  { %5943 = vmatprep.subr.bf16.mxu0 %v9034_v0  ;;  %5975 = vmatprep.subr.bf16.mxu1 %v9035_v11 }
 0x68e   :  { %5945 = vmatpush1.bf16.msra.mxu0 %v9036_v36  ;;  %5977 = vmatpush1.bf16.msra.mxu1 %v9037_v63 }
 0x68f   :  { %5947 = vmatprep.subr.bf16.mxu0 %v7614_v42  ;;  %5979 = vmatprep.subr.bf16.mxu1 %v7616_v38 }
 0x692   :  { %5949 = vmatpush1.bf16.msra.mxu0 %v7620_v40  ;;  %5981 = vmatpush1.bf16.msra.mxu1 %v7622_v6 }
 0x693   :  { %5951 = vmatprep.subr.bf16.mxu0 %v7626_v48  ;;  %5983 = vmatprep.subr.bf16.mxu1 %v7628_v62 }
 0x696   :  { %5953 = vmatpush1.bf16.msra.mxu0 %v7632_v13  ;;  %5985 = vmatpush1.bf16.msra.mxu1 %v7634_v54 }
 0x697   :  { %5955 = vmatprep.subr.bf16.mxu0 %v7638_v24  ;;  %5987 = vmatprep.subr.bf16.mxu1 %v7640_v56 }
 0x69a   :  { %5957 = vmatpush1.bf16.msra.mxu0 %v7644_v50  ;;  %5989 = vmatpush1.bf16.msra.mxu1 %v7646_v52 }
 0x69b   :  { %5991 = vmatprep.subr.bf16.mxu0 %v7315_v3  ;;  %6023 = vmatprep.subr.bf16.mxu1 %v7317_v8 }
 0x69d   :  { %3079 = vmatmul.mubr.f32.vlgmr.msra.gmra.mrb[24].mxu0 %v8162_v28  ;;  %3150 = vmatmul.mubr.f32.vlgmr.msra.gmra.mrb[24].mxu1 %v8162_v28 }
 0x69e   :  { %5993 = vmatpush1.bf16.msra.mxu0 %v7319_v9  ;;  %6025 = vmatpush1.bf16.msra.mxu1 %v7322_v12 }
 0x69f   :  { %5995 = vmatprep.subr.bf16.mxu0 %v7327_v16  ;;  %6027 = vmatprep.subr.bf16.mxu1 %v7329_v21 }
 0x6a0   :  { %3273 = vmatprep.mubr.f32.mxu0 %v8935_v31  ;;  %3344 = vmatprep.mubr.f32.mxu1 %v8935_v31 }
 0x6a2   :  { %5997 = vmatpush1.bf16.msra.mxu0 %v9216_v59  ;;  %6029 = vmatpush1.bf16.msra.mxu1 %v9217_v27  ;;  %v9245_v27 = vld [vmem:[#allocation92_spill] sm:$0xff]  ;;  %v8292_v59 = vpop.permute.xlu1 %3200 }
 0x6a3   :  { %5999 = vmatprep.subr.bf16.mxu0 %v9218_v10  ;;  %6031 = vmatprep.subr.bf16.mxu1 %v9219_v1  ;;  %v9237_v1 = vld [vmem:[#allocation42_spill] sm:$0xff]  ;;  %v9239_v10 = vld [vmem:[#allocation44_spill] sm:$0xff]  ;;  %9246 = vst [vmem:[#allocation93_spill] sm:$0xff] %v8292_v59  ;;  %vm3202_vm5 = vcmp.eq.s32.totalorder %v8292_v59, 1  ;;  %v9261_v59 = vld [vmem:[#allocation65_spill] sm:$0xff] }
 0x6a6   :  { %6001 = vmatpush1.bf16.msra.mxu0 %v9220_v51  ;;  %6033 = vmatpush1.bf16.msra.mxu1 %v9221_v25  ;;  %v9233_v51 = vld [vmem:[#allocation38_spill] sm:$0xff] }
 0x6a7   :  { %6003 = vmatprep.subr.bf16.mxu0 %v9222_v41  ;;  %6035 = vmatprep.subr.bf16.mxu1 %v9223_v29  ;;  %v9232_v41 = vld [vmem:[#allocation50_spill] sm:$0xff] }
 0x6aa   :  { %6005 = vmatpush1.bf16.msra.mxu0 %v9224_v60  ;;  %6037 = vmatpush1.bf16.msra.mxu1 %v9225_v45  ;;  %v9234_v45 = vld [vmem:[#allocation39_spill] sm:$0xff] }
 0x6ab   :  { %6007 = vmatprep.subr.bf16.mxu0 %v9226_v14  ;;  %6039 = vmatprep.subr.bf16.mxu1 %v9227_v49  ;;  %v9235_v14 = vld [vmem:[#allocation40_spill] sm:$0xff] }
 0x6ae   :  { %6009 = vmatpush1.bf16.msra.mxu0 %v9228_v33  ;;  %6041 = vmatpush1.bf16.msra.mxu1 %v9229_v34  ;;  %v9236_v33 = vld [vmem:[#allocation41_spill] sm:$0xff] }
 0x6af   :  { %6011 = vmatprep.subr.bf16.mxu0 %v9230_v53  ;;  %6043 = vmatprep.subr.bf16.mxu1 %v9231_v39 }
 0x6b1   :  { %v2792_v22 = vpop.f32.mrb[10].mxu0  ;;  %v2863_v58 = vpop.f32.mrb[10].mxu1 }
 0x6b2   :  { %v6582_v29 = vadd.f32 %v2792_v22, %v9232_v41  ;;  %v2794_v25 = vpop.f32.mrb[11].mxu0  ;;  %v2865_v60 = vpop.f32.mrb[11].mxu1  ;;  %6013 = vmatpush1.bf16.msra.mxu0 %v9233_v51  ;;  %6045 = vmatpush1.bf16.msra.mxu1 %v9234_v45  ;;  %v6596_v39 = vadd.f32 %v2863_v58, %v7437_v15  ;;  %v9238_v22 = vld [vmem:[#allocation43_spill] sm:$0xff]  ;;  %v9240_v51 = vld [vmem:[#allocation45_spill] sm:$0xff] }
 0x6b3   :  { %v6583_v49 = vadd.f32 %v2794_v25, %v7698_v30  ;;  %6015 = vmatprep.subr.bf16.mxu0 %v9235_v14  ;;  %6047 = vmatprep.subr.bf16.mxu1 %v9236_v33  ;;  %v6597_v25 = vadd.f32 %v2865_v60, %v7442_v23  ;;  %v9241_v14 = vld [vmem:[#allocation46_spill] sm:$0xff]  ;;  %v9242_v33 = vld [vmem:[#allocation47_spill] sm:$0xff] }
 0x6b4   :  { %v3180_v34 = vmul.f32 0.5, %v6582_v29  ;;  %v9243_v29 = vld [vmem:[#allocation48_spill] sm:$0xff] }
 0x6b5   :  { %v3184_v53 = vmul.f32 0.5, %v6583_v49  ;;  %v9244_v49 = vld [vmem:[#allocation49_spill] sm:$0xff] }
 0x6b6   :  { %6769 = vtanh.f32 %v3180_v34  ;;  %6017 = vmatpush1.bf16.msra.mxu0 %v9237_v1  ;;  %6049 = vmatpush1.bf16.msra.mxu1 %v9238_v22  ;;  %v3189_v34 = vmul.f32 0.5, %v6597_v25 }
 0x6b7   :  { %6771 = vtanh.f32 %v3184_v53  ;;  %6019 = vmatprep.subr.bf16.mxu0 %v9239_v10  ;;  %6051 = vmatprep.subr.bf16.mxu1 %v9240_v51 }
 0x6b8   :  { %6773 = vtanh.f32 %v6596_v39 }
 0x6b9   :  { %6775 = vtanh.f32 %v3189_v34 }
 0x6ba   :  { %6021 = vmatpush1.bf16.msra.mxu0 %v9241_v14  ;;  %6053 = vmatpush1.bf16.msra.mxu1 %v9242_v33 }
 0x6bb   :  { %6055 = vmatprep.subr.bf16.mxu0 %v9243_v29  ;;  %6087 = vmatprep.subr.bf16.mxu1 %v9244_v49 }
 0x6c0   :  { %v6770_v58 = vpop.eup %6769 }
 0x6c1   :  { %v6772_v1 = vpop.eup %6771  ;;  %v3182_v22 = vadd.f32 1.0, %v6770_v58 }
 0x6c2   :  { %v3186_v53 = vadd.f32 1.0, %v6772_v1  ;;  %v6774_v45 = vpop.eup %6773 }
 0x6c3   :  { %v3183_v10 = vmul.f32 0.5, %v3182_v22  ;;  %v6776_v58 = vpop.eup %6775 }
 0x6c4   :  { %v3187_v51 = vmul.f32 0.5, %v3186_v53  ;;  %v3191_v1 = vadd.f32 1.0, %v6776_v58  ;;  %v9252_v53 = vld [vmem:[#allocation56_spill] sm:$0xff]  ;;  %v9257_v58 = vld [vmem:[#allocation61_spill] sm:$0xff] }
 0x6c5   :  { %v3194_v39 = vmul.f32 %v6774_v45, %v3183_v10  ;;  %v9249_v45 = vld [vmem:[#allocation53_spill] sm:$0xff] }
 0x6c6   :  { %v3193_v60 = vmul.f32 %v3187_v51, %v9245_v27  ;;  %v3192_v34 = vmul.f32 0.5, %v3191_v1  ;;  %v9248_v51 = vld [vmem:[#allocation52_spill] sm:$0xff]  ;;  %v9258_v1 = vld [vmem:[#allocation62_spill] sm:$0xff] }
 0x6c8   :  { %v3195_v14 = vadd.f32 %v3194_v39, %v3193_v60  ;;  %v9255_v39 = vld [vmem:[#allocation59_spill] sm:$0xff]  ;;  %v9256_v60 = vld [vmem:[#allocation60_spill] sm:$0xff] }
 0x6ca   :  { %6777 = vtanh.f32 %v3195_v14  ;;  %v8298_v25 = vsel %vm3202_vm5, %v3195_v14, %v9245_v27  ;;  %v9250_v27 = vld [vmem:[#allocation54_spill] sm:$0xff]  ;;  %v9251_v14 = vld [vmem:[#allocation55_spill] sm:$0xff] }
 0x6cb   :  { %9247 = vst [vmem:[#allocation94_spill] sm:$0xff] %v8298_v25 }
 0x6d4   :  { %v6778_v22 = vpop.eup %6777 }
 0x6d5   :  { %v3197_v49 = vmul.f32 %v6778_v22, %v3192_v34  ;;  %v9259_v34 = vld [vmem:[#allocation63_spill] sm:$0xff]  ;;  %v9260_v22 = vld [vmem:[#allocation64_spill] sm:$0xff] }
 0x6d7   :  { %v8303_v10 = vsel %vm3202_vm5, %v3197_v49, %v8162_v28  ;;  %v9253_v28 = vld [vmem:[#allocation57_spill] sm:$0xff]  ;;  %v9254_v49 = vld [vmem:[#allocation58_spill] sm:$0xff] }
 0x6d8   :  { %3274 = vmatmul.mubr.f32.vlgmr.msra.gmra.mrb[12].mxu0 %v8303_v10  ;;  %3345 = vmatmul.mubr.f32.vlgmr.msra.gmra.mrb[12].mxu1 %v8303_v10 }
 0x6d9   :  { %6057 = vmatpush1.bf16.msra.mxu0 %v9248_v51  ;;  %6089 = vmatpush1.bf16.msra.mxu1 %v9249_v45 }
 0x6da   :  { %6059 = vmatprep.subr.bf16.mxu0 %v9250_v27  ;;  %6091 = vmatprep.subr.bf16.mxu1 %v9251_v14  ;;  %v9262_v14 = vld [vmem:[#allocation66_spill] sm:$0xff]  ;;  %v9280_v27 = vld [vmem:[#allocation103_spill] sm:$0xff] }
 0x6db   :  { %3419 = vmatprep.mubr.f32.mxu0 %v8935_v31  ;;  %3490 = vmatprep.mubr.f32.mxu1 %v8935_v31 }
 0x6dd   :  { %6061 = vmatpush1.bf16.msra.mxu0 %v9252_v53  ;;  %6093 = vmatpush1.bf16.msra.mxu1 %v9253_v28  ;;  %v9263_v53 = vld [vmem:[#allocation67_spill] sm:$0xff]  ;;  %v9264_v28 = vld [vmem:[#allocation68_spill] sm:$0xff] }
 0x6de   :  { %6063 = vmatprep.subr.bf16.mxu0 %v9254_v49  ;;  %6095 = vmatprep.subr.bf16.mxu1 %v9255_v39  ;;  %v9265_v49 = vld [vmem:[#allocation69_spill] sm:$0xff]  ;;  %v9266_v39 = vld [vmem:[#allocation70_spill] sm:$0xff] }
 0x6e1   :  { %6065 = vmatpush1.bf16.msra.mxu0 %v9256_v60  ;;  %6097 = vmatpush1.bf16.msra.mxu1 %v9257_v58  ;;  %v9267_v60 = vld [vmem:[#allocation71_spill] sm:$0xff]  ;;  %v9268_v58 = vld [vmem:[#allocation72_spill] sm:$0xff] }
 0x6e2   :  { %6067 = vmatprep.subr.bf16.mxu0 %v9258_v1  ;;  %6099 = vmatprep.subr.bf16.mxu1 %v9259_v34  ;;  %v9269_v1 = vld [vmem:[#allocation73_spill] sm:$0xff]  ;;  %v9270_v34 = vld [vmem:[#allocation74_spill] sm:$0xff] }
 0x6e5   :  { %6069 = vmatpush1.bf16.msra.mxu0 %v9260_v22  ;;  %6101 = vmatpush1.bf16.msra.mxu1 %v9261_v59  ;;  %v9271_v22 = vld [vmem:[#allocation75_spill] sm:$0xff]  ;;  %v9272_v59 = vld [vmem:[#allocation76_spill] sm:$0xff] }
 0x6e6   :  { %6071 = vmatprep.subr.bf16.mxu0 %v9262_v14  ;;  %6103 = vmatprep.subr.bf16.mxu1 %v9263_v53  ;;  %v9273_v14 = vld [vmem:[#allocation77_spill] sm:$0xff]  ;;  %v9274_v53 = vld [vmem:[#allocation78_spill] sm:$0xff] }
 0x6e9   :  { %6073 = vmatpush1.bf16.msra.mxu0 %v9264_v28  ;;  %6105 = vmatpush1.bf16.msra.mxu1 %v9265_v49  ;;  %v9275_v28 = vld [vmem:[#allocation79_spill] sm:$0xff]  ;;  %v9276_v49 = vld [vmem:[#allocation80_spill] sm:$0xff] }
 0x6ea   :  { %6075 = vmatprep.subr.bf16.mxu0 %v9266_v39  ;;  %6107 = vmatprep.subr.bf16.mxu1 %v9267_v60  ;;  %v9277_v39 = vld [vmem:[#allocation81_spill] sm:$0xff]  ;;  %v9278_v60 = vld [vmem:[#allocation82_spill] sm:$0xff] }
 0x6ed   :  { %6077 = vmatpush1.bf16.msra.mxu0 %v9268_v58  ;;  %6109 = vmatpush1.bf16.msra.mxu1 %v9269_v1  ;;  %v9279_v58 = vld [vmem:[#allocation83_spill] sm:$0xff] }
 0x6ee   :  { %6079 = vmatprep.subr.bf16.mxu0 %v9270_v34  ;;  %6111 = vmatprep.subr.bf16.mxu1 %v9271_v22 }
 0x6f1   :  { %6081 = vmatpush1.bf16.msra.mxu0 %v9272_v59  ;;  %6113 = vmatpush1.bf16.msra.mxu1 %v9273_v14 }
 0x6f2   :  { %6083 = vmatprep.subr.bf16.mxu0 %v9274_v53  ;;  %6115 = vmatprep.subr.bf16.mxu1 %v9275_v28 }
 0x6f5   :  { %6085 = vmatpush1.bf16.msra.mxu0 %v9276_v49  ;;  %6117 = vmatpush1.bf16.msra.mxu1 %v9277_v39 }
 0x6f6   :  { %6119 = vmatprep.subr.bf16.mxu0 %v9278_v60  ;;  %6151 = vmatprep.subr.bf16.mxu1 %v9279_v58 }
 0x770   :  { %v3080_v1 = vpop.f32.mrb[24].mxu0  ;;  %v3151_v34 = vpop.f32.mrb[24].mxu1 }
 0x771   :  { %v3156_v22 = vadd.f32 %v3080_v1, %v9280_v27  ;;  %v3082_v45 = vpop.f32.mrb[25].mxu0  ;;  %v3153_v59 = vpop.f32.mrb[25].mxu1  ;;  %v3158_v28 = vadd.f32 %v3151_v34, %v9082_v19 }
 0x772   :  { %v3157_v14 = vadd.f32 %v3082_v45, %v9081_v20  ;;  %v3159_v39 = vadd.f32 %v3153_v59, %v7775_v44 }
 0x773   :  { %v3160_v51 = vmul.f32 0.5, %v3156_v22 }
 0x774   :  { %v3164_v53 = vmul.f32 0.5, %v3157_v14  ;;  %v3169_v60 = vmul.f32 0.5, %v3159_v39 }
 0x775   :  { %6779 = vtanh.f32 %v3160_v51 }
 0x776   :  { %6781 = vtanh.f32 %v3164_v53 }
 0x777   :  { %6783 = vtanh.f32 %v3158_v28 }
 0x778   :  { %6785 = vtanh.f32 %v3169_v60 }
 0x77f   :  { %v6780_v49 = vpop.eup %6779 }
 0x780   :  { %v6782_v58 = vpop.eup %6781  ;;  %v3162_v29 = vadd.f32 1.0, %v6780_v49 }
 0x781   :  { %v3166_v33 = vadd.f32 1.0, %v6782_v58  ;;  %v6784_v27 = vpop.eup %6783 }
 0x782   :  { %v3163_v1 = vmul.f32 0.5, %v3162_v29  ;;  %v6786_v59 = vpop.eup %6785 }
 0x783   :  { %v3167_v25 = vmul.f32 0.5, %v3166_v33  ;;  %v3171_v28 = vadd.f32 1.0, %v6786_v59 }
 0x784   :  { %v3174_v21 = vmul.f32 %v6784_v27, %v3163_v1 }
 0x785   :  { %v3173_v45 = vmul.f32 %v3167_v25, %v8208_v37  ;;  %v3172_v39 = vmul.f32 0.5, %v3171_v28  ;;  %v9283_v28 = vld [vmem:[#allocation22_spill] sm:$0xff] }
 0x787   :  { %v3175_v14 = vadd.f32 %v3174_v21, %v3173_v45 }
 0x789   :  { %6787 = vtanh.f32 %v3175_v14  ;;  %v8349_v53 = vsel %vm2719_vm4, %v3175_v14, %v8208_v37  ;;  %v9282_v14 = vld [vmem:[#allocation21_spill] sm:$0xff] }
 0x793   :  { %v6788_v34 = vpop.eup %6787 }
 0x794   :  { %v3177_v49 = vmul.f32 %v6788_v34, %v3172_v39  ;;  %v9284_v39 = vld [vmem:[#allocation23_spill] sm:$0xff]  ;;  %v9285_v34 = vld [vmem:[#allocation24_spill] sm:$0xff] }
 0x796   :  { %v8354_v29 = vsel %vm2719_vm4, %v3177_v49, %v8213_v7 }
 0x797   :  { %3420 = vmatmul.mubr.f32.vlgmr.msra.gmra.mrb[26].mxu0 %v8354_v29  ;;  %3491 = vmatmul.mubr.f32.vlgmr.msra.gmra.mrb[26].mxu1 %v8354_v29 }
 0x798   :  { %6121 = vmatpush1.bf16.msra.mxu0 %v9020_v57  ;;  %6153 = vmatpush1.bf16.msra.mxu1 %v9021_v35 }
 0x799   :  { %6123 = vmatprep.subr.bf16.mxu0 %v9022_v55  ;;  %6155 = vmatprep.subr.bf16.mxu1 %v9023_v5 }
 0x79a   :  { %3561 = vmatprep.mubr.f32.mxu0 %v8935_v31  ;;  %3632 = vmatprep.mubr.f32.mxu1 %v8935_v31 }
 0x79c   :  { %6125 = vmatpush1.bf16.msra.mxu0 %v9084_v17  ;;  %6157 = vmatpush1.bf16.msra.mxu1 %v9085_v32 }
 0x79d   :  { %6127 = vmatprep.subr.bf16.mxu0 %v9086_v46  ;;  %6159 = vmatprep.subr.bf16.mxu1 %v9027_v26 }
 0x7a0   :  { %6129 = vmatpush1.bf16.msra.mxu0 %v9028_v43  ;;  %6161 = vmatpush1.bf16.msra.mxu1 %v9029_v4 }
 0x7a1   :  { %6131 = vmatprep.subr.bf16.mxu0 %v9030_v18  ;;  %6163 = vmatprep.subr.bf16.mxu1 %v9031_v61 }
 0x7a4   :  { %6133 = vmatpush1.bf16.msra.mxu0 %v9032_v47  ;;  %6165 = vmatpush1.bf16.msra.mxu1 %v9033_v2 }
 0x7a5   :  { %6135 = vmatprep.subr.bf16.mxu0 %v9034_v0  ;;  %6167 = vmatprep.subr.bf16.mxu1 %v9035_v11 }
 0x7a8   :  { %6137 = vmatpush1.bf16.msra.mxu0 %v9036_v36  ;;  %6169 = vmatpush1.bf16.msra.mxu1 %v9037_v63 }
 0x7a9   :  { %6139 = vmatprep.subr.bf16.mxu0 %v7614_v42  ;;  %6171 = vmatprep.subr.bf16.mxu1 %v7616_v38 }
 0x7ab   :  { %v3275_v21 = vpop.f32.mrb[12].mxu0  ;;  %v3346_v37 = vpop.f32.mrb[12].mxu1 }
 0x7ac   :  { %6141 = vmatpush1.bf16.msra.mxu0 %v7620_v40  ;;  %6173 = vmatpush1.bf16.msra.mxu1 %v7622_v6  ;;  %v6584_v7 = vadd.f32 %v3275_v21, %v9232_v41  ;;  %v3277_v33 = vpop.f32.mrb[13].mxu0  ;;  %v3348_v25 = vpop.f32.mrb[13].mxu1  ;;  %v6598_v22 = vadd.f32 %v3346_v37, %v7437_v15 }
 0x7ad   :  { %6143 = vmatprep.subr.bf16.mxu0 %v7626_v48  ;;  %6175 = vmatprep.subr.bf16.mxu1 %v7628_v62  ;;  %v6585_v27 = vadd.f32 %v3277_v33, %v7698_v30  ;;  %v6599_v1 = vadd.f32 %v3348_v25, %v7442_v23  ;;  %v8408_v37 = vpop.permute.xlu0 %3683  ;;  %v9289_v25 = vld [vmem:[#allocation26_spill] sm:$0xff] }
 0x7ae   :  { %v3663_v60 = vmul.f32 0.5, %v6584_v7  ;;  %9287 = vst [vmem:[#allocation95_spill] sm:$0xff] %v8408_v37  ;;  %v9288_v7 = vld [vmem:[#allocation94_spill] sm:$0xff]  ;;  %vm3685_vm6 = vcmp.eq.s32.totalorder %v8408_v37, 1  ;;  %v9332_v37 = vld [vmem:[#allocation71_spill] sm:$0xff] }
 0x7af   :  { %v3667_v58 = vmul.f32 0.5, %v6585_v27  ;;  %v3672_v45 = vmul.f32 0.5, %v6599_v1  ;;  %v9290_v27 = vld [vmem:[#allocation27_spill] sm:$0xff]  ;;  %v9293_v1 = vld [vmem:[#allocation30_spill] sm:$0xff] }
 0x7b0   :  { %6145 = vmatpush1.bf16.msra.mxu0 %v7632_v13  ;;  %6177 = vmatpush1.bf16.msra.mxu1 %v7634_v54  ;;  %6789 = vtanh.f32 %v3663_v60  ;;  %v9291_v60 = vld [vmem:[#allocation28_spill] sm:$0xff] }
 0x7b1   :  { %6791 = vtanh.f32 %v3667_v58  ;;  %6147 = vmatprep.subr.bf16.mxu0 %v7638_v24  ;;  %6179 = vmatprep.subr.bf16.mxu1 %v7640_v56  ;;  %v9292_v58 = vld [vmem:[#allocation29_spill] sm:$0xff] }
 0x7b2   :  { %6793 = vtanh.f32 %v6598_v22 }
 0x7b3   :  { %6795 = vtanh.f32 %v3672_v45  ;;  %v9294_v45 = vld [vmem:[#allocation31_spill] sm:$0xff] }
 0x7b4   :  { %6149 = vmatpush1.bf16.msra.mxu0 %v7644_v50  ;;  %6181 = vmatpush1.bf16.msra.mxu1 %v7646_v52 }
 0x7b5   :  { %6183 = vmatprep.subr.bf16.mxu0 %v7315_v3  ;;  %6215 = vmatprep.subr.bf16.mxu1 %v7317_v8 }
 0x7b7   :  { %3562 = vmatmul.mubr.f32.vlgmr.msra.gmra.mrb[26].mxu0 %v8303_v10  ;;  %3633 = vmatmul.mubr.f32.vlgmr.msra.gmra.mrb[26].mxu1 %v8303_v10 }
 0x7b8   :  { %6185 = vmatpush1.bf16.msra.mxu0 %v7319_v9  ;;  %6217 = vmatpush1.bf16.msra.mxu1 %v7322_v12  ;;  %v9286_v12 = vld [vmem:[#allocation25_spill] sm:$0xff] }
 0x7b9   :  { %6187 = vmatprep.subr.bf16.mxu0 %v7327_v16  ;;  %6219 = vmatprep.subr.bf16.mxu1 %v9282_v14 }
 0x7ba   :  { %v6790_v51 = vpop.eup %6789  ;;  %3756 = vmatprep.mubr.f32.mxu0 %v8935_v31  ;;  %3827 = vmatprep.mubr.f32.mxu1 %v8935_v31 }
 0x7bb   :  { %v6792_v3 = vpop.eup %6791  ;;  %v3665_v8 = vadd.f32 1.0, %v6790_v51  ;;  %v9295_v51 = vld [vmem:[#allocation32_spill] sm:$0xff] }
 0x7bc   :  { %v3669_v59 = vadd.f32 1.0, %v6792_v3  ;;  %6189 = vmatpush1.bf16.msra.mxu0 %v9283_v28  ;;  %6221 = vmatpush1.bf16.msra.mxu1 %v9284_v39  ;;  %v6794_v16 = vpop.eup %6793  ;;  %v9296_v3 = vld [vmem:[#allocation33_spill] sm:$0xff]  ;;  %v9298_v28 = vld [vmem:[#allocation35_spill] sm:$0xff] }
 0x7bd   :  { %v3666_v9 = vmul.f32 0.5, %v3665_v8  ;;  %6191 = vmatprep.subr.bf16.mxu0 %v9285_v34  ;;  %6223 = vmatprep.subr.bf16.mxu1 %v9286_v12  ;;  %v6796_v8 = vpop.eup %6795  ;;  %v9300_v34 = vld [vmem:[#allocation37_spill] sm:$0xff]  ;;  %v9301_v12 = vld [vmem:[#allocation38_spill] sm:$0xff] }
 0x7be   :  { %v3670_v49 = vmul.f32 0.5, %v3669_v59  ;;  %v9297_v59 = vld [vmem:[#allocation34_spill] sm:$0xff]  ;;  %v3674_v39 = vadd.f32 1.0, %v6796_v8  ;;  %v9312_v8 = vld [vmem:[#allocation49_spill] sm:$0xff] }
 0x7bf   :  { %v3677_v21 = vmul.f32 %v6794_v16, %v3666_v9  ;;  %v9299_v9 = vld [vmem:[#allocation36_spill] sm:$0xff]  ;;  %v9302_v16 = vld [vmem:[#allocation39_spill] sm:$0xff] }
 0x7c0   :  { %v3676_v33 = vmul.f32 %v3670_v49, %v9288_v7  ;;  %6193 = vmatpush1.bf16.msra.mxu0 %v9289_v25  ;;  %6225 = vmatpush1.bf16.msra.mxu1 %v9290_v27  ;;  %v3675_v49 = vmul.f32 0.5, %v3674_v39  ;;  %v9305_v27 = vld [vmem:[#allocation42_spill] sm:$0xff] }
 0x7c1   :  { %6195 = vmatprep.subr.bf16.mxu0 %v9291_v60  ;;  %6227 = vmatprep.subr.bf16.mxu1 %v9292_v58  ;;  %v9306_v60 = vld [vmem:[#allocation43_spill] sm:$0xff]  ;;  %v9307_v58 = vld [vmem:[#allocation44_spill] sm:$0xff]  ;;  %v9315_v39 = vld [vmem:[#allocation54_spill] sm:$0xff] }
 0x7c2   :  { %v3678_v22 = vadd.f32 %v3677_v21, %v3676_v33  ;;  %v9303_v21 = vld [vmem:[#allocation40_spill] sm:$0xff] }
 0x7c4   :  { %6797 = vtanh.f32 %v3678_v22  ;;  %6197 = vmatpush1.bf16.msra.mxu0 %v9293_v1  ;;  %6229 = vmatpush1.bf16.msra.mxu1 %v9294_v45  ;;  %v8421_v14 = vsel %vm3685_vm6, %v3678_v22, %v9288_v7  ;;  %v9304_v7 = vld [vmem:[#allocation41_spill] sm:$0xff]  ;;  %v9309_v1 = vld [vmem:[#allocation46_spill] sm:$0xff]  ;;  %v9310_v45 = vld [vmem:[#allocation47_spill] sm:$0xff] }
 0x7c5   :  { %6199 = vmatprep.subr.bf16.mxu0 %v9295_v51  ;;  %6231 = vmatprep.subr.bf16.mxu1 %v9296_v3  ;;  %v9308_v22 = vld [vmem:[#allocation45_spill] sm:$0xff]  ;;  %v9311_v3 = vld [vmem:[#allocation48_spill] sm:$0xff] }
 0x7c8   :  { %6201 = vmatpush1.bf16.msra.mxu0 %v9297_v59  ;;  %6233 = vmatpush1.bf16.msra.mxu1 %v9298_v28  ;;  %v9313_v59 = vld [vmem:[#allocation52_spill] sm:$0xff]  ;;  %v9314_v28 = vld [vmem:[#allocation53_spill] sm:$0xff] }
 0x7c9   :  { %6203 = vmatprep.subr.bf16.mxu0 %v9299_v9  ;;  %6235 = vmatprep.subr.bf16.mxu1 %v9300_v34  ;;  %v9316_v9 = vld [vmem:[#allocation55_spill] sm:$0xff]  ;;  %v9318_v34 = vld [vmem:[#allocation57_spill] sm:$0xff] }
 0x7cc   :  { %6205 = vmatpush1.bf16.msra.mxu0 %v9301_v12  ;;  %6237 = vmatpush1.bf16.msra.mxu1 %v9302_v16  ;;  %v9319_v12 = vld [vmem:[#allocation58_spill] sm:$0xff]  ;;  %v9320_v16 = vld [vmem:[#allocation59_spill] sm:$0xff] }
 0x7cd   :  { %6207 = vmatprep.subr.bf16.mxu0 %v9303_v21  ;;  %6239 = vmatprep.subr.bf16.mxu1 %v9304_v7  ;;  %v9322_v21 = vld [vmem:[#allocation61_spill] sm:$0xff]  ;;  %v9323_v7 = vld [vmem:[#allocation62_spill] sm:$0xff] }
 0x7ce   :  { %v6798_v33 = vpop.eup %6797 }
 0x7cf   :  { %v3680_v25 = vmul.f32 %v6798_v33, %v3675_v49  ;;  %v9321_v49 = vld [vmem:[#allocation60_spill] sm:$0xff]  ;;  %v9324_v33 = vld [vmem:[#allocation63_spill] sm:$0xff] }
 0x7d0   :  { %6209 = vmatpush1.bf16.msra.mxu0 %v9305_v27  ;;  %6241 = vmatpush1.bf16.msra.mxu1 %v9306_v60  ;;  %v9326_v27 = vld [vmem:[#allocation65_spill] sm:$0xff]  ;;  %v9327_v60 = vld [vmem:[#allocation66_spill] sm:$0xff] }
 0x7d1   :  { %6211 = vmatprep.subr.bf16.mxu0 %v9307_v58  ;;  %6243 = vmatprep.subr.bf16.mxu1 %v9308_v22  ;;  %v8442_v51 = vsel %vm3685_vm6, %v3680_v25, %v8303_v10  ;;  %v9317_v10 = vld [vmem:[#allocation56_spill] sm:$0xff]  ;;  %v9328_v58 = vld [vmem:[#allocation67_spill] sm:$0xff] }
 0x7d2   :  { %v9325_v25 = vld [vmem:[#allocation64_spill] sm:$0xff] }
 0x7d3   :  { %v9329_v22 = vld [vmem:[#allocation68_spill] sm:$0xff] }
 0x7d4   :  { %6213 = vmatpush1.bf16.msra.mxu0 %v9309_v1  ;;  %6245 = vmatpush1.bf16.msra.mxu1 %v9310_v45  ;;  %v9330_v1 = vld [vmem:[#allocation69_spill] sm:$0xff]  ;;  %v9331_v45 = vld [vmem:[#allocation70_spill] sm:$0xff] }
 0x7d5   :  { %6247 = vmatprep.subr.bf16.mxu0 %v9311_v3  ;;  %6279 = vmatprep.subr.bf16.mxu1 %v9312_v8 }
 0x7d7   :  { %3757 = vmatmul.mubr.f32.vlgmr.msra.gmra.mrb[14].mxu0 %v8442_v51  ;;  %3828 = vmatmul.mubr.f32.vlgmr.msra.gmra.mrb[14].mxu1 %v8442_v51 }
 0x7d8   :  { %6249 = vmatpush1.bf16.msra.mxu0 %v9313_v59  ;;  %6281 = vmatpush1.bf16.msra.mxu1 %v9314_v28 }
 0x7d9   :  { %6251 = vmatprep.subr.bf16.mxu0 %v9315_v39  ;;  %6283 = vmatprep.subr.bf16.mxu1 %v9316_v9 }
 0x7da   :  { %3902 = vmatprep.mubr.f32.mxu0 %v8935_v31  ;;  %3973 = vmatprep.mubr.f32.mxu1 %v8935_v31 }
 0x7dc   :  { %6253 = vmatpush1.bf16.msra.mxu0 %v9317_v10  ;;  %6285 = vmatpush1.bf16.msra.mxu1 %v9318_v34 }
 0x7dd   :  { %6255 = vmatprep.subr.bf16.mxu0 %v9319_v12  ;;  %6287 = vmatprep.subr.bf16.mxu1 %v9320_v16 }
 0x7e0   :  { %6257 = vmatpush1.bf16.msra.mxu0 %v9321_v49  ;;  %6289 = vmatpush1.bf16.msra.mxu1 %v9322_v21  ;;  %v9333_v21 = vld [vmem:[#allocation72_spill] sm:$0xff]  ;;  %v9345_v49 = vld [vmem:[#allocation103_spill] sm:$0xff] }
 0x7e1   :  { %6259 = vmatprep.subr.bf16.mxu0 %v9323_v7  ;;  %6291 = vmatprep.subr.bf16.mxu1 %v9324_v33  ;;  %v9334_v7 = vld [vmem:[#allocation73_spill] sm:$0xff]  ;;  %v9335_v33 = vld [vmem:[#allocation74_spill] sm:$0xff] }
 0x7e4   :  { %6261 = vmatpush1.bf16.msra.mxu0 %v9325_v25  ;;  %6293 = vmatpush1.bf16.msra.mxu1 %v9326_v27  ;;  %v9336_v25 = vld [vmem:[#allocation75_spill] sm:$0xff]  ;;  %v9337_v27 = vld [vmem:[#allocation76_spill] sm:$0xff] }
 0x7e5   :  { %6263 = vmatprep.subr.bf16.mxu0 %v9327_v60  ;;  %6295 = vmatprep.subr.bf16.mxu1 %v9328_v58  ;;  %v9338_v60 = vld [vmem:[#allocation77_spill] sm:$0xff]  ;;  %v9339_v58 = vld [vmem:[#allocation78_spill] sm:$0xff] }
 0x7e8   :  { %6265 = vmatpush1.bf16.msra.mxu0 %v9329_v22  ;;  %6297 = vmatpush1.bf16.msra.mxu1 %v9330_v1  ;;  %v9340_v22 = vld [vmem:[#allocation79_spill] sm:$0xff]  ;;  %v9341_v1 = vld [vmem:[#allocation80_spill] sm:$0xff] }
 0x7e9   :  { %6267 = vmatprep.subr.bf16.mxu0 %v9331_v45  ;;  %6299 = vmatprep.subr.bf16.mxu1 %v9332_v37  ;;  %v9342_v45 = vld [vmem:[#allocation81_spill] sm:$0xff]  ;;  %v9343_v37 = vld [vmem:[#allocation82_spill] sm:$0xff] }
 0x7ec   :  { %6269 = vmatpush1.bf16.msra.mxu0 %v9333_v21  ;;  %6301 = vmatpush1.bf16.msra.mxu1 %v9334_v7  ;;  %v9344_v21 = vld [vmem:[#allocation83_spill] sm:$0xff] }
 0x7ed   :  { %6271 = vmatprep.subr.bf16.mxu0 %v9335_v33  ;;  %6303 = vmatprep.subr.bf16.mxu1 %v9336_v25 }
 0x7f0   :  { %6273 = vmatpush1.bf16.msra.mxu0 %v9337_v27  ;;  %6305 = vmatpush1.bf16.msra.mxu1 %v9338_v60 }
 0x7f1   :  { %6275 = vmatprep.subr.bf16.mxu0 %v9339_v58  ;;  %6307 = vmatprep.subr.bf16.mxu1 %v9340_v22 }
 0x7f4   :  { %6277 = vmatpush1.bf16.msra.mxu0 %v9341_v1  ;;  %6309 = vmatpush1.bf16.msra.mxu1 %v9342_v45 }
 0x7f5   :  { %6311 = vmatprep.subr.bf16.mxu0 %v9343_v37  ;;  %6343 = vmatprep.subr.bf16.mxu1 %v9344_v21 }
 0x88a   :  { %v3563_v7 = vpop.f32.mrb[26].mxu0  ;;  %v3634_v33 = vpop.f32.mrb[26].mxu1 }
 0x88b   :  { %v3639_v25 = vadd.f32 %v3563_v7, %v9345_v49  ;;  %v3565_v16 = vpop.f32.mrb[27].mxu0  ;;  %v3636_v27 = vpop.f32.mrb[27].mxu1  ;;  %v3641_v22 = vadd.f32 %v3634_v33, %v9082_v19 }
 0x88c   :  { %v3640_v60 = vadd.f32 %v3565_v16, %v9081_v20  ;;  %v3642_v45 = vadd.f32 %v3636_v27, %v7775_v44 }
 0x88d   :  { %v3643_v12 = vmul.f32 0.5, %v3639_v25 }
 0x88e   :  { %v3647_v58 = vmul.f32 0.5, %v3640_v60  ;;  %v3652_v37 = vmul.f32 0.5, %v3642_v45 }
 0x88f   :  { %6799 = vtanh.f32 %v3643_v12 }
 0x890   :  { %6801 = vtanh.f32 %v3647_v58 }
 0x891   :  { %6803 = vtanh.f32 %v3641_v22 }
 0x892   :  { %6805 = vtanh.f32 %v3652_v37 }
 0x899   :  { %v6800_v1 = vpop.eup %6799 }
 0x89a   :  { %v6802_v21 = vpop.eup %6801  ;;  %v3645_v34 = vadd.f32 1.0, %v6800_v1 }
 0x89b   :  { %v3649_v10 = vadd.f32 1.0, %v6802_v21  ;;  %v6804_v49 = vpop.eup %6803 }
 0x89c   :  { %v3646_v7 = vmul.f32 0.5, %v3645_v34  ;;  %v6806_v27 = vpop.eup %6805 }
 0x89d   :  { %v3650_v9 = vmul.f32 0.5, %v3649_v10  ;;  %v3654_v60 = vadd.f32 1.0, %v6806_v27 }
 0x89e   :  { %v3657_v39 = vmul.f32 %v6804_v49, %v3646_v7 }
 0x89f   :  { %v3656_v16 = vmul.f32 %v3650_v9, %v8349_v53  ;;  %v3655_v1 = vmul.f32 0.5, %v3654_v60 }
 0x8a1   :  { %v3658_v25 = vadd.f32 %v3657_v39, %v3656_v16 }
 0x8a3   :  { %6807 = vtanh.f32 %v3658_v25  ;;  %v8490_v33 = vsel %vm3202_vm5, %v3658_v25, %v8349_v53 }
 0x8aa   :  { %v3758_v58 = vpop.f32.mrb[14].mxu0  ;;  %v3829_v22 = vpop.f32.mrb[14].mxu1 }
 0x8ab   :  { %v6586_v21 = vadd.f32 %v3758_v58, %v9232_v41  ;;  %v3760_v37 = vpop.f32.mrb[15].mxu0  ;;  %v3831_v34 = vpop.f32.mrb[15].mxu1  ;;  %v6600_v7 = vadd.f32 %v3829_v22, %v7437_v15 }
 0x8ac   :  { %v6587_v10 = vadd.f32 %v3760_v37, %v7698_v30  ;;  %v6601_v30 = vadd.f32 %v3831_v34, %v7442_v23 }
 0x8ad   :  { %v6808_v49 = vpop.eup %6807  ;;  %v4146_v9 = vmul.f32 0.5, %v6586_v21 }
 0x8ae   :  { %v3660_v39 = vmul.f32 %v6808_v49, %v3655_v1  ;;  %v4150_v45 = vmul.f32 0.5, %v6587_v10  ;;  %v4155_v15 = vmul.f32 0.5, %v6601_v30  ;;  %v9347_v10 = vld [vmem:[#allocation54_spill] sm:$0xff]  ;;  %v9348_v49 = vld [vmem:[#allocation55_spill] sm:$0xff]  ;;  %v9357_v30 = vld [vmem:[#allocation64_spill] sm:$0xff] }
 0x8af   :  { %6809 = vtanh.f32 %v4146_v9  ;;  %v9349_v9 = vld [vmem:[#allocation56_spill] sm:$0xff] }
 0x8b0   :  { %6811 = vtanh.f32 %v4150_v45  ;;  %v8498_v53 = vsel %vm3202_vm5, %v3660_v39, %v8354_v29  ;;  %v9352_v39 = vld [vmem:[#allocation59_spill] sm:$0xff]  ;;  %v9353_v45 = vld [vmem:[#allocation60_spill] sm:$0xff] }
 0x8b1   :  { %3903 = vmatmul.mubr.f32.vlgmr.msra.gmra.mrb[28].mxu0 %v8498_v53  ;;  %3974 = vmatmul.mubr.f32.vlgmr.msra.gmra.mrb[28].mxu1 %v8498_v53  ;;  %6813 = vtanh.f32 %v6600_v7  ;;  %v9356_v7 = vld [vmem:[#allocation63_spill] sm:$0xff] }
 0x8b2   :  { %6313 = vmatpush1.bf16.msra.mxu0 %v9020_v57  ;;  %6345 = vmatpush1.bf16.msra.mxu1 %v9021_v35  ;;  %6815 = vtanh.f32 %v4155_v15  ;;  %v9358_v15 = vld [vmem:[#allocation65_spill] sm:$0xff] }
 0x8b3   :  { %6315 = vmatprep.subr.bf16.mxu0 %v9022_v55  ;;  %6347 = vmatprep.subr.bf16.mxu1 %v9023_v5 }
 0x8b4   :  { %4044 = vmatprep.mubr.f32.mxu0 %v8935_v31  ;;  %4115 = vmatprep.mubr.f32.mxu1 %v8935_v31 }
 0x8b6   :  { %6317 = vmatpush1.bf16.msra.mxu0 %v9084_v17  ;;  %6349 = vmatpush1.bf16.msra.mxu1 %v9085_v32 }
 0x8b7   :  { %6319 = vmatprep.subr.bf16.mxu0 %v9086_v46  ;;  %6351 = vmatprep.subr.bf16.mxu1 %v9027_v26 }
 0x8b9   :  { %v6810_v41 = vpop.eup %6809 }
 0x8ba   :  { %v6812_v29 = vpop.eup %6811  ;;  %v4148_v23 = vadd.f32 1.0, %v6810_v41  ;;  %6321 = vmatpush1.bf16.msra.mxu0 %v9028_v43  ;;  %6353 = vmatpush1.bf16.msra.mxu1 %v9029_v4  ;;  %v9359_v41 = vld [vmem:[#allocation66_spill] sm:$0xff] }
 0x8bb   :  { %v4152_v16 = vadd.f32 1.0, %v6812_v29  ;;  %6323 = vmatprep.subr.bf16.mxu0 %v9030_v18  ;;  %6355 = vmatprep.subr.bf16.mxu1 %v9031_v61  ;;  %v6814_v12 = vpop.eup %6813  ;;  %v9360_v29 = vld [vmem:[#allocation67_spill] sm:$0xff] }
 0x8bc   :  { %v4149_v25 = vmul.f32 0.5, %v4148_v23  ;;  %v6816_v21 = vpop.eup %6815  ;;  %v9361_v23 = vld [vmem:[#allocation68_spill] sm:$0xff] }
 0x8bd   :  { %v4153_v27 = vmul.f32 0.5, %v4152_v16  ;;  %v9362_v16 = vld [vmem:[#allocation69_spill] sm:$0xff] }
 0x8be   :  { %v4160_v60 = vmul.f32 %v6814_v12, %v4149_v25  ;;  %6325 = vmatpush1.bf16.msra.mxu0 %v9032_v47  ;;  %6357 = vmatpush1.bf16.msra.mxu1 %v9033_v2  ;;  %v9363_v25 = vld [vmem:[#allocation70_spill] sm:$0xff]  ;;  %v9364_v12 = vld [vmem:[#allocation71_spill] sm:$0xff] }
 0x8bf   :  { %v4159_v58 = vmul.f32 %v4153_v27, %v8421_v14  ;;  %6327 = vmatprep.subr.bf16.mxu0 %v9034_v0  ;;  %6359 = vmatprep.subr.bf16.mxu1 %v9035_v11  ;;  %v4157_v14 = vadd.f32 1.0, %v6816_v21  ;;  %v9365_v27 = vld [vmem:[#allocation72_spill] sm:$0xff] }
 0x8c0   :  { %v9369_v21 = vld [vmem:[#allocation76_spill] sm:$0xff] }
 0x8c1   :  { %v4161_v22 = vadd.f32 %v4160_v60, %v4159_v58  ;;  %v4158_v37 = vmul.f32 0.5, %v4157_v14  ;;  %v9366_v60 = vld [vmem:[#allocation73_spill] sm:$0xff]  ;;  %v9367_v58 = vld [vmem:[#allocation74_spill] sm:$0xff] }
 0x8c2   :  { %6329 = vmatpush1.bf16.msra.mxu0 %v9036_v36  ;;  %6361 = vmatpush1.bf16.msra.mxu1 %v9037_v63  ;;  %v9370_v14 = vld [vmem:[#allocation77_spill] sm:$0xff] }
 0x8c3   :  { %6817 = vtanh.f32 %v4161_v22  ;;  %6331 = vmatprep.subr.bf16.mxu0 %v7614_v42  ;;  %6363 = vmatprep.subr.bf16.mxu1 %v7616_v38  ;;  %v9368_v22 = vld [vmem:[#allocation75_spill] sm:$0xff] }
 0x8c6   :  { %6333 = vmatpush1.bf16.msra.mxu0 %v7620_v40  ;;  %6365 = vmatpush1.bf16.msra.mxu1 %v7622_v6 }
 0x8c7   :  { %6335 = vmatprep.subr.bf16.mxu0 %v7626_v48  ;;  %6367 = vmatprep.subr.bf16.mxu1 %v7628_v62 }
 0x8ca   :  { %6337 = vmatpush1.bf16.msra.mxu0 %v7632_v13  ;;  %6369 = vmatpush1.bf16.msra.mxu1 %v7634_v54 }
 0x8cb   :  { %6339 = vmatprep.subr.bf16.mxu0 %v7638_v24  ;;  %6371 = vmatprep.subr.bf16.mxu1 %v7640_v56 }
 0x8cd   :  { %v6818_v34 = vpop.eup %6817 }
 0x8ce   :  { %v8534_v1 = vmul.f32 %v6818_v34, %v4158_v37  ;;  %6341 = vmatpush1.bf16.msra.mxu0 %v7644_v50  ;;  %6373 = vmatpush1.bf16.msra.mxu1 %v7646_v52  ;;  %v9371_v37 = vld [vmem:[#allocation78_spill] sm:$0xff]  ;;  %v9372_v34 = vld [vmem:[#allocation79_spill] sm:$0xff] }
 0x8cf   :  { %6375 = vmatprep.subr.bf16.mxu0 %v9311_v3  ;;  %6407 = vmatprep.subr.bf16.mxu1 %v9312_v8  ;;  %v9350_v3 = vld [vmem:[#allocation57_spill] sm:$0xff]  ;;  %v9351_v8 = vld [vmem:[#allocation58_spill] sm:$0xff] }
 0x8d1   :  { %4045 = vmatmul.mubr.f32.vlgmr.msra.gmra.mrb[28].mxu0 %v8442_v51  ;;  %4116 = vmatmul.mubr.f32.vlgmr.msra.gmra.mrb[28].mxu1 %v8442_v51 }
 0x8d2   :  { %6377 = vmatpush1.bf16.msra.mxu0 %v9313_v59  ;;  %6409 = vmatpush1.bf16.msra.mxu1 %v9314_v28  ;;  %v9354_v59 = vld [vmem:[#allocation61_spill] sm:$0xff]  ;;  %v9355_v28 = vld [vmem:[#allocation62_spill] sm:$0xff] }
 0x8d3   :  { %6379 = vmatprep.subr.bf16.mxu0 %v9347_v10  ;;  %6411 = vmatprep.subr.bf16.mxu1 %v9348_v49  ;;  %v9373_v10 = vld [vmem:[#allocation80_spill] sm:$0xff]  ;;  %v9374_v49 = vld [vmem:[#allocation81_spill] sm:$0xff] }
 0x8d4   :  { %4234 = vmatprep.mubr.f32.mxu0 %v8935_v31  ;;  %4305 = vmatprep.mubr.f32.mxu1 %v8935_v31 }
 0x8d6   :  { %6381 = vmatpush1.bf16.msra.mxu0 %v9349_v9  ;;  %6413 = vmatpush1.bf16.msra.mxu1 %v9350_v3  ;;  %v9375_v9 = vld [vmem:[#allocation82_spill] sm:$0xff]  ;;  %v9376_v3 = vld [vmem:[#allocation83_spill] sm:$0xff] }
 0x8d7   :  { %6383 = vmatprep.subr.bf16.mxu0 %v9351_v8  ;;  %6415 = vmatprep.subr.bf16.mxu1 %v9352_v39 }
 0x8da   :  { %6385 = vmatpush1.bf16.msra.mxu0 %v9353_v45  ;;  %6417 = vmatpush1.bf16.msra.mxu1 %v9354_v59  ;;  %v9377_v45 = vld [vmem:[#allocation103_spill] sm:$0xff] }
 0x8db   :  { %6387 = vmatprep.subr.bf16.mxu0 %v9355_v28  ;;  %6419 = vmatprep.subr.bf16.mxu1 %v9356_v7 }
 0x8de   :  { %6389 = vmatpush1.bf16.msra.mxu0 %v9357_v30  ;;  %6421 = vmatpush1.bf16.msra.mxu1 %v9358_v15 }
 0x8df   :  { %6391 = vmatprep.subr.bf16.mxu0 %v9359_v41  ;;  %6423 = vmatprep.subr.bf16.mxu1 %v9360_v29 }
 0x8e2   :  { %6393 = vmatpush1.bf16.msra.mxu0 %v9361_v23  ;;  %6425 = vmatpush1.bf16.msra.mxu1 %v9362_v16 }
 0x8e3   :  { %6395 = vmatprep.subr.bf16.mxu0 %v9363_v25  ;;  %6427 = vmatprep.subr.bf16.mxu1 %v9364_v12 }
 0x8e6   :  { %6397 = vmatpush1.bf16.msra.mxu0 %v9365_v27  ;;  %6429 = vmatpush1.bf16.msra.mxu1 %v9366_v60 }
 0x8e7   :  { %6399 = vmatprep.subr.bf16.mxu0 %v9367_v58  ;;  %6431 = vmatprep.subr.bf16.mxu1 %v9368_v22 }
 0x8ea   :  { %6401 = vmatpush1.bf16.msra.mxu0 %v9369_v21  ;;  %6433 = vmatpush1.bf16.msra.mxu1 %v9370_v14 }
 0x8eb   :  { %6403 = vmatprep.subr.bf16.mxu0 %v9371_v37  ;;  %6435 = vmatprep.subr.bf16.mxu1 %v9372_v34 }
 0x8ee   :  { %6405 = vmatpush1.bf16.msra.mxu0 %v9373_v10  ;;  %6437 = vmatpush1.bf16.msra.mxu1 %v9374_v49 }
 0x8ef   :  { %6439 = vmatprep.subr.bf16.mxu0 %v9375_v9  ;;  %6471 = vmatprep.subr.bf16.mxu1 %v9376_v3 }
 0x9a4   :  { %v4046_v8 = vpop.f32.mrb[28].mxu0  ;;  %v4117_v39 = vpop.f32.mrb[28].mxu1 }
 0x9a5   :  { %v4122_v59 = vadd.f32 %v4046_v8, %v9377_v45  ;;  %v4048_v28 = vpop.f32.mrb[29].mxu0  ;;  %v4119_v7 = vpop.f32.mrb[29].mxu1  ;;  %v4124_v29 = vadd.f32 %v4117_v39, %v9082_v19 }
 0x9a6   :  { %v4123_v30 = vadd.f32 %v4048_v28, %v9081_v20  ;;  %v4125_v23 = vadd.f32 %v4119_v7, %v7775_v44  ;;  %v4576_v7 = vld [vmem:[#allocation12 + $0x28] sm:$0xff] }
 0x9a7   :  { %v4126_v15 = vmul.f32 0.5, %v4122_v59 }
 0x9a8   :  { %v4130_v41 = vmul.f32 0.5, %v4123_v30  ;;  %v4135_v16 = vmul.f32 0.5, %v4125_v23  ;;  %v4579_v23 = vld [vmem:[#allocation12 + $0x40] sm:$0xff] }
 0x9a9   :  { %6819 = vtanh.f32 %v4126_v15  ;;  %v4577_v15 = vld [vmem:[#allocation12 + $0x30] sm:$0xff] }
 0x9aa   :  { %6821 = vtanh.f32 %v4130_v41  ;;  %v4578_v41 = vld [vmem:[#allocation12 + $0x38] sm:$0xff] }
 0x9ab   :  { %6823 = vtanh.f32 %v4124_v29  ;;  %v6536_v29 = vpack.c.bf16 %v4578_v41, %v4577_v15  ;;  %v4676_v15 = vld [vmem:[#allocation14 + $0x58] sm:$0xff] }
 0x9ac   :  { %6825 = vtanh.f32 %v4135_v16  ;;  %v4580_v16 = vld [vmem:[#allocation12 + $0x48] sm:$0xff] }
 0x9b3   :  { %v6820_v25 = vpop.eup %6819 }
 0x9b4   :  { %v6822_v12 = vpop.eup %6821  ;;  %v4128_v27 = vadd.f32 1.0, %v6820_v25  ;;  %v6539_v25 = vpack.c.bf16 %v4580_v16, %v4579_v23  ;;  %v4678_v23 = vld [vmem:[#allocation14 + $0x68] sm:$0xff] }
 0x9b5   :  { %v4132_v60 = vadd.f32 1.0, %v6822_v12  ;;  %v6824_v22 = vpop.eup %6823 }
 0x9b6   :  { %v4129_v58 = vmul.f32 0.5, %v4128_v27  ;;  %v6826_v9 = vpop.eup %6825 }
 0x9b7   :  { %v4133_v21 = vmul.f32 0.5, %v4132_v60  ;;  %v4137_v3 = vadd.f32 1.0, %v6826_v9 }
 0x9b8   :  { %v4140_v14 = vmul.f32 %v6824_v22, %v4129_v58 }
 0x9b9   :  { %v4139_v37 = vmul.f32 %v4133_v21, %v8490_v33  ;;  %v4138_v8 = vmul.f32 0.5, %v4137_v3 }
 0x9bb   :  { %v4141_v34 = vadd.f32 %v4140_v14, %v4139_v37 }
 0x9bd   :  { %6827 = vtanh.f32 %v4141_v34  ;;  %v8584_v49 = vsel %vm3685_vm6, %v4141_v34, %v8490_v33  ;;  %v4574_v33 = vld [vmem:[#allocation12 + $0x18] sm:$0xff] }
 0x9c7   :  { %v6828_v39 = vpop.eup %6827 }
 0x9c8   :  { %v4143_v59 = vmul.f32 %v6828_v39, %v4138_v8 }
 0x9ca   :  { %v8589_v28 = vsel %vm3685_vm6, %v4143_v59, %v8498_v53 }
 0x9cb   :  { %4235 = vmatmul.mubr.f32.vlgmr.msra.gmra.mrb[30].mxu0 %v8589_v28  ;;  %4306 = vmatmul.mubr.f32.vlgmr.msra.gmra.mrb[30].mxu1 %v8589_v28 }
 0x9cc   :  { %6441 = vmatpush1.bf16.msra.mxu0 %v9020_v57  ;;  %6473 = vmatpush1.bf16.msra.mxu1 %v9021_v35  ;;  %v8623_v57 = vpop.permute.xlu1 %4166  ;;  %v4484_v35 = vld [vmem:[#allocation11 + $0x38] sm:$0xff] }
 0x9cd   :  { %6443 = vmatprep.subr.bf16.mxu0 %v9022_v55  ;;  %6475 = vmatprep.subr.bf16.mxu1 %v9023_v5  ;;  %vm4168_vm7 = vcmp.eq.s32.totalorder %v8623_v57, 1  ;;  %v4485_v5 = vld [vmem:[#allocation11 + $0x40] sm:$0xff]  ;;  %v4666_v57 = vld [vmem:[#allocation14 + $0x8] sm:$0xff] }
 0x9ce   :  { %4376 = vmatprep.mubr.f32.mxu0 %v8935_v31  ;;  %4447 = vmatprep.mubr.f32.mxu1 %v8935_v31 }
 0x9d0   :  { %6445 = vmatpush1.bf16.msra.mxu0 %v9084_v17  ;;  %6477 = vmatpush1.bf16.msra.mxu1 %v9085_v32  ;;  %v4571_v17 = vld [vmem:[#allocation12] sm:$0xff]  ;;  %v4572_v32 = vld [vmem:[#allocation12 + $0x8] sm:$0xff] }
 0x9d1   :  { %6447 = vmatprep.subr.bf16.mxu0 %v9086_v46  ;;  %6479 = vmatprep.subr.bf16.mxu1 %v9027_v26  ;;  %v4488_v26 = vld [vmem:[#allocation11 + $0x58] sm:$0xff]  ;;  %v4573_v46 = vld [vmem:[#allocation12 + $0x10] sm:$0xff] }
 0x9d2   :  { %v6530_v53 = vpack.c.bf16 %v4574_v33, %v4573_v46 }
 0x9d4   :  { %6449 = vmatpush1.bf16.msra.mxu0 %v9028_v43  ;;  %6481 = vmatpush1.bf16.msra.mxu1 %v9029_v4  ;;  %v4489_v4 = vld [vmem:[#allocation11 + $0x60] sm:$0xff] }
 0x9d5   :  { %6451 = vmatprep.subr.bf16.mxu0 %v9030_v18  ;;  %6483 = vmatprep.subr.bf16.mxu1 %v9031_v61  ;;  %v4490_v18 = vld [vmem:[#allocation11 + $0x68] sm:$0xff] }
 0x9d6   :  { %v6521_v61 = vpack.c.bf16 %v4490_v18, %v4489_v4  ;;  %v4669_v4 = vld [vmem:[#allocation14 + $0x20] sm:$0xff]  ;;  %v4670_v18 = vld [vmem:[#allocation14 + $0x28] sm:$0xff] }
 0x9d8   :  { %6453 = vmatpush1.bf16.msra.mxu0 %v9032_v47  ;;  %6485 = vmatpush1.bf16.msra.mxu1 %v9033_v2  ;;  %v4491_v47 = vld [vmem:[#allocation11 + $0x70] sm:$0xff]  ;;  %v4492_v2 = vld [vmem:[#allocation11 + $0x78] sm:$0xff] }
 0x9d9   :  { %6455 = vmatprep.subr.bf16.mxu0 %v9034_v0  ;;  %6487 = vmatprep.subr.bf16.mxu1 %v9035_v11  ;;  %v4486_v11 = vld [vmem:[#allocation11 + $0x48] sm:$0xff]  ;;  %v6524_v0 = vpack.c.bf16 %v4492_v2, %v4491_v47  ;;  %v4671_v47 = vld [vmem:[#allocation14 + $0x30] sm:$0xff]  ;;  %v4672_v2 = vld [vmem:[#allocation14 + $0x38] sm:$0xff] }
 0x9dc   :  { %6457 = vmatpush1.bf16.msra.mxu0 %v9036_v36  ;;  %6489 = vmatpush1.bf16.msra.mxu1 %v9037_v63  ;;  %v6515_v36 = vpack.c.bf16 %v4486_v11, %v4485_v5  ;;  %v4487_v63 = vld [vmem:[#allocation11 + $0x50] sm:$0xff]  ;;  %v4586_v11 = vld [vmem:[#allocation12 + $0x78] sm:$0xff] }
 0x9dd   :  { %6459 = vmatprep.subr.bf16.mxu0 %v7614_v42  ;;  %6491 = vmatprep.subr.bf16.mxu1 %v7616_v38  ;;  %v4169_v42 = vsel %vm4168_vm7, %v8534_v1, %v8442_v51  ;;  %v4477_v38 = vld [vmem:[#allocation11] sm:$0xff]  ;;  %v6518_v43 = vpack.c.bf16 %v4488_v26, %v4487_v63  ;;  %v6527_v51 = vpack.c.bf16 %v4572_v32, %v4571_v17  ;;  %v4585_v5 = vld [vmem:[#allocation12 + $0x70] sm:$0xff]  ;;  %v4668_v26 = vld [vmem:[#allocation14 + $0x18] sm:$0xff] }
 0x9de   :  { %v4575_v1 = vld [vmem:[#allocation12 + $0x20] sm:$0xff]  ;;  %v4667_v63 = vld [vmem:[#allocation14 + $0x10] sm:$0xff]  ;;  %v4674_v32 = vld [vmem:[#allocation14 + $0x48] sm:$0xff] }
 0x9df   :  { %v6533_v30 = vpack.c.bf16 %v4576_v7, %v4575_v1  ;;  %v4673_v17 = vld [vmem:[#allocation14 + $0x40] sm:$0xff] }
 0x9e0   :  { %6461 = vmatpush1.bf16.msra.mxu0 %v7620_v40  ;;  %6493 = vmatpush1.bf16.msra.mxu1 %v7622_v6  ;;  %v4478_v40 = vld [vmem:[#allocation11 + $0x8] sm:$0xff]  ;;  %v6563_v46 = vpack.c.bf16 %v4674_v32, %v4673_v17 }
 0x9e1   :  { %6463 = vmatprep.subr.bf16.mxu0 %v7626_v48  ;;  %6495 = vmatprep.subr.bf16.mxu1 %v7628_v62  ;;  %v6503_v6 = vpack.c.bf16 %v4478_v40, %v4477_v38  ;;  %v7043_v48 = vmov 0.0|0.0   ;;  %v4479_v62 = vld [vmem:[#allocation11 + $0x10] sm:$0xff] }
 0x9e4   :  { %6465 = vmatpush1.bf16.msra.mxu0 %v7632_v13  ;;  %6497 = vmatpush1.bf16.msra.mxu1 %v7634_v54  ;;  %v4480_v13 = vld [vmem:[#allocation11 + $0x18] sm:$0xff] }
 0x9e5   :  { %6467 = vmatprep.subr.bf16.mxu0 %v7638_v24  ;;  %6499 = vmatprep.subr.bf16.mxu1 %v7640_v56  ;;  %v6506_v54 = vpack.c.bf16 %v4480_v13, %v4479_v62  ;;  %v4481_v24 = vld [vmem:[#allocation11 + $0x20] sm:$0xff]  ;;  %v4482_v56 = vld [vmem:[#allocation11 + $0x28] sm:$0xff] }
 0x9e8   :  { %6469 = vmatpush1.bf16.msra.mxu0 %v7644_v50  ;;  %6501 = vmatpush1.bf16.msra.mxu1 %v7646_v52  ;;  %v6509_v50 = vpack.c.bf16 %v4482_v56, %v4481_v24  ;;  %v4483_v52 = vld [vmem:[#allocation11 + $0x30] sm:$0xff] }
 0x9e9   :  { %6502 = vmatprep.subr.bf16.mxu0 %v7043_v48  ;;  %6526 = vmatprep.subr.bf16.mxu1 %v7043_v48  ;;  %v6512_v55 = vpack.c.bf16 %v4484_v35, %v4483_v52  ;;  %v4581_v56 = vld [vmem:[#allocation12 + $0x50] sm:$0xff]  ;;  %v4583_v35 = vld [vmem:[#allocation12 + $0x60] sm:$0xff] }
 0x9eb   :  { %4377 = vmatmul.mubr.f32.vlgmr.msra.gmra.mrb[30].mxu0 %v4169_v42  ;;  %4448 = vmatmul.mubr.f32.vlgmr.msra.gmra.mrb[30].mxu1 %v4169_v42 }
 0x9ec   :  { %6504 = vmatpush3.bf16.msra.mxu0 %v6503_v6  ;;  %4893 = vmatprep.mubr.msk.f32.mxu0 %vm7044_vm8, %v8935_v31 }
 0x9ed   :  { %6505 = vmatprep.subr.bf16.mxu0 %v7043_v48  ;;  %4928 = vmatprep.mubr.msk.f32.mxu1 %vm7044_vm8, %v8935_v31 }
 0x9ee   :  { %6528 = vmatpush3.bf16.msra.mxu1 %v6527_v51  ;;  %v4807_v51 = vld [vmem:[%s8700_s9] ss:$0 sm:$0xff] }
 0x9ef   :  { %6529 = vmatprep.subr.bf16.mxu1 %v7043_v48 }
 0x9f0   :  { %6507 = vmatpush3.bf16.msra.mxu0 %v6506_v54 }
 0x9f1   :  { %6508 = vmatprep.subr.bf16.mxu0 %v7043_v48 }
 0x9f2   :  { %6531 = vmatpush3.bf16.msra.mxu1 %v6530_v53 }
 0x9f3   :  { %6532 = vmatprep.subr.bf16.mxu1 %v7043_v48 }
 0x9f4   :  { %6510 = vmatpush3.bf16.msra.mxu0 %v6509_v50  ;;  %v4582_v50 = vld [vmem:[#allocation12 + $0x58] sm:$0xff] }
 0x9f5   :  { %6511 = vmatprep.subr.bf16.mxu0 %v7043_v48  ;;  %v6542_v52 = vpack.c.bf16 %v4582_v50, %v4581_v56 }
 0x9f6   :  { %6534 = vmatpush3.bf16.msra.mxu1 %v6533_v30  ;;  %v4675_v30 = vld [vmem:[#allocation14 + $0x50] sm:$0xff] }
 0x9f7   :  { %6535 = vmatprep.subr.bf16.mxu1 %v7043_v48  ;;  %v6566_v41 = vpack.c.bf16 %v4676_v15, %v4675_v30 }
 0x9f8   :  { %6513 = vmatpush3.bf16.msra.mxu0 %v6512_v55 }
 0x9f9   :  { %6514 = vmatprep.subr.bf16.mxu0 %v7043_v48 }
 0x9fa   :  { %6537 = vmatpush3.bf16.msra.mxu1 %v6536_v29  ;;  %v4677_v29 = vld [vmem:[#allocation14 + $0x60] sm:$0xff] }
 0x9fb   :  { %6538 = vmatprep.subr.bf16.mxu1 %v7043_v48  ;;  %v6569_v16 = vpack.c.bf16 %v4678_v23, %v4677_v29 }
 0x9fc   :  { %6516 = vmatpush3.bf16.msra.mxu0 %v6515_v36  ;;  %v6548_v36 = vpack.c.bf16 %v4586_v11, %v4585_v5 }
 0x9fd   :  { %6517 = vmatprep.subr.bf16.mxu0 %v7043_v48 }
 0x9fe   :  { %6540 = vmatpush3.bf16.msra.mxu1 %v6539_v25  ;;  %v4679_v25 = vld [vmem:[#allocation14 + $0x70] sm:$0xff] }
 0x9ff   :  { %6541 = vmatprep.subr.bf16.mxu1 %v7043_v48 }
 0xa00   :  { %6519 = vmatpush3.bf16.msra.mxu0 %v6518_v43  ;;  %v6554_v43 = vpack.c.bf16 %v4668_v26, %v4667_v63 }
 0xa01   :  { %6520 = vmatprep.subr.bf16.mxu0 %v7043_v48 }
 0xa02   :  { %6543 = vmatpush3.bf16.msra.mxu1 %v6542_v52 }
 0xa03   :  { %6544 = vmatprep.subr.bf16.mxu1 %v7043_v48 }
 0xa04   :  { %6522 = vmatpush3.bf16.msra.mxu0 %v6521_v61  ;;  %v6557_v61 = vpack.c.bf16 %v4670_v18, %v4669_v4 }
 0xa05   :  { %6523 = vmatprep.subr.bf16.mxu0 %v7043_v48 }
 0xa08   :  { %6525 = vmatpush3.bf16.msra.mxu0 %v6524_v0  ;;  %v6560_v0 = vpack.c.bf16 %v4672_v2, %v4671_v47 }
 0xa09   :  { %6550 = vmatprep.subr.bf16.mxu0 %v7043_v48 }
 0xabe   :  { %v4378_v12 = vpop.f32.mrb[30].mxu0  ;;  %v4449_v27 = vpop.f32.mrb[30].mxu1 }
 0xabf   :  { %v4454_v60 = vadd.f32 %v4378_v12, %v9377_v45  ;;  %v4380_v58 = vpop.f32.mrb[31].mxu0  ;;  %v4451_v22 = vpop.f32.mrb[31].mxu1  ;;  %v4456_v34 = vadd.f32 %v4449_v27, %v9082_v19  ;;  %v4680_v12 = vld [vmem:[#allocation14 + $0x78] sm:$0xff] }
 0xac0   :  { %v4455_v21 = vadd.f32 %v4380_v58, %v9081_v20  ;;  %v4457_v10 = vadd.f32 %v4451_v22, %v7775_v44  ;;  %v6572_v27 = vpack.c.bf16 %v4680_v12, %v4679_v25 }
 0xac1   :  { %v4458_v14 = vmul.f32 0.5, %v4454_v60  ;;  %v4808_v60 = vld [vmem:[%s8702_s11] ss:$0 sm:$0xff] }
 0xac2   :  { %v4462_v37 = vmul.f32 0.5, %v4455_v21  ;;  %v4467_v9 = vmul.f32 0.5, %v4457_v10 }
 0xac3   :  { %6829 = vtanh.f32 %v4458_v14 }
 0xac4   :  { %6831 = vtanh.f32 %v4462_v37  ;;  %v4809_v37 = vld [vmem:[%s8704_s13] ss:$0 sm:$0xff] }
 0xac5   :  { %6833 = vtanh.f32 %v4456_v34 }
 0xac6   :  { %6835 = vtanh.f32 %v4467_v9 }
 0xacd   :  { %v6830_v3 = vpop.eup %6829 }
 0xace   :  { %v6832_v8 = vpop.eup %6831  ;;  %v4460_v39 = vadd.f32 1.0, %v6830_v3 }
 0xacf   :  { %v4464_v59 = vadd.f32 1.0, %v6832_v8  ;;  %v6834_v42 = vpop.eup %6833 }
 0xad0   :  { %v4461_v45 = vmul.f32 0.5, %v4460_v39  ;;  %v6836_v62 = vpop.eup %6835 }
 0xad1   :  { %v4465_v38 = vmul.f32 0.5, %v4464_v59  ;;  %v4469_v19 = vadd.f32 1.0, %v6836_v62 }
 0xad2   :  { %v4472_v40 = vmul.f32 %v6834_v42, %v4461_v45 }
 0xad3   :  { %v4471_v20 = vmul.f32 %v4465_v38, %v8584_v49  ;;  %v4470_v13 = vmul.f32 0.5, %v4469_v19  ;;  %v4584_v49 = vld [vmem:[#allocation12 + $0x68] sm:$0xff] }
 0xad4   :  { %v6545_v55 = vpack.c.bf16 %v4584_v49, %v4583_v35 }
 0xad5   :  { %v4473_v6 = vadd.f32 %v4472_v40, %v4471_v20 }
 0xad6   :  { %6546 = vmatpush3.bf16.msra.mxu1 %v6545_v55 }
 0xad7   :  { %6837 = vtanh.f32 %v4473_v6  ;;  %6547 = vmatprep.subr.bf16.mxu1 %v7043_v48 }
 0xada   :  { %6549 = vmatpush3.bf16.msra.mxu1 %v6548_v36 }
 0xae1   :  { %v6838_v54 = vpop.eup %6837 }
 0xae2   :  { %v4475_v24 = vmul.f32 %v6838_v54, %v4470_v13 }
 0xae4   :  { %v4476_v44 = vsel %vm4168_vm7, %v4475_v24, %v8589_v28  ;;  %v4665_v28 = vld [vmem:[#allocation14] sm:$0xff] }
 0xae5   :  { %4894 = vmatmul.mubr.f32.vlgmr.msra.gmra.mrb[32].mxu0 %v4476_v44 }
 0xae6   :  { %4963 = vmatprep.mubr.msk.f32.mxu0 %vm7044_vm8, %v8935_v31  ;;  %v6551_v31 = vpack.c.bf16 %v4666_v57, %v4665_v28 }
 0xae8   :  { %6552 = vmatpush3.bf16.msra.mxu0 %v6551_v31 }
 0xae9   :  { %6553 = vmatprep.subr.bf16.mxu0 %v7043_v48 }
 0xaec   :  { %6555 = vmatpush3.bf16.msra.mxu0 %v6554_v43 }
 0xaed   :  { %6556 = vmatprep.subr.bf16.mxu0 %v7043_v48 }
 0xaf0   :  { %6558 = vmatpush3.bf16.msra.mxu0 %v6557_v61 }
 0xaf1   :  { %6559 = vmatprep.subr.bf16.mxu0 %v7043_v48 }
 0xaf4   :  { %6561 = vmatpush3.bf16.msra.mxu0 %v6560_v0 }
 0xaf5   :  { %6562 = vmatprep.subr.bf16.mxu0 %v7043_v48 }
 0xaf8   :  { %6564 = vmatpush3.bf16.msra.mxu0 %v6563_v46 }
 0xaf9   :  { %6565 = vmatprep.subr.bf16.mxu0 %v7043_v48 }
 0xafc   :  { %6567 = vmatpush3.bf16.msra.mxu0 %v6566_v41 }
 0xafd   :  { %6568 = vmatprep.subr.bf16.mxu0 %v7043_v48 }
 0xb00   :  { %6570 = vmatpush3.bf16.msra.mxu0 %v6569_v16 }
 0xb01   :  { %6571 = vmatprep.subr.bf16.mxu0 %v7043_v48 }
 0xb04   :  { %6573 = vmatpush3.bf16.msra.mxu0 %v6572_v27 }
 0xbb8   :  { %v4566_v33 = vpop.f32.mrb[32].mxu0 }
 0xbb9   :  { %v4567_v53 = vadd.f32 %v4807_v51, %v4566_v33  ;;  %v4895_v1 = vpop.f32.mrb[33].mxu0 }
 0xbbb   :  { %6839 = vtanh.f32 %v4567_v53 }
 0xbc5   :  { %v6840_v7 = vpop.eup %6839 }
 0xbc6   :  { %4929 = vmatmul.mubr.f32.vlgmr.msra.gmra.mrb[32].mxu1 %v6840_v7 }
 0xc99   :  { %v4660_v58 = vpop.f32.mrb[32].mxu1 }
 0xc9a   :  { %v4661_v22 = vadd.f32 %v4808_v60, %v4660_v58  ;;  %v4930_v21 = vpop.f32.mrb[33].mxu1 }
 0xc9c   :  { %6841 = vtanh.f32 %v4661_v22 }
 0xca6   :  { %v6842_v14 = vpop.eup %6841 }
 0xca7   :  { %4964 = vmatmul.mubr.f32.vlgmr.msra.gmra.mrb[34].mxu0 %v6842_v14 }
 0xd7a   :  { %v4754_v34 = vpop.f32.mrb[34].mxu0 }
 0xd7b   :  { %v4755_v10 = vadd.f32 %v4809_v37, %v4754_v34  ;;  %v4965_v48 = vpop.f32.mrb[35].mxu0 }
 0xd7d   :  { %4758 = vst [vmem:[#allocation15] sm:$0xff] %v4755_v10 }
 0xd7e   :  { %7008 = shalt.err (!%p7005_p4)
}
 0xd7f   :  { %s7009_s12 = scalar_lea.hbm %s8705_s14, 128 }
 0xd80   :  { %p7010_p5 = scmp.ne.s32.totalorder %s8705_s14, %s7009_s12  ;;  %p7013_p6 = scmp.lt.u32.totalorder %s7009_s12, %s8705_s14 }
 0xd82   :  { %p7015_p7 = pnand %p7013_p6, %p7010_p5 }
 0xd84   :  { %7018 = shalt.err (!%p7015_p7)
}
 0xd85   :  { %4768 = dma.vmem_to_hbm [thread:$0]  %s4766_s4, 128, %s8705_s14, [#allocation5]  }
 0xd86   :  { %7027 = dma.done.wait [#allocation5], 128  }
 0xd87   :  { %7028 = vsyncadd [#allocation5], 4294967168 }
 0xd88   :  { %4772 = vsyncpa [#allocation4], 1 }
 0xd89   :  { %4773 = vsyncpa [#allocation7], 1 }
 0xd8a   :  { %4774 = vsyncpa [#allocation10], 1 }
 0xd8b   :  { %4775 = vsyncpa [#allocation13], 1 }
 0xd8c   :  { %4776 = vsyncpa [#allocation5], 1 }

</bundles_post_ra>
